<compile_context>
chip_gen: v5e
topology: v5e:2x2
jax: 0.10.0
libtpu: 0.0.40
codegen_flags: <defaults>
</compile_context>

<pallas_src>
import functools

import jax
import jax.numpy as jnp
from jax.experimental import pallas as pl
from jax.experimental.pallas import tpu as pltpu

EPS_BN = 1e-5          # nn.BatchNorm2d default
EPS_SN = 1e-12         # nn.utils.spectral_norm default


# ----------------------------------------------------------------------------
# host-side helpers
# ----------------------------------------------------------------------------
def _round_up(a, b):
    return ((a + b - 1) // b) * b


def spectral_norm_weight(weight_orig, u0):
    """One power iteration, as nn.utils.spectral_norm does on a training forward."""
    cout = weight_orig.shape[0]
    w_mat = weight_orig.reshape(cout, -1)

    def _l2n(v):
        return v / (jnp.linalg.norm(v) + EPS_SN)

    u = _l2n(u0)
    v = _l2n(w_mat.T @ u)
    u = _l2n(w_mat @ v)
    sigma = u @ (w_mat @ v)
    return weight_orig / sigma
    # TODO(synk): the updated u vector is a module buffer side effect; it does
    # not change this forward's output and is not returned.


def _w_taps(w_oihw, dtype=jnp.bfloat16):
    """(Cout, Cin, k, k) OIHW -> (k*k, Cout, Cin), tap-major (dy, dx), bf16."""
    cout, cin, kh, kw = w_oihw.shape
    return jnp.transpose(w_oihw, (2, 3, 0, 1)).reshape(kh * kw, cout, cin).astype(dtype)


# ----------------------------------------------------------------------------
# in-kernel helpers
# ----------------------------------------------------------------------------
def _mish(x):
    # x * tanh(softplus(x)) with a single exp on the EUP:
    #   tanh(log(1+e)) = e(e+2) / (e(e+2)+2),  e = exp(x)
    e = jnp.exp(jnp.minimum(x, 20.0))
    n = e * (e + 2.0)
    return jnp.where(x > 20.0, x, x * n * pl.reciprocal(n + 2.0, approx=True))


def _conv_taps(x, w_ref, offs, m):
    """3x3 stride-1 conv as shifted-slab matmuls, channels-on-sublanes layout.

    x     : (Cin, L) bf16 value (flattened, zero-padded image)
    w_ref : (k*k, Cout, Cin) bf16 ref, tap-major
    returns sum_t W_t @ x[:, off_t : off_t + m]  as (Cout, m) f32.
    """
    acc = None
    for t, off in enumerate(offs):
        part = jnp.dot(w_ref[t], x[:, off:off + m],
                       preferred_element_type=jnp.float32)
        acc = part if acc is None else acc + part
    return acc


# ----------------------------------------------------------------------------
# kernels
# ----------------------------------------------------------------------------
def _conv_stats_kernel(x_ref, w_ref, mask_ref, y_ref, sum_ref, sq_ref, *, offs, m):
    """Pass A: fused (s|t) ConvBlock conv of one image + partial BN statistics.

    Output columns are already in the *padded* flat layout (interior columns
    hold the conv result, everything else is don't-care garbage that pass B
    masks), so no re-pad is needed before the second conv.
    """
    acc = _conv_taps(x_ref[...], w_ref, offs, m)          # (Cout, m) f32
    y_ref[...] = acc.astype(y_ref.dtype)
    am = acc * mask_ref[...]                              # interior-only
    sum_ref[...] = jnp.sum(am, axis=1, keepdims=True)     # (Cout, 1)
    sq_ref[...] = jnp.sum(am * acc, axis=1, keepdims=True)


def _bn_mish_kernel(y_ref, sum_ref, sq_ref, g_ref, b_ref, mask_ref, o_ref, *,
                    n_img, m_total, eps):
    """Pass B: BatchNorm (train-mode batch stats) + Mish + zero the halo."""
    s = sum_ref[0]
    q = sq_ref[0]
    for i in range(1, n_img):                  # tiny static batch reduction
        s = s + sum_ref[i]
        q = q + sq_ref[i]
    inv = 1.0 / m_total
    mean = s * inv                                        # (C, 1)
    var = jnp.maximum(q * inv - mean * mean, 0.0)
    scale = jax.lax.rsqrt(var + eps) * g_ref[...]
    shift = b_ref[...] - mean * scale
    yn = (y_ref[...].astype(jnp.float32) * scale + shift) * mask_ref[...]
    o_ref[...] = _mish(yn).astype(o_ref.dtype)
    # TODO(synk): running_mean/running_var momentum update (training side
    # effect) is not materialized; it does not change the forward output.


def _zeroconv_couple_kernel(h_ref, w_ref, b_ref, x_ref, o_ref, *, offs, m, d_out):
    """Pass C: block-diagonal (s|t) ZeroConv + bias + affine coupling."""
    zc = _conv_taps(h_ref[...], w_ref, offs, m) + b_ref[...]   # (2*d_out, m)
    s_raw = zc[0:d_out, :]
    t_out = zc[d_out:2 * d_out, :]
    o_ref[...] = x_ref[...] * jnp.exp(jnp.tanh(s_raw)) + t_out


# ----------------------------------------------------------------------------
# one coupling half (fused s/t branches)
# ----------------------------------------------------------------------------
def _coupling_half(x_keep, x_in, w1_sn, gamma, beta, wz, bz):
    """v = x_keep * exp(tanh(s(x_in))) + t(x_in), with s/t fused.

    x_keep : (N, d_out, H, W) f32      half being transformed
    x_in   : (N, Cin, H, W)   f32      concat([other half / v1, c])
    w1_sn  : (2*nh, Cin, 3, 3)         fused, spectral-normed ConvBlock weight
    gamma, beta : (2*nh,)              fused BN affine
    wz     : (2*d_out, 2*nh, 3, 3)     block-diagonal fused ZeroConv weight
    bz     : (2*d_out,)
    """
    n, cin, hh, ww = x_in.shape
    chid = w1_sn.shape[0]
    d_out = x_keep.shape[1]
    czout = 2 * d_out
    kk = w1_sn.shape[2]
    hp, wp = hh + 2, ww + 2
    shift = wp + 1                                    # padded-layout offset
    offs = tuple(dy * wp + dx for dy in range(kk) for dx in range(kk))
    mpad = _round_up(hp * wp + 2, 128)                # pass A/B lane width
    lin = _round_up(mpad + offs[-1], 128)             # pass A input lane width
    m2 = hh * wp                                      # pass C lane width

    # --- host prep: bf16 padded-flat conditioning input, conv-flat x_keep ----
    xp = jnp.pad(x_in, ((0, 0), (0, 0), (1, 1), (1, 1))).reshape(n, cin, hp * wp)
    x_pf = jnp.pad(xp, ((0, 0), (0, 0), (shift, lin - shift - hp * wp))
                   ).astype(jnp.bfloat16)
    x_kf = jnp.pad(x_keep, ((0, 0), (0, 0), (0, 0), (0, wp - ww))
                   ).reshape(n, d_out, m2).astype(jnp.float32)

    cols = jnp.arange(mpad)
    row, col = cols // wp, cols % wp
    interior = (row >= 1) & (row <= hh) & (col >= 1) & (col <= ww)
    maskf = interior.astype(jnp.float32).reshape(1, mpad)

    wt1 = _w_taps(w1_sn)                              # (k*k, chid, cin)  bf16
    wtz = _w_taps(wz)                                 # (k*k, czout, chid) bf16
    g = gamma.reshape(chid, 1).astype(jnp.float32)
    b = beta.reshape(chid, 1).astype(jnp.float32)
    bzv = bz.reshape(czout, 1).astype(jnp.float32)

    par = pltpu.CompilerParams(dimension_semantics=("parallel",))

    # ---- pass A: conv + per-image partial stats (parallel over batch) -------
    y, psum, psq = pl.pallas_call(
        functools.partial(_conv_stats_kernel, offs=offs, m=mpad),
        grid=(n,),
        in_specs=[
            pl.BlockSpec((None, cin, lin), lambda i: (i, 0, 0)),
            pl.BlockSpec((kk * kk, chid, cin), lambda i: (0, 0, 0)),
            pl.BlockSpec((1, mpad), lambda i: (0, 0)),
        ],
        out_specs=[
            pl.BlockSpec((None, chid, mpad), lambda i: (i, 0, 0)),
            pl.BlockSpec((None, chid, 1), lambda i: (i, 0, 0)),
            pl.BlockSpec((None, chid, 1), lambda i: (i, 0, 0)),
        ],
        out_shape=[
            jax.ShapeDtypeStruct((n, chid, mpad), jnp.bfloat16),
            jax.ShapeDtypeStruct((n, chid, 1), jnp.float32),
            jax.ShapeDtypeStruct((n, chid, 1), jnp.float32),
        ],
        compiler_params=par,
    )(x_pf, wt1, maskf)

    # ---- pass B: BN + Mish + halo zeroing (parallel over batch) -------------
    h = pl.pallas_call(
        functools.partial(_bn_mish_kernel, n_img=n,
                          m_total=float(n * hh * ww), eps=EPS_BN),
        grid=(n,),
        in_specs=[
            pl.BlockSpec((None, chid, mpad), lambda i: (i, 0, 0)),
            pl.BlockSpec((n, chid, 1), lambda i: (0, 0, 0)),
            pl.BlockSpec((n, chid, 1), lambda i: (0, 0, 0)),
            pl.BlockSpec((chid, 1), lambda i: (0, 0)),
            pl.BlockSpec((chid, 1), lambda i: (0, 0)),
            pl.BlockSpec((1, mpad), lambda i: (0, 0)),
        ],
        out_specs=pl.BlockSpec((None, chid, mpad), lambda i: (i, 0, 0)),
        out_shape=jax.ShapeDtypeStruct((n, chid, mpad), jnp.bfloat16),
        compiler_params=par,
    )(y, psum, psq, g, b, maskf)

    # ---- pass C: ZeroConv (s|t) + bias + coupling, fused ---------------------
    v_flat = pl.pallas_call(
        functools.partial(_zeroconv_couple_kernel, offs=offs, m=m2, d_out=d_out),
        grid=(n,),
        in_specs=[
            pl.BlockSpec((None, chid, mpad), lambda i: (i, 0, 0)),
            pl.BlockSpec((kk * kk, czout, chid), lambda i: (0, 0, 0)),
            pl.BlockSpec((czout, 1), lambda i: (0, 0)),
            pl.BlockSpec((None, d_out, m2), lambda i: (i, 0, 0)),
        ],
        out_specs=pl.BlockSpec((None, d_out, m2), lambda i: (i, 0, 0)),
        out_shape=jax.ShapeDtypeStruct((n, d_out, m2), jnp.float32),
        compiler_params=par,
    )(h, wtz, bzv, x_kf)

    return v_flat.reshape(n, d_out, hh, wp)[..., :ww]


# ----------------------------------------------------------------------------
# full module forward
# ----------------------------------------------------------------------------
@jax.jit
def conditional_affine_coupling_2d(x, c, params):
    """ConditionalAffineCouplingLayer2d.forward(x, c). x:(N,nf,H,W) c:(N,nf_c,H,W)."""
    n, nf, hh, ww = x.shape
    dima = nf // 2
    dimb = nf - dima
    x1 = x[:, :dima].astype(jnp.float32)
    x2 = x[:, dima:].astype(jnp.float32)
    cf = c.astype(jnp.float32)

    def fused_branch_params(ps, pt, d_out):
        # fuse the s and t branches that share an input (review item 2)
        w_s = spectral_norm_weight(ps["w_conv"], ps["u"])
        w_t = spectral_norm_weight(pt["w_conv"], pt["u"])
        w1 = jnp.concatenate([w_s, w_t], axis=0)              # (2*nh, Cin, 3, 3)
        gamma = jnp.concatenate([ps["gamma"], pt["gamma"]])
        beta = jnp.concatenate([ps["beta"], pt["beta"]])
        nh = ps["w_conv"].shape[0]
        kk = ps["w_zero"].shape[-1]
        wz = jnp.zeros((2 * d_out, 2 * nh, kk, kk), jnp.float32)
        wz = wz.at[:d_out, :nh].set(ps["w_zero"])              # s-branch block
        wz = wz.at[d_out:, nh:].set(pt["w_zero"])              # t-branch block
        bz = jnp.concatenate([ps["b_zero"], pt["b_zero"]])
        return w1, gamma, beta, wz, bz

    in1 = jnp.concatenate([x2, cf], axis=1)
    v1 = _coupling_half(x1, in1,
                        *fused_branch_params(params["s1"], params["t1"], dima))
    in2 = jnp.concatenate([v1, cf], axis=1)
    v2 = _coupling_half(x2, in2,
                        *fused_branch_params(params["s2"], params["t2"], dimb))
    return jnp.concatenate([v1, v2], axis=1)
    # TODO(synk): self.vals1/self.vals2 (tanh(s), stored for logdet) are module
    # attributes, not part of the forward return; they are not materialized.


# ----------------------------------------------------------------------------
# pure-JAX reference for the self-check (un-fused, per original module)
# ----------------------------------------------------------------------------
def _ref_conv(x, w):
    return jax.lax.conv_general_dilated(
        x, w, (1, 1), [(1, 1), (1, 1)],
        dimension_numbers=("NCHW", "OIHW", "NCHW"))


def _ref_conv_block(x, w_orig, u0, gamma, beta):
    w_sn = spectral_norm_weight(w_orig, u0)
    y = _ref_conv(x, w_sn)
    mean = jnp.mean(y, axis=(0, 2, 3), keepdims=True)
    var = jnp.var(y, axis=(0, 2, 3), keepdims=True)        # biased, training mode
    yn = (y - mean) / jnp.sqrt(var + EPS_BN)
    yn = yn * gamma[None, :, None, None] + beta[None, :, None, None]
    return yn * jnp.tanh(jax.nn.softplus(yn))               # Mish


def reference_forward(x, c, params):
    dima = x.shape[1] // 2
    x1, x2 = x[:, :dima], x[:, dima:]

    def branch(inp, p):
        h = _ref_conv_block(inp, p["w_conv"], p["u"], p["gamma"], p["beta"])
        return _ref_conv(h, p["w_zero"]) + p["b_zero"][None, :, None, None]

    in1 = jnp.concatenate([x2, c], axis=1)
    v1 = x1 * jnp.exp(jnp.tanh(branch(in1, params["s1"]))) + branch(in1, params["t1"])
    in2 = jnp.concatenate([v1, c], axis=1)
    v2 = x2 * jnp.exp(jnp.tanh(branch(in2, params["s2"]))) + branch(in2, params["t2"])
    return jnp.concatenate([v1, v2], axis=1)


# ----------------------------------------------------------------------------
if __name__ == "__main__":
    key = jax.random.PRNGKey(0)
    N, NF, NFC, NFH, H, W = 2, 4, 4, 32, 16, 16
    dima = NF // 2
    dimb = NF - dima

    keys = iter(jax.random.split(key, 32))
    x = jax.random.normal(next(keys), (N, NF, H, W), jnp.float32)
    c = jax.random.normal(next(keys), (N, NFC, H, W), jnp.float32)

    def make_branch(cin, cout_zero):
        return {
            # ConvBlock2d conv weight: nn.init.normal_(w, 0.0, 0.05)
            "w_conv": 0.05 * jax.random.normal(next(keys), (NFH, cin, 3, 3), jnp.float32),
            "u": jax.random.normal(next(keys), (NFH,), jnp.float32),     # spectral-norm u
            "gamma": 1.0 + 0.1 * jax.random.normal(next(keys), (NFH,), jnp.float32),
            "beta": 0.1 * jax.random.normal(next(keys), (NFH,), jnp.float32),
            # NOTE: the module zero-inits ZeroConv; small random weights are used
            # here so the self-check exercises the whole pipeline (same semantics).
            "w_zero": 0.05 * jax.random.normal(next(keys), (cout_zero, NFH, 3, 3), jnp.float32),
            "b_zero": 0.05 * jax.random.normal(next(keys), (cout_zero,), jnp.float32),
        }

    params = {
        "s1": make_branch(dimb + NFC, dima),
        "t1": make_branch(dimb + NFC, dima),
        "s2": make_branch(dima + NFC, dimb),
        "t2": make_branch(dima + NFC, dimb),
    }

    out = conditional_affine_coupling_2d(x, c, params)
    out = jax.block_until_ready(out)
    assert out.shape == (N, NF, H, W), out.shape

    ref = reference_forward(x, c, params)
    # bf16 MXU operands through two chained conv stages -> mixed abs/rel check.
    err = float(jnp.max(jnp.abs(out - ref) / (1.0 + jnp.abs(ref))))
    if not (err < 5e-2):
        raise AssertionError(f"Pallas output mismatch vs reference: scaled_err={err}")

    print("KERNEL_OK")
</pallas_src>

<mosaic_0001>
module attributes {stable_mosaic.version = 11 : i64} {
  func.func @_conv_stats_kernel(%arg0: i32, %arg1: memref<1x6x512xbf16, #tpu.memory_space<vmem>>, %arg2: memref<9x64x6xbf16, #tpu.memory_space<vmem>>, %arg3: memref<1x384xf32, #tpu.memory_space<vmem>>, %arg4: memref<1x64x384xbf16, #tpu.memory_space<vmem>>, %arg5: memref<1x64x1xf32, #tpu.memory_space<vmem>>, %arg6: memref<1x64x1xf32, #tpu.memory_space<vmem>>) attributes {dimension_semantics = [#tpu.dimension_semantics<parallel>], iteration_bounds = array<i64: 2>, scalar_prefetch = 0 : i64, scratch_operands = 0 : i64, tpu.core_type = #tpu.core_type<tc>, window_params = [{transform_indices = @transform_0, window_bounds = array<i64: 1, 6, 512>}, {pipeline_mode = #tpu.pipeline_mode<synchronous>, transform_indices = @transform_1, window_bounds = array<i64: 9, 64, 6>}, {pipeline_mode = #tpu.pipeline_mode<synchronous>, transform_indices = @transform_2, window_bounds = array<i64: 1, 384>}, {transform_indices = @transform_3, window_bounds = array<i64: 1, 64, 384>}, {transform_indices = @transform_4, window_bounds = array<i64: 1, 64, 1>}, {transform_indices = @transform_5, window_bounds = array<i64: 1, 64, 1>}]} {
    %c0 = arith.constant 0 : index
    %c0_0 = arith.constant 0 : index
    %c0_1 = arith.constant 0 : index
    %0 = vector.load %arg1[%c0, %c0_0, %c0_1] : memref<1x6x512xbf16, #tpu.memory_space<vmem>>, vector<1x6x512xbf16>
    %1 = vector.shape_cast %0 : vector<1x6x512xbf16> to vector<6x512xbf16>
    %c0_2 = arith.constant 0 : index
    %c0_3 = arith.constant 0 : index
    %c0_4 = arith.constant 0 : index
    %2 = vector.load %arg2[%c0_2, %c0_3, %c0_4] : memref<9x64x6xbf16, #tpu.memory_space<vmem>>, vector<1x64x6xbf16>
    %3 = vector.shape_cast %2 : vector<1x64x6xbf16> to vector<64x6xbf16>
    %4 = vector.extract_strided_slice %1 {offsets = [0, 0], sizes = [6, 384], strides = [1, 1]} : vector<6x512xbf16> to vector<6x384xbf16>
    %cst = arith.constant dense<0.000000e+00> : vector<64x384xf32>
    %5 = tpu.matmul %3, %4, %cst {dimension_numbers = #tpu.dot_dimension_numbers<[1], [0], [0], [1], [0, 0, 1, 1], [], []>} : vector<64x6xbf16>, vector<6x384xbf16>, vector<64x384xf32> -> vector<64x384xf32>
    %c1 = arith.constant 1 : index
    %c0_5 = arith.constant 0 : index
    %c0_6 = arith.constant 0 : index
    %6 = vector.load %arg2[%c1, %c0_5, %c0_6] : memref<9x64x6xbf16, #tpu.memory_space<vmem>>, vector<1x64x6xbf16>
    %7 = vector.shape_cast %6 : vector<1x64x6xbf16> to vector<64x6xbf16>
    %8 = vector.extract_strided_slice %1 {offsets = [0, 1], sizes = [6, 384], strides = [1, 1]} : vector<6x512xbf16> to vector<6x384xbf16>
    %cst_7 = arith.constant dense<0.000000e+00> : vector<64x384xf32>
    %9 = tpu.matmul %7, %8, %cst_7 {dimension_numbers = #tpu.dot_dimension_numbers<[1], [0], [0], [1], [0, 0, 1, 1], [], []>} : vector<64x6xbf16>, vector<6x384xbf16>, vector<64x384xf32> -> vector<64x384xf32>
    %10 = arith.addf %5, %9 : vector<64x384xf32>
    %c2 = arith.constant 2 : index
    %c0_8 = arith.constant 0 : index
    %c0_9 = arith.constant 0 : index
    %11 = vector.load %arg2[%c2, %c0_8, %c0_9] : memref<9x64x6xbf16, #tpu.memory_space<vmem>>, vector<1x64x6xbf16>
    %12 = vector.shape_cast %11 : vector<1x64x6xbf16> to vector<64x6xbf16>
    %13 = vector.extract_strided_slice %1 {offsets = [0, 2], sizes = [6, 384], strides = [1, 1]} : vector<6x512xbf16> to vector<6x384xbf16>
    %cst_10 = arith.constant dense<0.000000e+00> : vector<64x384xf32>
    %14 = tpu.matmul %12, %13, %cst_10 {dimension_numbers = #tpu.dot_dimension_numbers<[1], [0], [0], [1], [0, 0, 1, 1], [], []>} : vector<64x6xbf16>, vector<6x384xbf16>, vector<64x384xf32> -> vector<64x384xf32>
    %15 = arith.addf %10, %14 : vector<64x384xf32>
    %c3 = arith.constant 3 : index
    %c0_11 = arith.constant 0 : index
    %c0_12 = arith.constant 0 : index
    %16 = vector.load %arg2[%c3, %c0_11, %c0_12] : memref<9x64x6xbf16, #tpu.memory_space<vmem>>, vector<1x64x6xbf16>
    %17 = vector.shape_cast %16 : vector<1x64x6xbf16> to vector<64x6xbf16>
    %18 = vector.extract_strided_slice %1 {offsets = [0, 18], sizes = [6, 384], strides = [1, 1]} : vector<6x512xbf16> to vector<6x384xbf16>
    %cst_13 = arith.constant dense<0.000000e+00> : vector<64x384xf32>
    %19 = tpu.matmul %17, %18, %cst_13 {dimension_numbers = #tpu.dot_dimension_numbers<[1], [0], [0], [1], [0, 0, 1, 1], [], []>} : vector<64x6xbf16>, vector<6x384xbf16>, vector<64x384xf32> -> vector<64x384xf32>
    %20 = arith.addf %15, %19 : vector<64x384xf32>
    %c4 = arith.constant 4 : index
    %c0_14 = arith.constant 0 : index
    %c0_15 = arith.constant 0 : index
    %21 = vector.load %arg2[%c4, %c0_14, %c0_15] : memref<9x64x6xbf16, #tpu.memory_space<vmem>>, vector<1x64x6xbf16>
    %22 = vector.shape_cast %21 : vector<1x64x6xbf16> to vector<64x6xbf16>
    %23 = vector.extract_strided_slice %1 {offsets = [0, 19], sizes = [6, 384], strides = [1, 1]} : vector<6x512xbf16> to vector<6x384xbf16>
    %cst_16 = arith.constant dense<0.000000e+00> : vector<64x384xf32>
    %24 = tpu.matmul %22, %23, %cst_16 {dimension_numbers = #tpu.dot_dimension_numbers<[1], [0], [0], [1], [0, 0, 1, 1], [], []>} : vector<64x6xbf16>, vector<6x384xbf16>, vector<64x384xf32> -> vector<64x384xf32>
    %25 = arith.addf %20, %24 : vector<64x384xf32>
    %c5 = arith.constant 5 : index
    %c0_17 = arith.constant 0 : index
    %c0_18 = arith.constant 0 : index
    %26 = vector.load %arg2[%c5, %c0_17, %c0_18] : memref<9x64x6xbf16, #tpu.memory_space<vmem>>, vector<1x64x6xbf16>
    %27 = vector.shape_cast %26 : vector<1x64x6xbf16> to vector<64x6xbf16>
    %28 = vector.extract_strided_slice %1 {offsets = [0, 20], sizes = [6, 384], strides = [1, 1]} : vector<6x512xbf16> to vector<6x384xbf16>
    %cst_19 = arith.constant dense<0.000000e+00> : vector<64x384xf32>
    %29 = tpu.matmul %27, %28, %cst_19 {dimension_numbers = #tpu.dot_dimension_numbers<[1], [0], [0], [1], [0, 0, 1, 1], [], []>} : vector<64x6xbf16>, vector<6x384xbf16>, vector<64x384xf32> -> vector<64x384xf32>
    %30 = arith.addf %25, %29 : vector<64x384xf32>
    %c6 = arith.constant 6 : index
    %c0_20 = arith.constant 0 : index
    %c0_21 = arith.constant 0 : index
    %31 = vector.load %arg2[%c6, %c0_20, %c0_21] : memref<9x64x6xbf16, #tpu.memory_space<vmem>>, vector<1x64x6xbf16>
    %32 = vector.shape_cast %31 : vector<1x64x6xbf16> to vector<64x6xbf16>
    %33 = vector.extract_strided_slice %1 {offsets = [0, 36], sizes = [6, 384], strides = [1, 1]} : vector<6x512xbf16> to vector<6x384xbf16>
    %cst_22 = arith.constant dense<0.000000e+00> : vector<64x384xf32>
    %34 = tpu.matmul %32, %33, %cst_22 {dimension_numbers = #tpu.dot_dimension_numbers<[1], [0], [0], [1], [0, 0, 1, 1], [], []>} : vector<64x6xbf16>, vector<6x384xbf16>, vector<64x384xf32> -> vector<64x384xf32>
    %35 = arith.addf %30, %34 : vector<64x384xf32>
    %c7 = arith.constant 7 : index
    %c0_23 = arith.constant 0 : index
    %c0_24 = arith.constant 0 : index
    %36 = vector.load %arg2[%c7, %c0_23, %c0_24] : memref<9x64x6xbf16, #tpu.memory_space<vmem>>, vector<1x64x6xbf16>
    %37 = vector.shape_cast %36 : vector<1x64x6xbf16> to vector<64x6xbf16>
    %38 = vector.extract_strided_slice %1 {offsets = [0, 37], sizes = [6, 384], strides = [1, 1]} : vector<6x512xbf16> to vector<6x384xbf16>
    %cst_25 = arith.constant dense<0.000000e+00> : vector<64x384xf32>
    %39 = tpu.matmul %37, %38, %cst_25 {dimension_numbers = #tpu.dot_dimension_numbers<[1], [0], [0], [1], [0, 0, 1, 1], [], []>} : vector<64x6xbf16>, vector<6x384xbf16>, vector<64x384xf32> -> vector<64x384xf32>
    %40 = arith.addf %35, %39 : vector<64x384xf32>
    %c8 = arith.constant 8 : index
    %c0_26 = arith.constant 0 : index
    %c0_27 = arith.constant 0 : index
    %41 = vector.load %arg2[%c8, %c0_26, %c0_27] : memref<9x64x6xbf16, #tpu.memory_space<vmem>>, vector<1x64x6xbf16>
    %42 = vector.shape_cast %41 : vector<1x64x6xbf16> to vector<64x6xbf16>
    %43 = vector.extract_strided_slice %1 {offsets = [0, 38], sizes = [6, 384], strides = [1, 1]} : vector<6x512xbf16> to vector<6x384xbf16>
    %cst_28 = arith.constant dense<0.000000e+00> : vector<64x384xf32>
    %44 = tpu.matmul %42, %43, %cst_28 {dimension_numbers = #tpu.dot_dimension_numbers<[1], [0], [0], [1], [0, 0, 1, 1], [], []>} : vector<64x6xbf16>, vector<6x384xbf16>, vector<64x384xf32> -> vector<64x384xf32>
    %45 = arith.addf %40, %44 : vector<64x384xf32>
    %46 = arith.truncf %45 : vector<64x384xf32> to vector<64x384xbf16>
    %c0_29 = arith.constant 0 : index
    %c0_30 = arith.constant 0 : index
    %c0_31 = arith.constant 0 : index
    %47 = vector.load %arg4[%c0_29, %c0_30, %c0_31] : memref<1x64x384xbf16, #tpu.memory_space<vmem>>, vector<1x64x384xbf16>
    %48 = vector.shape_cast %47 : vector<1x64x384xbf16> to vector<64x384xbf16>
    %49 = vector.shape_cast %46 : vector<64x384xbf16> to vector<1x64x384xbf16>
    tpu.vector_store %arg4[%c0_29, %c0_30, %c0_31], %49 {strides = array<i32>} : memref<1x64x384xbf16, #tpu.memory_space<vmem>>, vector<1x64x384xbf16>,
    %c0_32 = arith.constant 0 : index
    %c0_33 = arith.constant 0 : index
    %50 = vector.load %arg3[%c0_32, %c0_33] : memref<1x384xf32, #tpu.memory_space<vmem>>, vector<1x384xf32>
    %51 = vector.broadcast %50 : vector<1x384xf32> to vector<64x384xf32>
    %52 = arith.mulf %45, %51 : vector<64x384xf32>
    %cst_34 = arith.constant dense<0.000000e+00> : vector<64xf32>
    %53 = vector.multi_reduction <add>, %52, %cst_34 [1] : vector<64x384xf32> to vector<64xf32>
    %54 = vector.shape_cast %53 : vector<64xf32> to vector<64x1xf32>
    %c0_35 = arith.constant 0 : index
    %c0_36 = arith.constant 0 : index
    %c0_37 = arith.constant 0 : index
    %55 = vector.load %arg5[%c0_35, %c0_36, %c0_37] : memref<1x64x1xf32, #tpu.memory_space<vmem>>, vector<1x64x1xf32>
    %56 = vector.shape_cast %55 : vector<1x64x1xf32> to vector<64x1xf32>
    %57 = vector.shape_cast %54 : vector<64x1xf32> to vector<1x64x1xf32>
    tpu.vector_store %arg5[%c0_35, %c0_36, %c0_37], %57 {strides = array<i32>} : memref<1x64x1xf32, #tpu.memory_space<vmem>>, vector<1x64x1xf32>,
    %58 = arith.mulf %52, %45 : vector<64x384xf32>
    %cst_38 = arith.constant dense<0.000000e+00> : vector<64xf32>
    %59 = vector.multi_reduction <add>, %58, %cst_38 [1] : vector<64x384xf32> to vector<64xf32>
    %60 = vector.shape_cast %59 : vector<64xf32> to vector<64x1xf32>
    %c0_39 = arith.constant 0 : index
    %c0_40 = arith.constant 0 : index
    %c0_41 = arith.constant 0 : index
    %61 = vector.load %arg6[%c0_39, %c0_40, %c0_41] : memref<1x64x1xf32, #tpu.memory_space<vmem>>, vector<1x64x1xf32>
    %62 = vector.shape_cast %61 : vector<1x64x1xf32> to vector<64x1xf32>
    %63 = vector.shape_cast %60 : vector<64x1xf32> to vector<1x64x1xf32>
    tpu.vector_store %arg6[%c0_39, %c0_40, %c0_41], %63 {strides = array<i32>} : memref<1x64x1xf32, #tpu.memory_space<vmem>>, vector<1x64x1xf32>,
    return
  }
  func.func @transform_0(%arg0: i32) -> (i32, i32, i32) {
    %c0_i32 = arith.constant 0 : i32
    %c0_i32_0 = arith.constant 0 : i32
    %c0_i32_1 = arith.constant 0 : i32
    return %arg0, %c0_i32, %c0_i32_0 : i32, i32, i32
  }
  func.func @transform_1(%arg0: i32) -> (i32, i32, i32) {
    %c0_i32 = arith.constant 0 : i32
    %c0_i32_0 = arith.constant 0 : i32
    %c0_i32_1 = arith.constant 0 : i32
    %c0_i32_2 = arith.constant 0 : i32
    return %c0_i32, %c0_i32_0, %c0_i32_1 : i32, i32, i32
  }
  func.func @transform_2(%arg0: i32) -> (i32, i32) {
    %c0_i32 = arith.constant 0 : i32
    %c0_i32_0 = arith.constant 0 : i32
    %c0_i32_1 = arith.constant 0 : i32
    return %c0_i32, %c0_i32_0 : i32, i32
  }
  func.func @transform_3(%arg0: i32) -> (i32, i32, i32) {
    %c0_i32 = arith.constant 0 : i32
    %c0_i32_0 = arith.constant 0 : i32
    %c0_i32_1 = arith.constant 0 : i32
    return %arg0, %c0_i32, %c0_i32_0 : i32, i32, i32
  }
  func.func @transform_4(%arg0: i32) -> (i32, i32, i32) {
    %c0_i32 = arith.constant 0 : i32
    %c0_i32_0 = arith.constant 0 : i32
    %c0_i32_1 = arith.constant 0 : i32
    return %arg0, %c0_i32, %c0_i32_0 : i32, i32, i32
  }
  func.func @transform_5(%arg0: i32) -> (i32, i32, i32) {
    %c0_i32 = arith.constant 0 : i32
    %c0_i32_0 = arith.constant 0 : i32
    %c0_i32_1 = arith.constant 0 : i32
    return %arg0, %c0_i32, %c0_i32_0 : i32, i32, i32
  }
}

module attributes {stable_mosaic.version = 11 : i64} {
  func.func @_bn_mish_kernel(%arg0: i32, %arg1: memref<1x64x384xbf16, #tpu.memory_space<vmem>>, %arg2: memref<2x64x1xf32, #tpu.memory_space<vmem>>, %arg3: memref<2x64x1xf32, #tpu.memory_space<vmem>>, %arg4: memref<64x1xf32, #tpu.memory_space<vmem>>, %arg5: memref<64x1xf32, #tpu.memory_space<vmem>>, %arg6: memref<1x384xf32, #tpu.memory_space<vmem>>, %arg7: memref<1x64x384xbf16, #tpu.memory_space<vmem>>) attributes {dimension_semantics = [#tpu.dimension_semantics<parallel>], iteration_bounds = array<i64: 2>, scalar_prefetch = 0 : i64, scratch_operands = 0 : i64, tpu.core_type = #tpu.core_type<tc>, window_params = [{transform_indices = @transform_0, window_bounds = array<i64: 1, 64, 384>}, {pipeline_mode = #tpu.pipeline_mode<synchronous>, transform_indices = @transform_1, window_bounds = array<i64: 2, 64, 1>}, {pipeline_mode = #tpu.pipeline_mode<synchronous>, transform_indices = @transform_2, window_bounds = array<i64: 2, 64, 1>}, {pipeline_mode = #tpu.pipeline_mode<synchronous>, transform_indices = @transform_3, window_bounds = array<i64: 64, 1>}, {pipeline_mode = #tpu.pipeline_mode<synchronous>, transform_indices = @transform_4, window_bounds = array<i64: 64, 1>}, {pipeline_mode = #tpu.pipeline_mode<synchronous>, transform_indices = @transform_5, window_bounds = array<i64: 1, 384>}, {transform_indices = @transform_6, window_bounds = array<i64: 1, 64, 384>}]} {
    %c0 = arith.constant 0 : index
    %c0_0 = arith.constant 0 : index
    %c0_1 = arith.constant 0 : index
    %0 = vector.load %arg2[%c0, %c0_0, %c0_1] : memref<2x64x1xf32, #tpu.memory_space<vmem>>, vector<1x64x1xf32>
    %1 = vector.shape_cast %0 : vector<1x64x1xf32> to vector<64x1xf32>
    %c0_2 = arith.constant 0 : index
    %c0_3 = arith.constant 0 : index
    %c0_4 = arith.constant 0 : index
    %2 = vector.load %arg3[%c0_2, %c0_3, %c0_4] : memref<2x64x1xf32, #tpu.memory_space<vmem>>, vector<1x64x1xf32>
    %3 = vector.shape_cast %2 : vector<1x64x1xf32> to vector<64x1xf32>
    %c1 = arith.constant 1 : index
    %c0_5 = arith.constant 0 : index
    %c0_6 = arith.constant 0 : index
    %4 = vector.load %arg2[%c1, %c0_5, %c0_6] : memref<2x64x1xf32, #tpu.memory_space<vmem>>, vector<1x64x1xf32>
    %5 = vector.shape_cast %4 : vector<1x64x1xf32> to vector<64x1xf32>
    %6 = arith.addf %1, %5 : vector<64x1xf32>
    %c1_7 = arith.constant 1 : index
    %c0_8 = arith.constant 0 : index
    %c0_9 = arith.constant 0 : index
    %7 = vector.load %arg3[%c1_7, %c0_8, %c0_9] : memref<2x64x1xf32, #tpu.memory_space<vmem>>, vector<1x64x1xf32>
    %8 = vector.shape_cast %7 : vector<1x64x1xf32> to vector<64x1xf32>
    %9 = arith.addf %3, %8 : vector<64x1xf32>
    %cst = arith.constant 0.001953125 : f32
    %10 = vector.broadcast %cst : f32 to vector<64x1xf32>
    %11 = arith.mulf %6, %10 : vector<64x1xf32>
    %cst_10 = arith.constant 0.001953125 : f32
    %12 = vector.broadcast %cst_10 : f32 to vector<64x1xf32>
    %13 = arith.mulf %9, %12 : vector<64x1xf32>
    %14 = arith.mulf %11, %11 : vector<64x1xf32>
    %15 = arith.subf %13, %14 : vector<64x1xf32>
    %cst_11 = arith.constant 0.000000e+00 : f32
    %16 = vector.broadcast %cst_11 : f32 to vector<64x1xf32>
    %17 = arith.maximumf %15, %16 : vector<64x1xf32>
    %cst_12 = arith.constant 9.99999974E-6 : f32
    %18 = vector.broadcast %cst_12 : f32 to vector<64x1xf32>
    %19 = arith.addf %17, %18 : vector<64x1xf32>
    %20 = math.rsqrt %19 : vector<64x1xf32>
    %c0_13 = arith.constant 0 : index
    %c0_14 = arith.constant 0 : index
    %21 = vector.load %arg4[%c0_13, %c0_14] : memref<64x1xf32, #tpu.memory_space<vmem>>, vector<64x1xf32>
    %22 = arith.mulf %20, %21 : vector<64x1xf32>
    %c0_15 = arith.constant 0 : index
    %c0_16 = arith.constant 0 : index
    %23 = vector.load %arg5[%c0_15, %c0_16] : memref<64x1xf32, #tpu.memory_space<vmem>>, vector<64x1xf32>
    %24 = arith.mulf %11, %22 : vector<64x1xf32>
    %25 = arith.subf %23, %24 : vector<64x1xf32>
    %c0_17 = arith.constant 0 : index
    %c0_18 = arith.constant 0 : index
    %c0_19 = arith.constant 0 : index
    %26 = vector.load %arg1[%c0_17, %c0_18, %c0_19] : memref<1x64x384xbf16, #tpu.memory_space<vmem>>, vector<1x64x384xbf16>
    %27 = vector.shape_cast %26 : vector<1x64x384xbf16> to vector<64x384xbf16>
    %28 = arith.extf %27 : vector<64x384xbf16> to vector<64x384xf32>
    %29 = vector.broadcast %22 : vector<64x1xf32> to vector<64x384xf32>
    %30 = arith.mulf %28, %29 : vector<64x384xf32>
    %31 = vector.broadcast %25 : vector<64x1xf32> to vector<64x384xf32>
    %32 = arith.addf %30, %31 : vector<64x384xf32>
    %c0_20 = arith.constant 0 : index
    %c0_21 = arith.constant 0 : index
    %33 = vector.load %arg6[%c0_20, %c0_21] : memref<1x384xf32, #tpu.memory_space<vmem>>, vector<1x384xf32>
    %34 = vector.broadcast %33 : vector<1x384xf32> to vector<64x384xf32>
    %35 = arith.mulf %32, %34 : vector<64x384xf32>
    %cst_22 = arith.constant 2.000000e+01 : f32
    %36 = vector.broadcast %cst_22 : f32 to vector<64x384xf32>
    %37 = arith.minimumf %35, %36 : vector<64x384xf32>
    %38 = math.exp %37 : vector<64x384xf32>
    %cst_23 = arith.constant 2.000000e+00 : f32
    %39 = vector.broadcast %cst_23 : f32 to vector<64x384xf32>
    %40 = arith.addf %38, %39 : vector<64x384xf32>
    %41 = arith.mulf %38, %40 : vector<64x384xf32>
    %cst_24 = arith.constant 2.000000e+01 : f32
    %42 = vector.broadcast %cst_24 : f32 to vector<64x384xf32>
    %43 = arith.cmpf ogt, %35, %42 : vector<64x384xf32>
    %44 = arith.mulf %35, %41 : vector<64x384xf32>
    %cst_25 = arith.constant 2.000000e+00 : f32
    %45 = vector.broadcast %cst_25 : f32 to vector<64x384xf32>
    %46 = arith.addf %41, %45 : vector<64x384xf32>
    %47 = tpu.reciprocal %46 {approx = true} : vector<64x384xf32> -> vector<64x384xf32>
    %48 = arith.mulf %44, %47 : vector<64x384xf32>
    %49 = arith.select %43, %35, %48 : vector<64x384xi1>, vector<64x384xf32>
    %50 = arith.truncf %49 : vector<64x384xf32> to vector<64x384xbf16>
    %c0_26 = arith.constant 0 : index
    %c0_27 = arith.constant 0 : index
    %c0_28 = arith.constant 0 : index
    %51 = vector.load %arg7[%c0_26, %c0_27, %c0_28] : memref<1x64x384xbf16, #tpu.memory_space<vmem>>, vector<1x64x384xbf16>
    %52 = vector.shape_cast %51 : vector<1x64x384xbf16> to vector<64x384xbf16>
    %53 = vector.shape_cast %50 : vector<64x384xbf16> to vector<1x64x384xbf16>
    tpu.vector_store %arg7[%c0_26, %c0_27, %c0_28], %53 {strides = array<i32>} : memref<1x64x384xbf16, #tpu.memory_space<vmem>>, vector<1x64x384xbf16>,
    return
  }
  func.func @transform_0(%arg0: i32) -> (i32, i32, i32) {
    %c0_i32 = arith.constant 0 : i32
    %c0_i32_0 = arith.constant 0 : i32
    %c0_i32_1 = arith.constant 0 : i32
    return %arg0, %c0_i32, %c0_i32_0 : i32, i32, i32
  }
  func.func @transform_1(%arg0: i32) -> (i32, i32, i32) {
    %c0_i32 = arith.constant 0 : i32
    %c0_i32_0 = arith.constant 0 : i32
    %c0_i32_1 = arith.constant 0 : i32
    %c0_i32_2 = arith.constant 0 : i32
    return %c0_i32, %c0_i32_0, %c0_i32_1 : i32, i32, i32
  }
  func.func @transform_2(%arg0: i32) -> (i32, i32, i32) {
    %c0_i32 = arith.constant 0 : i32
    %c0_i32_0 = arith.constant 0 : i32
    %c0_i32_1 = arith.constant 0 : i32
    %c0_i32_2 = arith.constant 0 : i32
    return %c0_i32, %c0_i32_0, %c0_i32_1 : i32, i32, i32
  }
  func.func @transform_3(%arg0: i32) -> (i32, i32) {
    %c0_i32 = arith.constant 0 : i32
    %c0_i32_0 = arith.constant 0 : i32
    %c0_i32_1 = arith.constant 0 : i32
    return %c0_i32, %c0_i32_0 : i32, i32
  }
  func.func @transform_4(%arg0: i32) -> (i32, i32) {
    %c0_i32 = arith.constant 0 : i32
    %c0_i32_0 = arith.constant 0 : i32
    %c0_i32_1 = arith.constant 0 : i32
    return %c0_i32, %c0_i32_0 : i32, i32
  }
  func.func @transform_5(%arg0: i32) -> (i32, i32) {
    %c0_i32 = arith.constant 0 : i32
    %c0_i32_0 = arith.constant 0 : i32
    %c0_i32_1 = arith.constant 0 : i32
    return %c0_i32, %c0_i32_0 : i32, i32
  }
  func.func @transform_6(%arg0: i32) -> (i32, i32, i32) {
    %c0_i32 = arith.constant 0 : i32
    %c0_i32_0 = arith.constant 0 : i32
    %c0_i32_1 = arith.constant 0 : i32
    return %arg0, %c0_i32, %c0_i32_0 : i32, i32, i32
  }
}

module attributes {stable_mosaic.version = 11 : i64} {
  func.func @_zeroconv_couple_kernel(%arg0: i32, %arg1: memref<1x64x384xbf16, #tpu.memory_space<vmem>>, %arg2: memref<9x4x64xbf16, #tpu.memory_space<vmem>>, %arg3: memref<4x1xf32, #tpu.memory_space<vmem>>, %arg4: memref<1x2x288xf32, #tpu.memory_space<vmem>>, %arg5: memref<1x2x288xf32, #tpu.memory_space<vmem>>) attributes {dimension_semantics = [#tpu.dimension_semantics<parallel>], iteration_bounds = array<i64: 2>, scalar_prefetch = 0 : i64, scratch_operands = 0 : i64, tpu.core_type = #tpu.core_type<tc>, window_params = [{transform_indices = @transform_0, window_bounds = array<i64: 1, 64, 384>}, {pipeline_mode = #tpu.pipeline_mode<synchronous>, transform_indices = @transform_1, window_bounds = array<i64: 9, 4, 64>}, {pipeline_mode = #tpu.pipeline_mode<synchronous>, transform_indices = @transform_2, window_bounds = array<i64: 4, 1>}, {transform_indices = @transform_3, window_bounds = array<i64: 1, 2, 288>}, {transform_indices = @transform_4, window_bounds = array<i64: 1, 2, 288>}]} {
    %c0 = arith.constant 0 : index
    %c0_0 = arith.constant 0 : index
    %c0_1 = arith.constant 0 : index
    %0 = vector.load %arg1[%c0, %c0_0, %c0_1] : memref<1x64x384xbf16, #tpu.memory_space<vmem>>, vector<1x64x384xbf16>
    %1 = vector.shape_cast %0 : vector<1x64x384xbf16> to vector<64x384xbf16>
    %c0_2 = arith.constant 0 : index
    %c0_3 = arith.constant 0 : index
    %c0_4 = arith.constant 0 : index
    %2 = vector.load %arg2[%c0_2, %c0_3, %c0_4] : memref<9x4x64xbf16, #tpu.memory_space<vmem>>, vector<1x4x64xbf16>
    %3 = vector.shape_cast %2 : vector<1x4x64xbf16> to vector<4x64xbf16>
    %4 = vector.extract_strided_slice %1 {offsets = [0, 0], sizes = [64, 288], strides = [1, 1]} : vector<64x384xbf16> to vector<64x288xbf16>
    %cst = arith.constant dense<0.000000e+00> : vector<4x288xf32>
    %5 = tpu.matmul %3, %4, %cst {dimension_numbers = #tpu.dot_dimension_numbers<[1], [0], [0], [1], [0, 0, 1, 1], [], []>} : vector<4x64xbf16>, vector<64x288xbf16>, vector<4x288xf32> -> vector<4x288xf32>
    %c1 = arith.constant 1 : index
    %c0_5 = arith.constant 0 : index
    %c0_6 = arith.constant 0 : index
    %6 = vector.load %arg2[%c1, %c0_5, %c0_6] : memref<9x4x64xbf16, #tpu.memory_space<vmem>>, vector<1x4x64xbf16>
    %7 = vector.shape_cast %6 : vector<1x4x64xbf16> to vector<4x64xbf16>
    %8 = vector.extract_strided_slice %1 {offsets = [0, 1], sizes = [64, 288], strides = [1, 1]} : vector<64x384xbf16> to vector<64x288xbf16>
    %cst_7 = arith.constant dense<0.000000e+00> : vector<4x288xf32>
    %9 = tpu.matmul %7, %8, %cst_7 {dimension_numbers = #tpu.dot_dimension_numbers<[1], [0], [0], [1], [0, 0, 1, 1], [], []>} : vector<4x64xbf16>, vector<64x288xbf16>, vector<4x288xf32> -> vector<4x288xf32>
    %10 = arith.addf %5, %9 : vector<4x288xf32>
    %c2 = arith.constant 2 : index
    %c0_8 = arith.constant 0 : index
    %c0_9 = arith.constant 0 : index
    %11 = vector.load %arg2[%c2, %c0_8, %c0_9] : memref<9x4x64xbf16, #tpu.memory_space<vmem>>, vector<1x4x64xbf16>
    %12 = vector.shape_cast %11 : vector<1x4x64xbf16> to vector<4x64xbf16>
    %13 = vector.extract_strided_slice %1 {offsets = [0, 2], sizes = [64, 288], strides = [1, 1]} : vector<64x384xbf16> to vector<64x288xbf16>
    %cst_10 = arith.constant dense<0.000000e+00> : vector<4x288xf32>
    %14 = tpu.matmul %12, %13, %cst_10 {dimension_numbers = #tpu.dot_dimension_numbers<[1], [0], [0], [1], [0, 0, 1, 1], [], []>} : vector<4x64xbf16>, vector<64x288xbf16>, vector<4x288xf32> -> vector<4x288xf32>
    %15 = arith.addf %10, %14 : vector<4x288xf32>
    %c3 = arith.constant 3 : index
    %c0_11 = arith.constant 0 : index
    %c0_12 = arith.constant 0 : index
    %16 = vector.load %arg2[%c3, %c0_11, %c0_12] : memref<9x4x64xbf16, #tpu.memory_space<vmem>>, vector<1x4x64xbf16>
    %17 = vector.shape_cast %16 : vector<1x4x64xbf16> to vector<4x64xbf16>
    %18 = vector.extract_strided_slice %1 {offsets = [0, 18], sizes = [64, 288], strides = [1, 1]} : vector<64x384xbf16> to vector<64x288xbf16>
    %cst_13 = arith.constant dense<0.000000e+00> : vector<4x288xf32>
    %19 = tpu.matmul %17, %18, %cst_13 {dimension_numbers = #tpu.dot_dimension_numbers<[1], [0], [0], [1], [0, 0, 1, 1], [], []>} : vector<4x64xbf16>, vector<64x288xbf16>, vector<4x288xf32> -> vector<4x288xf32>
    %20 = arith.addf %15, %19 : vector<4x288xf32>
    %c4 = arith.constant 4 : index
    %c0_14 = arith.constant 0 : index
    %c0_15 = arith.constant 0 : index
    %21 = vector.load %arg2[%c4, %c0_14, %c0_15] : memref<9x4x64xbf16, #tpu.memory_space<vmem>>, vector<1x4x64xbf16>
    %22 = vector.shape_cast %21 : vector<1x4x64xbf16> to vector<4x64xbf16>
    %23 = vector.extract_strided_slice %1 {offsets = [0, 19], sizes = [64, 288], strides = [1, 1]} : vector<64x384xbf16> to vector<64x288xbf16>
    %cst_16 = arith.constant dense<0.000000e+00> : vector<4x288xf32>
    %24 = tpu.matmul %22, %23, %cst_16 {dimension_numbers = #tpu.dot_dimension_numbers<[1], [0], [0], [1], [0, 0, 1, 1], [], []>} : vector<4x64xbf16>, vector<64x288xbf16>, vector<4x288xf32> -> vector<4x288xf32>
    %25 = arith.addf %20, %24 : vector<4x288xf32>
    %c5 = arith.constant 5 : index
    %c0_17 = arith.constant 0 : index
    %c0_18 = arith.constant 0 : index
    %26 = vector.load %arg2[%c5, %c0_17, %c0_18] : memref<9x4x64xbf16, #tpu.memory_space<vmem>>, vector<1x4x64xbf16>
    %27 = vector.shape_cast %26 : vector<1x4x64xbf16> to vector<4x64xbf16>
    %28 = vector.extract_strided_slice %1 {offsets = [0, 20], sizes = [64, 288], strides = [1, 1]} : vector<64x384xbf16> to vector<64x288xbf16>
    %cst_19 = arith.constant dense<0.000000e+00> : vector<4x288xf32>
    %29 = tpu.matmul %27, %28, %cst_19 {dimension_numbers = #tpu.dot_dimension_numbers<[1], [0], [0], [1], [0, 0, 1, 1], [], []>} : vector<4x64xbf16>, vector<64x288xbf16>, vector<4x288xf32> -> vector<4x288xf32>
    %30 = arith.addf %25, %29 : vector<4x288xf32>
    %c6 = arith.constant 6 : index
    %c0_20 = arith.constant 0 : index
    %c0_21 = arith.constant 0 : index
    %31 = vector.load %arg2[%c6, %c0_20, %c0_21] : memref<9x4x64xbf16, #tpu.memory_space<vmem>>, vector<1x4x64xbf16>
    %32 = vector.shape_cast %31 : vector<1x4x64xbf16> to vector<4x64xbf16>
    %33 = vector.extract_strided_slice %1 {offsets = [0, 36], sizes = [64, 288], strides = [1, 1]} : vector<64x384xbf16> to vector<64x288xbf16>
    %cst_22 = arith.constant dense<0.000000e+00> : vector<4x288xf32>
    %34 = tpu.matmul %32, %33, %cst_22 {dimension_numbers = #tpu.dot_dimension_numbers<[1], [0], [0], [1], [0, 0, 1, 1], [], []>} : vector<4x64xbf16>, vector<64x288xbf16>, vector<4x288xf32> -> vector<4x288xf32>
    %35 = arith.addf %30, %34 : vector<4x288xf32>
    %c7 = arith.constant 7 : index
    %c0_23 = arith.constant 0 : index
    %c0_24 = arith.constant 0 : index
    %36 = vector.load %arg2[%c7, %c0_23, %c0_24] : memref<9x4x64xbf16, #tpu.memory_space<vmem>>, vector<1x4x64xbf16>
    %37 = vector.shape_cast %36 : vector<1x4x64xbf16> to vector<4x64xbf16>
    %38 = vector.extract_strided_slice %1 {offsets = [0, 37], sizes = [64, 288], strides = [1, 1]} : vector<64x384xbf16> to vector<64x288xbf16>
    %cst_25 = arith.constant dense<0.000000e+00> : vector<4x288xf32>
    %39 = tpu.matmul %37, %38, %cst_25 {dimension_numbers = #tpu.dot_dimension_numbers<[1], [0], [0], [1], [0, 0, 1, 1], [], []>} : vector<4x64xbf16>, vector<64x288xbf16>, vector<4x288xf32> -> vector<4x288xf32>
    %40 = arith.addf %35, %39 : vector<4x288xf32>
    %c8 = arith.constant 8 : index
    %c0_26 = arith.constant 0 : index
    %c0_27 = arith.constant 0 : index
    %41 = vector.load %arg2[%c8, %c0_26, %c0_27] : memref<9x4x64xbf16, #tpu.memory_space<vmem>>, vector<1x4x64xbf16>
    %42 = vector.shape_cast %41 : vector<1x4x64xbf16> to vector<4x64xbf16>
    %43 = vector.extract_strided_slice %1 {offsets = [0, 38], sizes = [64, 288], strides = [1, 1]} : vector<64x384xbf16> to vector<64x288xbf16>
    %cst_28 = arith.constant dense<0.000000e+00> : vector<4x288xf32>
    %44 = tpu.matmul %42, %43, %cst_28 {dimension_numbers = #tpu.dot_dimension_numbers<[1], [0], [0], [1], [0, 0, 1, 1], [], []>} : vector<4x64xbf16>, vector<64x288xbf16>, vector<4x288xf32> -> vector<4x288xf32>
    %45 = arith.addf %40, %44 : vector<4x288xf32>
    %c0_29 = arith.constant 0 : index
    %c0_30 = arith.constant 0 : index
    %46 = vector.load %arg3[%c0_29, %c0_30] : memref<4x1xf32, #tpu.memory_space<vmem>>, vector<4x1xf32>
    %47 = vector.broadcast %46 : vector<4x1xf32> to vector<4x288xf32>
    %48 = arith.addf %45, %47 : vector<4x288xf32>
    %49 = vector.extract_strided_slice %48 {offsets = [0, 0], sizes = [2, 288], strides = [1, 1]} : vector<4x288xf32> to vector<2x288xf32>
    %50 = vector.extract_strided_slice %48 {offsets = [2, 0], sizes = [2, 288], strides = [1, 1]} : vector<4x288xf32> to vector<2x288xf32>
    %c0_31 = arith.constant 0 : index
    %c0_32 = arith.constant 0 : index
    %c0_33 = arith.constant 0 : index
    %51 = vector.load %arg4[%c0_31, %c0_32, %c0_33] : memref<1x2x288xf32, #tpu.memory_space<vmem>>, vector<1x2x288xf32>
    %52 = vector.shape_cast %51 : vector<1x2x288xf32> to vector<2x288xf32>
    %53 = math.tanh %49 : vector<2x288xf32>
    %54 = math.exp %53 : vector<2x288xf32>
    %55 = arith.mulf %52, %54 : vector<2x288xf32>
    %56 = arith.addf %55, %50 : vector<2x288xf32>
    %c0_34 = arith.constant 0 : index
    %c0_35 = arith.constant 0 : index
    %c0_36 = arith.constant 0 : index
    %57 = vector.load %arg5[%c0_34, %c0_35, %c0_36] : memref<1x2x288xf32, #tpu.memory_space<vmem>>, vector<1x2x288xf32>
    %58 = vector.shape_cast %57 : vector<1x2x288xf32> to vector<2x288xf32>
    %59 = vector.shape_cast %56 : vector<2x288xf32> to vector<1x2x288xf32>
    tpu.vector_store %arg5[%c0_34, %c0_35, %c0_36], %59 {strides = array<i32>} : memref<1x2x288xf32, #tpu.memory_space<vmem>>, vector<1x2x288xf32>,
    return
  }
  func.func @transform_0(%arg0: i32) -> (i32, i32, i32) {
    %c0_i32 = arith.constant 0 : i32
    %c0_i32_0 = arith.constant 0 : i32
    %c0_i32_1 = arith.constant 0 : i32
    return %arg0, %c0_i32, %c0_i32_0 : i32, i32, i32
  }
  func.func @transform_1(%arg0: i32) -> (i32, i32, i32) {
    %c0_i32 = arith.constant 0 : i32
    %c0_i32_0 = arith.constant 0 : i32
    %c0_i32_1 = arith.constant 0 : i32
    %c0_i32_2 = arith.constant 0 : i32
    return %c0_i32, %c0_i32_0, %c0_i32_1 : i32, i32, i32
  }
  func.func @transform_2(%arg0: i32) -> (i32, i32) {
    %c0_i32 = arith.constant 0 : i32
    %c0_i32_0 = arith.constant 0 : i32
    %c0_i32_1 = arith.constant 0 : i32
    return %c0_i32, %c0_i32_0 : i32, i32
  }
  func.func @transform_3(%arg0: i32) -> (i32, i32, i32) {
    %c0_i32 = arith.constant 0 : i32
    %c0_i32_0 = arith.constant 0 : i32
    %c0_i32_1 = arith.constant 0 : i32
    return %arg0, %c0_i32, %c0_i32_0 : i32, i32, i32
  }
  func.func @transform_4(%arg0: i32) -> (i32, i32, i32) {
    %c0_i32 = arith.constant 0 : i32
    %c0_i32_0 = arith.constant 0 : i32
    %c0_i32_1 = arith.constant 0 : i32
    return %arg0, %c0_i32, %c0_i32_0 : i32, i32, i32
  }
}

</mosaic_0001>

<bundles_post_ra>
// kernel: conditional_affine_coupling_2d.7
= control target key start
LH: loop header
LB: loop body
LE: loop exit
PB: predicated region body
PF: predicated region fallthrough
CT: control target
= control target key end

     0   :  { %s1215_s21 = smov 0   ;;  %s1884_s0 = inlined_call_operand.vmem [shape: bf16[2,64,384], index: 0, kind: input, shape index: {}]   ;;  %s1885_s1 = inlined_call_operand.vmem [shape: f32[2,64,1], index: 1, kind: input, shape index: {}]   ;;  %s1886_s2 = inlined_call_operand.vmem [shape: f32[2,64,1], index: 2, kind: input, shape index: {}]   ;;  %s1887_s3 = inlined_call_operand.vmem [shape: f32[64,1], index: 3, kind: input, shape index: {}]   ;;  %s1888_s4 = inlined_call_operand.vmem [shape: f32[64,1], index: 4, kind: input, shape index: {}]   ;;  %s1889_s5 = inlined_call_operand.vmem [shape: f32[1,384], index: 5, kind: input, shape index: {}]   ;;  %s1890_s6 = inlined_call_operand.vmem [shape: bf16[2,64,384], index: 6, kind: output, shape index: {}]  }
   0x1 LB: > { %s1021_s22 = sadd.s32 4294967295, %s1177_s21   ;;  %p1025_p0 = scmp.ge.s32.totalorder %s1177_s21, 1  ;;  %s1177_s21 = sphi %s1215_s21, %s16_s21  }
   0x2   : > { %p212_p1 = scmp.lt.s32.totalorder %s1177_s21, 3 }
   0x4   : > { %p213_p2 = pnand %p1025_p0, %p212_p1 }
   0x5   : > { %p242_p3 = scmp.lt.s32.totalorder (!%p213_p2), %s1021_s22, 1 }
   0x6   : > { %216 = sbr.rel (%p213_p2) target bundleno = 274 (0x112), region = 44 }
   0xb   : > { %v256_v0 = vld [vmem:[%s1885_s1 + $0x20] sm:$0xff]  ;;  %v1179_v3 = vmov 0   ;;  %v254_v6 = vld [vmem:[%s1885_s1 + $0x10] sm:$0xff]  ;;  %v257_v23 = vld [vmem:[%s1885_s1 + $0x28] sm:$0xff]  ;;  %s1902_s22 = smov (!%p242_p3, %s1021_s22), 1 }
   0xc   : > { %v264_v1 = vld [vmem:[%s1886_s2 + $0x20] sm:$0xff]  ;;  %1058 = vset.pattern.permute.xlu2 %v1179_v3  ;;  %1057 = vset.pattern.permute.xlu1 %v1179_v3  ;;  %v262_v8 = vld [vmem:[%s1886_s2 + $0x10] sm:$0xff]  ;;  %v265_v24 = vld [vmem:[%s1886_s2 + $0x28] sm:$0xff]  ;;  %s1046_s7 = smul.u32 96, %s1902_s22 }
   0xd   : > { %v1032_v2 = vld [vmem:[%s1885_s1 + $0x60] sm:$0xff]  ;;  %1056 = vset.pattern.permute.xlu0 %v1179_v3  ;;  %v1030_v9 = vld [vmem:[%s1885_s1 + $0x50] sm:$0xff]  ;;  %v1033_v25 = vld [vmem:[%s1885_s1 + $0x68] sm:$0xff] }
   0xe   : > { %v281_v4 = vadd.f32 %v1032_v2, %v256_v0  ;;  %v1040_v5 = vld [vmem:[%s1886_s2 + $0x60] sm:$0xff]  ;;  %v1038_v10 = vld [vmem:[%s1886_s2 + $0x50] sm:$0xff]  ;;  %v279_v12 = vadd.f32 %v1030_v9, %v254_v6  ;;  %v282_v27 = vadd.f32 %v1033_v25, %v257_v23  ;;  %v1041_v28 = vld [vmem:[%s1886_s2 + $0x68] sm:$0xff]  ;;  %s1541_s10 = scalar_lea.vmem %s1884_s0, %s1046_s7  ;;  %s1693_s15 = scalar_lea.vmem %s1890_s6, %s1046_s7 }
   0xf   : > { %v298_v7 = vadd.f32 %v1040_v5, %v264_v1  ;;  %v296_v13 = vadd.f32 %v1038_v10, %v262_v8  ;;  %v252_v14 = vld [vmem:[%s1885_s1] sm:$0xff]  ;;  %v255_v29 = vld [vmem:[%s1885_s1 + $0x18] sm:$0xff]  ;;  %v299_v33 = vadd.f32 %v1041_v28, %v265_v24  ;;  %v253_v41 = vld [vmem:[%s1885_s1 + $0x8] sm:$0xff] }
  0x10   : > { %v1247_v11 = vmul.f32 0.001953125, %v281_v4  ;;  %v260_v15 = vld [vmem:[%s1886_s2] sm:$0xff]  ;;  %v1263_v20 = vmul.f32 0.001953125, %v279_v12  ;;  %v263_v34 = vld [vmem:[%s1886_s2 + $0x18] sm:$0xff]  ;;  %v1293_v38 = vmul.f32 0.001953125, %v282_v27  ;;  %v261_v42 = vld [vmem:[%s1886_s2 + $0x8] sm:$0xff] }
  0x11   : > { %v314_v16 = vmul.f32 0.001953125, %v298_v7  ;;  %v1028_v17 = vld [vmem:[%s1885_s1 + $0x40] sm:$0xff]  ;;  %v312_v21 = vmul.f32 0.001953125, %v296_v13  ;;  %v1031_v35 = vld [vmem:[%s1885_s1 + $0x58] sm:$0xff]  ;;  %v1029_v43 = vld [vmem:[%s1885_s1 + $0x48] sm:$0xff]  ;;  %v315_v47 = vmul.f32 0.001953125, %v299_v33 }
  0x12   : > { %v1036_v18 = vld [vmem:[%s1886_s2 + $0x40] sm:$0xff]  ;;  %v322_v19 = vmul.f32 %v1247_v11, %v1247_v11  ;;  %v277_v22 = vadd.f32 %v1028_v17, %v252_v14  ;;  %v320_v31 = vmul.f32 %v1263_v20, %v1263_v20  ;;  %v1039_v36 = vld [vmem:[%s1886_s2 + $0x58] sm:$0xff]  ;;  %v280_v39 = vadd.f32 %v1031_v35, %v255_v29  ;;  %v1037_v48 = vld [vmem:[%s1886_s2 + $0x48] sm:$0xff] }
  0x13   : > { %v294_v26 = vadd.f32 %v1036_v18, %v260_v15  ;;  %v297_v40 = vadd.f32 %v1039_v36, %v263_v34  ;;  %v259_v49 = vld [vmem:[%s1885_s1 + $0x38] sm:$0xff]  ;;  %v323_v50 = vmul.f32 %v1293_v38, %v1293_v38  ;;  %v278_v53 = vadd.f32 %v1029_v43, %v253_v41  ;;  %v258_v7 = vld [vmem:[%s1885_s1 + $0x30] sm:$0xff] }
  0x14   : > { %v330_v30 = vsub.f32 %v314_v16, %v322_v19  ;;  %v1282_v32 = vmul.f32 0.001953125, %v277_v22  ;;  %v328_v45 = vsub.f32 %v312_v21, %v320_v31  ;;  %v1314_v51 = vmul.f32 0.001953125, %v280_v39  ;;  %v1035_v54 = vld [vmem:[%s1885_s1 + $0x78] sm:$0xff]  ;;  %v1034_v8 = vld [vmem:[%s1885_s1 + $0x70] sm:$0xff] }
  0x15   : > { %v310_v37 = vmul.f32 0.001953125, %v294_v26  ;;  %v313_v52 = vmul.f32 0.001953125, %v297_v40  ;;  %v295_v58 = vadd.f32 %v1037_v48, %v261_v42  ;;  %v331_v59 = vsub.f32 %v315_v47, %v323_v50  ;;  %v267_v62 = vld [vmem:[%s1886_s2 + $0x38] sm:$0xff]  ;;  %v266_v16 = vld [vmem:[%s1886_s2 + $0x30] sm:$0xff] }
  0x16   : > { %v338_v44 = vmax.f32 %v330_v30, 0.0  ;;  %v318_v46 = vmul.f32 %v1282_v32, %v1282_v32  ;;  %v336_v56 = vmax.f32 %v328_v45, 0.0  ;;  %v321_v60 = vmul.f32 %v1314_v51, %v1314_v51  ;;  %v1043_v0 = vld [vmem:[%s1886_s2 + $0x78] sm:$0xff]  ;;  %v1042_v17 = vld [vmem:[%s1886_s2 + $0x70] sm:$0xff] }
  0x17   : > { %v1323_v61 = vmul.f32 0.001953125, %v278_v53  ;;  %v284_v63 = vadd.f32 %v1035_v54, %v259_v49  ;;  %v339_v3 = vmax.f32 %v331_v59, 0.0  ;;  %v311_v5 = vmul.f32 0.001953125, %v295_v58 }
  0x18   : > { %v1319_v55 = vadd.f32 1e-05, %v338_v44  ;;  %v326_v57 = vsub.f32 %v310_v37, %v318_v46  ;;  %v1332_v1 = vadd.f32 1e-05, %v336_v56  ;;  %v329_v4 = vsub.f32 %v313_v52, %v321_v60  ;;  %v446_v52 = vld [vmem:[%s1888_s4] sm:$0xff] }
  0x19   : > { %v319_v6 = vmul.f32 %v1323_v61, %v1323_v61  ;;  %v301_v10 = vadd.f32 %v1043_v0, %v267_v62  ;;  %v1345_v12 = vadd.f32 1e-05, %v339_v3  ;;  %v1347_v15 = vmul.f32 0.001953125, %v284_v63 }
  0x1a   : > { %1059 = vrsqrt.f32 %v1319_v55  ;;  %v334_v2 = vmax.f32 %v326_v57, 0.0  ;;  %v337_v13 = vmax.f32 %v329_v4, 0.0  ;;  %v283_v19 = vadd.f32 %v1034_v8, %v258_v7  ;;  %v434_v57 = vld [vmem:[%s1887_s3 + $0x20] sm:$0xff] }
  0x1b   : > { %1061 = vrsqrt.f32 %v1332_v1  ;;  %v327_v14 = vsub.f32 %v311_v5, %v319_v6  ;;  %v317_v18 = vmul.f32 0.001953125, %v301_v10  ;;  %v325_v24 = vmul.f32 %v1347_v15, %v1347_v15 }
  0x1c   : > { %v1343_v9 = vadd.f32 1e-05, %v334_v2  ;;  %v1357_v21 = vadd.f32 1e-05, %v337_v13  ;;  %v300_v25 = vadd.f32 %v1042_v17, %v266_v16  ;;  %v1361_v26 = vmul.f32 0.001953125, %v283_v19  ;;  %v430_v16 = vld [vmem:[%s1887_s3] sm:$0xff] }
  0x1d   : > { %v335_v22 = vmax.f32 %v327_v14, 0.0  ;;  %v333_v30 = vsub.f32 %v317_v18, %v325_v24  ;;  %vm396_vm0 = vweird.f32 %v1319_v55  ;;  %vm376_vm1 = vweird.f32 %v1332_v1  ;;  %v435_v24 = vld [vmem:[%s1887_s3 + $0x28] sm:$0xff] }
  0x1e   : > { %1063 = vrsqrt.f32 %v1343_v9  ;;  %v316_v31 = vmul.f32 0.001953125, %v300_v25  ;;  %v324_v33 = vmul.f32 %v1361_v26, %v1361_v26  ;;  %vm356_vm2 = vweird.f32 %v1343_v9 }
  0x1f   : > { %1065 = vrsqrt.f32 %v1345_v12  ;;  %v1367_v29 = vadd.f32 1e-05, %v335_v22  ;;  %v341_v37 = vmax.f32 %v333_v30, 0.0  ;;  %vm406_vm4 = vweird.f32 %v1345_v12 }
  0x20   : > { %v1060_v23 = vpop.eup %1059  ;;  %1067 = vrsqrt.f32 %v1357_v21  ;;  %v332_v39 = vsub.f32 %v316_v31, %v324_v33  ;;  %vm386_vm7 = vweird.f32 %v1357_v21 }
  0x21   : > { %v391_v27 = vmul.f32 %v1060_v23, %v1319_v55  ;;  %v1365_v28 = vpop.eup %1061  ;;  %1069 = vrsqrt.f32 %v1367_v29  ;;  %vm397_vm3 = vweird.f32 %v1060_v23  ;;  %v1387_v45 = vadd.f32 1e-05, %v341_v37 }
  0x22   : > { %v371_v35 = vmul.f32 %v1365_v28, %v1332_v1  ;;  %v340_v46 = vmax.f32 %v332_v39, 0.0  ;;  %vm377_vm5 = vweird.f32 %v1365_v28  ;;  %vm1395_vm6 = vmor %vm396_vm0, %vm397_vm3  ;;  %v432_v1 = vld [vmem:[%s1887_s3 + $0x10] sm:$0xff]  ;;  %vm366_vm14 = vweird.f32 %v1367_v29 }
  0x23   : > { %v392_v34 = vmul.f32 %v1060_v23, %v391_v27  ;;  %1071 = vrsqrt.f32 %v1387_v45  ;;  %vm1410_vm9 = vmor %vm376_vm1, %vm377_vm5 }
  0x24   : > { %v1375_v36 = vpop.eup %1063  ;;  %v372_v42 = vmul.f32 %v1365_v28, %v371_v35  ;;  %v1416_v0 = vadd.f32 1e-05, %v340_v46 }
  0x25   : > { %v1379_v40 = vpop.eup %1065  ;;  %v393_v41 = vmul.f32 0.5, %v392_v34  ;;  %v351_v43 = vmul.f32 %v1375_v36, %v1343_v9  ;;  %vm357_vm8 = vweird.f32 %v1375_v36  ;;  %v453_v9 = vld [vmem:[%s1888_s4 + $0x38] sm:$0xff] }
  0x26   : > { %v401_v44 = vmul.f32 %v1379_v40, %v1345_v12  ;;  %v1389_v47 = vpop.eup %1067  ;;  %v373_v49 = vmul.f32 0.5, %v372_v42  ;;  %vm407_vm10 = vweird.f32 %v1379_v40  ;;  %vm1429_vm11 = vmor %vm356_vm2, %vm357_vm8  ;;  %1073 = vrsqrt.f32 %v1416_v0 }
  0x27   : > { %v394_v48 = vsub.f32 1.5, %v393_v41  ;;  %v352_v50 = vmul.f32 %v1375_v36, %v351_v43  ;;  %v381_v54 = vmul.f32 %v1389_v47, %v1357_v21  ;;  %v1070_v59 = vpop.eup %1069  ;;  %vm387_vm12 = vweird.f32 %v1389_v47  ;;  %vm1445_vm13 = vmor %vm406_vm4, %vm407_vm10  ;;  %v433_v21 = vld [vmem:[%s1887_s3 + $0x18] sm:$0xff] }
  0x28   : > { %v402_v53 = vmul.f32 %v1379_v40, %v401_v44  ;;  %v374_v58 = vsub.f32 1.5, %v373_v49  ;;  %v361_v5 = vmul.f32 %v1070_v59, %v1367_v29  ;;  %vm1463_vm15 = vmor %vm386_vm7, %vm387_vm12  ;;  %vm367_vm0 = vweird.f32 %v1070_v59 }
  0x29   : > { %v395_v56 = vmul.f32 %v1060_v23, %v394_v48  ;;  %v353_v55 = vmul.f32 0.5, %v352_v50  ;;  %v382_v63 = vmul.f32 %v1389_v47, %v381_v54  ;;  %v1072_v18 = vpop.eup %1071  ;;  %vm368_vm1 = vmor %vm366_vm14, %vm367_vm0  ;;  %vm426_vm2 = vweird.f32 %v1387_v45  ;;  %v437_v54 = vld [vmem:[%s1887_s3 + $0x38] sm:$0xff] }
  0x2a   : > { %v403_v62 = vmul.f32 0.5, %v402_v53  ;;  %v375_v3 = vmul.f32 %v1365_v28, %v374_v58  ;;  %v362_v17 = vmul.f32 %v1070_v59, %v361_v5  ;;  %vm427_vm3 = vweird.f32 %v1072_v18 }
  0x2b   : > { %v399_v2 = vsel %vm1395_vm6, %v1060_v23, %v395_v56  ;;  %v354_v4 = vsub.f32 1.5, %v353_v55  ;;  %v383_v10 = vmul.f32 0.5, %v382_v63  ;;  %vm428_vm4 = vmor %vm426_vm2, %vm427_vm3  ;;  %vm416_vm5 = vweird.f32 %v1416_v0  ;;  %v436_v55 = vld [vmem:[%s1887_s3 + $0x30] sm:$0xff]  ;;  %v449_v63 = vld [vmem:[%s1888_s4 + $0x18] sm:$0xff] }
  0x2c   : > { %v1425_v6 = vmul.f32 %v434_v57, %v399_v2  ;;  %v404_v8 = vsub.f32 1.5, %v403_v62  ;;  %v379_v13 = vsel %vm1410_vm9, %v1365_v28, %v375_v3  ;;  %v363_v27 = vmul.f32 0.5, %v362_v17  ;;  %v1074_v39 = vpop.eup %1073  ;;  %v448_v2 = vld [vmem:[%s1888_s4 + $0x10] sm:$0xff] }
  0x2d   : > { %v355_v14 = vmul.f32 %v1375_v36, %v354_v4  ;;  %v440_v19 = vmul.f32 %v432_v1, %v379_v13  ;;  %v384_v23 = vsub.f32 1.5, %v383_v10  ;;  %v421_v28 = vmul.f32 %v1072_v18, %v1387_v45 }
  0x2e   : > { %532 = vperm.xlu2 %1058, %v1425_v6   ;;  %v405_v22 = vmul.f32 %v1379_v40, %v404_v8  ;;  %v364_v34 = vsub.f32 1.5, %v363_v27  ;;  %v411_v44 = vmul.f32 %v1074_v39, %v1416_v0  ;;  %vm417_vm6 = vweird.f32 %v1074_v39 }
  0x2f   : > { %v359_v12 = vsel %vm1429_vm11, %v1375_v36, %v355_v14  ;;  %522 = vperm.xlu1 %1057, %v440_v19   ;;  %v385_v33 = vmul.f32 %v1389_v47, %v384_v23  ;;  %v422_v35 = vmul.f32 %v1072_v18, %v421_v28  ;;  %vm418_vm7 = vmor %vm416_vm5, %vm417_vm6  ;;  %v456_v0 = vmul.f32 %v440_v19, %v1263_v20  ;;  %v452_v20 = vld [vmem:[%s1888_s4 + $0x30] sm:$0xff]  ;;  %v638_v19 = vld [vmem:[%s1889_s5] sm:$0x7] }
  0x30   : > { %v438_v30 = vmul.f32 %v430_v16, %v359_v12  ;;  %v409_v31 = vsel %vm1445_vm13, %v1379_v40, %v405_v22  ;;  %v365_v41 = vmul.f32 %v1070_v59, %v364_v34  ;;  %v431_v40 = vld [vmem:[%s1887_s3 + $0x8] sm:$0xff]  ;;  %v412_v49 = vmul.f32 %v1074_v39, %v411_v44 }
  0x31   : > { %v443_v36 = vmul.f32 %v435_v24, %v409_v31  ;;  %v389_v37 = vsel %vm1463_vm15, %v1389_v47, %v385_v33  ;;  %v423_v42 = vmul.f32 0.5, %v422_v35  ;;  %v464_v4 = vsub.f32 %v448_v2, %v456_v0  ;;  %v478_v31 = vld [vmem:[%s1541_s10 + $0x30] sm:$0xff] }
  0x32   : > { %512 = vperm.xlu0 %1056, %v438_v30   ;;  %v441_v43 = vmul.f32 %v433_v21, %v389_v37  ;;  %v369_v46 = vsel %vm368_vm1, %v1070_v59, %v365_v41  ;;  %v454_v47 = vmul.f32 %v438_v30, %v1282_v32  ;;  %v413_v53 = vmul.f32 0.5, %v412_v49  ;;  %v477_v37 = vld [vmem:[%s1541_s10 + $0x2c] sm:$0xf]  ;;  %v480_v41 = vld [vmem:[%s1541_s10 + $0x3c] sm:$0xff] }
  0x33   : > { %v424_v48 = vsub.f32 1.5, %v423_v42  ;;  %v439_v29 = vmul.f32 %v431_v40, %v369_v46  ;;  %v459_v8 = vmul.f32 %v443_v36, %v1293_v38  ;;  %v458_v10 = vmul.f32 %v1425_v6, %v1247_v11  ;;  %v481_v46 = vld [vmem:[%s1541_s10 + $0x44] sm:$0xf] }
  0x34   : > { %v414_v32 = vsub.f32 1.5, %v413_v53  ;;  %v462_v56 = vsub.f32 %v446_v52, %v454_v47  ;;  %v457_v60 = vmul.f32 %v441_v43, %v1314_v51  ;;  %v447_v51 = vld [vmem:[%s1888_s4 + $0x8] sm:$0xff]  ;;  %v1550_v27 = vperm.slane %v638_v19, 0 }
  0x35   : > { %v425_v50 = vmul.f32 %v1072_v18, %v424_v48  ;;  %v455_v3 = vmul.f32 %v439_v29, %v1323_v61  ;;  %v451_v61 = vld [vmem:[%s1888_s4 + $0x28] sm:$0xff]  ;;  %v1552_v28 = vperm.slane %v638_v19, 1  ;;  %v1555_v33 = vperm.slane %v638_v19, 2  ;;  %v1606_v19 = vld [vmem:[%s1541_s10 + $0x14] sm:$0xf] }
  0x36   : > { %537 = vperm.xlu2 %1058, %v443_v36   ;;  %v415_v58 = vmul.f32 %v1074_v39, %v414_v32  ;;  %v465_v1 = vsub.f32 %v449_v63, %v457_v60  ;;  %v467_v14 = vsub.f32 %v451_v61, %v459_v8  ;;  %v476_v36 = vld [vmem:[%s1541_s10 + $0x24] sm:$0xff]  ;;  %v498_v44 = vunpack.c.l.bf16 %v478_v31 }
  0x37   : > { %527 = vperm.xlu1 %1057, %v441_v43   ;;  %v429_v45 = vsel %vm428_vm4, %v1072_v18, %v425_v50  ;;  %v463_v5 = vsub.f32 %v447_v51, %v455_v3  ;;  %v471_v18 = vld [vmem:[%s1541_s10 + $0x8] sm:$0xf]  ;;  %v495_v48 = vunpack.c.l.bf16 %v476_v36  ;;  %v496_v47 = vunpack.c.h.bf16 %v476_v36 }
  0x38   : > { %v445_v57 = vmul.f32 %v437_v54, %v429_v45  ;;  %v419_v59 = vsel %vm418_vm7, %v1074_v39, %v415_v58  ;;  %v488_v12 = vunpack.c.l.bf16 %v471_v18  ;;  %v479_v39 = vld [vmem:[%s1541_s10 + $0x38] sm:$0xf]  ;;  %v497_v53 = vunpack.c.l.bf16 %v477_v37 }
  0x39   : > { %v444_v62 = vmul.f32 %v436_v55, %v419_v59  ;;  %v499_v45 = vunpack.c.h.bf16 %v478_v31  ;;  %v500_v54 = vunpack.c.l.bf16 %v479_v39  ;;  %v501_v32 = vunpack.c.l.bf16 %v480_v41  ;;  %v1575_v55 = vld [vmem:[%s1541_s10 + $0x20] sm:$0xf] }
  0x3a   : > { %517 = vperm.xlu0 %1056, %v439_v29   ;;  %v461_v38 = vmul.f32 %v445_v57, %v1347_v15  ;;  %v470_v15 = vld [vmem:[%s1541_s10] sm:$0xff]  ;;  %v1563_v29 = vld [vmem:[%s1541_s10 + $0x18] sm:$0xff]  ;;  %v503_v58 = vunpack.c.l.bf16 %v481_v46  ;;  %v491_v39 = vunpack.c.l.bf16 %v1606_v19 }
  0x3b   : > { %v460_v7 = vmul.f32 %v444_v62, %v1361_v26  ;;  %v450_v26 = vld [vmem:[%s1888_s4 + $0x20] sm:$0xff]  ;;  %v486_v22 = vunpack.c.l.bf16 %v470_v15  ;;  %v487_v23 = vunpack.c.h.bf16 %v470_v15  ;;  %v492_v63 = vunpack.c.l.bf16 %v1563_v29 }
  0x3c   : > { %v466_v16 = vsub.f32 %v450_v26, %v458_v10  ;;  %v469_v17 = vsub.f32 %v453_v9, %v461_v38  ;;  %v493_v0 = vunpack.c.h.bf16 %v1563_v29  ;;  %v494_v10 = vunpack.c.l.bf16 %v1575_v55 }
  0x3d   : > { %v468_v13 = vsub.f32 %v452_v20, %v460_v7 }
  0x3e   : > { %576 = vperm.xlu2 %1058, %v462_v56   ;;  %v502_v56 = vunpack.c.h.bf16 %v480_v41 }
  0x3f   : > { %547 = vperm.xlu1 %1057, %v445_v57  }
  0x42   : > { %542 = vperm.xlu0 %1056, %v444_v62  }
  0x46   : > { %591 = vperm.xlu2 %1058, %v465_v1  }
  0x47   : > { %586 = vperm.xlu1 %1057, %v464_v4   ;;  %v482_v4 = vld [vmem:[%s1541_s10 + $0x48] sm:$0xff] }
  0x4a   : > { %581 = vperm.xlu0 %1056, %v463_v5  }
  0x4e   : > { %606 = vperm.xlu2 %1058, %v468_v13  }
  0x4f   : > { %601 = vperm.xlu1 %1057, %v467_v14   ;;  %v483_v14 = vld [vmem:[%s1541_s10 + $0x50] sm:$0xf] }
  0x52   : > { %596 = vperm.xlu0 %1056, %v466_v16  }
  0x5a   : > { %611 = vperm.xlu0 %1056, %v469_v17   ;;  %v1597_v17 = vld [vmem:[%s1541_s10 + $0xc] sm:$0xff] }
  0x88   : > { %v1525_v11 = vpop.permute.xlu2 %532 }
  0x89   : > { %v1586_v61 = vmul.f32 %v1525_v11, %v498_v44  ;;  %v1591_v16 = vmul.f32 %v1525_v11, %v499_v45  ;;  %v1594_v38 = vmul.f32 %v1525_v11, %v500_v54  ;;  %v1612_v11 = vld [vmem:[%s1541_s10 + $0x54] sm:$0xff] }
  0x8a   : > { %v507_v46 = vunpack.c.l.bf16 %v1612_v11 }
  0x90   : > { %v1534_v6 = vpop.permute.xlu2 %537 }
  0x91   : > { %v1622_v36 = vmul.f32 %v1534_v6, %v502_v56 }
  0x98   : > { %v577_v24 = vpop.permute.xlu2 %576 }
  0xa0   : > { %v592_v2 = vpop.permute.xlu2 %591 }
  0xa1   : > { %v1548_v25 = vpop.permute.xlu1 %522 }
  0xa4   : > { %v513_v30 = vpop.permute.xlu0 %512 }
  0xa5   : > { %v550_v21 = vmul.f32 %v513_v30, %v486_v22  ;;  %v551_v34 = vmul.f32 %v513_v30, %v487_v23  ;;  %v552_v35 = vmul.f32 %v513_v30, %v488_v12  ;;  %v504_v22 = vunpack.c.l.bf16 %v482_v4 }
  0xa6   : > { %v505_v12 = vunpack.c.h.bf16 %v482_v4 }
  0xa7   : > { %v614_v40 = vadd.f32 %v577_v24, %v550_v21  ;;  %v615_v42 = vadd.f32 %v577_v24, %v551_v34  ;;  %v616_v43 = vadd.f32 %v577_v24, %v552_v35  ;;  %v506_v24 = vunpack.c.l.bf16 %v483_v14 }
  0xa8   : > { %v489_v21 = vunpack.c.l.bf16 %v1597_v17  ;;  %v490_v34 = vunpack.c.h.bf16 %v1597_v17  ;;  %v1619_v35 = vmul.f32 %v1534_v6, %v501_v32  ;;  %v607_v55 = vpop.permute.xlu2 %606 }
  0xa9   : > { %v1566_v49 = vmul.f32 %v1550_v27, %v614_v40  ;;  %v1569_v50 = vmul.f32 %v1552_v28, %v615_v42  ;;  %v1572_v52 = vmul.f32 %v1555_v33, %v616_v43  ;;  %v528_v57 = vpop.permute.xlu1 %527  ;;  %v1629_v40 = vld [vmem:[%s1541_s10 + $0x5c] sm:$0xf]  ;;  %v1632_v42 = vmul.f32 %v1534_v6, %v503_v58 }
  0xaa   : > { %v559_v3 = vmul.f32 %v528_v57, %v495_v48  ;;  %v560_v1 = vmul.f32 %v528_v57, %v496_v47  ;;  %v561_v8 = vmul.f32 %v528_v57, %v497_v53 }
  0xab   : > { %v670_v59 = vmin.f32 %v1566_v49, 20.0  ;;  %v671_v60 = vmin.f32 %v1569_v50, 20.0  ;;  %v672_v62 = vmin.f32 %v1572_v52, 20.0  ;;  %vm790_vm8 = vcmp.gt.f32.partialorder %v1566_v49, 20.0 }
  0xac   : > { %v1582_v51 = vpop.permute.xlu0 %517  ;;  %v623_v13 = vadd.f32 %v592_v2, %v559_v3  ;;  %v624_v26 = vadd.f32 %v592_v2, %v560_v1  ;;  %v625_v9 = vadd.f32 %v592_v2, %v561_v8  ;;  %vm791_vm9 = vcmp.gt.f32.partialorder %v1569_v50, 20.0 }
  0xad   : > { %v694_v5 = vmul.f32 1.442695, %v670_v59  ;;  %v696_v7 = vmul.f32 1.442695, %v671_v60  ;;  %v698_v20 = vmul.f32 1.442695, %v672_v62  ;;  %v508_v59 = vunpack.c.h.bf16 %v1612_v11 }
  0xae   : > { %v1600_v15 = vmul.f32 %v1550_v27, %v623_v13  ;;  %v1603_v18 = vmul.f32 %v1552_v28, %v624_v26  ;;  %v1609_v23 = vmul.f32 %v1555_v33, %v625_v9  ;;  %v509_v60 = vunpack.c.l.bf16 %v1629_v40 }
  0xaf   : > { %1075 = vpow2.f32 %v694_v5  ;;  %v556_v5 = vmul.f32 %v1548_v25, %v492_v63  ;;  %v557_v13 = vmul.f32 %v1548_v25, %v493_v0  ;;  %vm792_vm10 = vcmp.gt.f32.partialorder %v1572_v52, 20.0 }
  0xb0   : > { %1077 = vpow2.f32 %v696_v7  ;;  %v679_v30 = vmin.f32 %v1600_v15, 20.0  ;;  %v680_v31 = vmin.f32 %v1603_v18, 20.0  ;;  %v681_v37 = vmin.f32 %v1609_v23, 20.0 }
  0xb1   : > { %1079 = vpow2.f32 %v698_v20  ;;  %v1626_v41 = vpop.permute.xlu1 %547  ;;  %vm799_vm11 = vcmp.gt.f32.partialorder %v1600_v15, 20.0  ;;  %vm800_vm12 = vcmp.gt.f32.partialorder %v1603_v18, 20.0  ;;  %vm801_vm13 = vcmp.gt.f32.partialorder %v1609_v23, 20.0 }
  0xb2   : > { %v712_v43 = vmul.f32 1.442695, %v679_v30  ;;  %v714_v44 = vmul.f32 1.442695, %v680_v31  ;;  %v716_v53 = vmul.f32 1.442695, %v681_v37 }
  0xb4   : > { %v543_v48 = vpop.permute.xlu0 %542  ;;  %1081 = vpow2.f32 %v712_v43 }
  0xb5   : > { %v1076_v47 = vpop.eup %1075  ;;  %v568_v45 = vmul.f32 %v543_v48, %v504_v22  ;;  %v569_v54 = vmul.f32 %v543_v48, %v505_v12  ;;  %v570_v32 = vmul.f32 %v543_v48, %v506_v24  ;;  %1083 = vpow2.f32 %v714_v44 }
  0xb6   : > { %v1078_v56 = vpop.eup %1077  ;;  %v742_v57 = vadd.f32 2.0, %v1076_v47  ;;  %1085 = vpow2.f32 %v716_v53  ;;  %v558_v22 = vmul.f32 %v1548_v25, %v494_v10 }
  0xb7   : > { %v1080_v6 = vpop.eup %1079  ;;  %v743_v58 = vadd.f32 2.0, %v1078_v56  ;;  %v632_v62 = vadd.f32 %v607_v55, %v568_v45  ;;  %v633_v2 = vadd.f32 %v607_v55, %v569_v54  ;;  %v634_v4 = vadd.f32 %v607_v55, %v570_v32 }
  0xb8   : > { %v744_v3 = vadd.f32 2.0, %v1080_v6  ;;  %v766_v1 = vmul.f32 %v1076_v47, %v742_v57  ;;  %v1660_v47 = vmul.f32 %v1582_v51, %v489_v21  ;;  %v1665_v32 = vmul.f32 %v1582_v51, %v490_v34 }
  0xb9   : > { %v767_v7 = vmul.f32 %v1078_v56, %v743_v58  ;;  %v1641_v20 = vmul.f32 %v1550_v27, %v632_v62  ;;  %v1644_v8 = vmul.f32 %v1552_v28, %v633_v2  ;;  %v1650_v9 = vmul.f32 %v1555_v33, %v634_v4  ;;  %v587_v25 = vpop.permute.xlu1 %586 }
  0xba   : > { %v768_v26 = vmul.f32 %v1080_v6, %v744_v3  ;;  %v838_v14 = vadd.f32 2.0, %v766_v1  ;;  %v1082_v30 = vpop.eup %1081  ;;  %v1670_v57 = vmul.f32 %v1582_v51, %v491_v39  ;;  %v620_v55 = vadd.f32 %v587_v25, %v556_v5 }
  0xbb   : > { %v839_v12 = vadd.f32 2.0, %v767_v7  ;;  %v688_v63 = vmin.f32 %v1641_v20, 20.0  ;;  %v689_v24 = vmin.f32 %v1644_v8, 20.0  ;;  %v690_v29 = vmin.f32 %v1650_v9, 20.0  ;;  %v1084_v0 = vpop.eup %1083 }
  0xbc   : > { %v840_v31 = vadd.f32 2.0, %v768_v26  ;;  %1087 = vrcp.f32 %v838_v14  ;;  %v751_v37 = vadd.f32 2.0, %v1082_v30  ;;  %v1086_v10 = vpop.eup %1085  ;;  %v752_v48 = vadd.f32 2.0, %v1084_v0 }
  0xbd   : > { %1089 = vrcp.f32 %v839_v12  ;;  %v730_v43 = vmul.f32 1.442695, %v688_v63  ;;  %v732_v44 = vmul.f32 1.442695, %v689_v24  ;;  %v734_v53 = vmul.f32 1.442695, %v690_v29 }
  0xbe   : > { %1091 = vrcp.f32 %v840_v31  ;;  %v753_v45 = vadd.f32 2.0, %v1086_v10  ;;  %v775_v54 = vmul.f32 %v1082_v30, %v751_v37  ;;  %v776_v56 = vmul.f32 %v1084_v0, %v752_v48 }
  0xbf   : > { %1093 = vpow2.f32 %v730_v43  ;;  %v814_v21 = vmul.f32 %v766_v1, %v1566_v49  ;;  %v815_v17 = vmul.f32 %v767_v7, %v1569_v50  ;;  %v621_v34 = vadd.f32 %v587_v25, %v557_v13 }
  0xc0   : > { %1095 = vpow2.f32 %v732_v44  ;;  %v777_v6 = vmul.f32 %v1086_v10, %v753_v45  ;;  %v847_v58 = vadd.f32 2.0, %v775_v54  ;;  %v848_v2 = vadd.f32 2.0, %v776_v56 }
  0xc1   : > { %1097 = vpow2.f32 %v734_v53  ;;  %v622_v3 = vadd.f32 %v587_v25, %v558_v22  ;;  %v816_v14 = vmul.f32 %v768_v26, %v1572_v52  ;;  %v1677_v5 = vmul.f32 %v1550_v27, %v620_v55 }
  0xc2   : > { %v1088_v62 = vpop.eup %1087  ;;  %v849_v51 = vadd.f32 2.0, %v777_v6  ;;  %1099 = vrcp.f32 %v847_v58  ;;  %v1680_v7 = vmul.f32 %v1552_v28, %v621_v34  ;;  %v823_v30 = vmul.f32 %v775_v54, %v1600_v15 }
  0xc3   : > { %v1090_v4 = vpop.eup %1089  ;;  %v886_v19 = vmul.f32 %v1088_v62, %v814_v21  ;;  %1101 = vrcp.f32 %v848_v2  ;;  %v1686_v12 = vmul.f32 %v1555_v33, %v622_v3  ;;  %v824_v45 = vmul.f32 %v776_v56, %v1603_v18 }
  0xc4   : > { %v1092_v39 = vpop.eup %1091  ;;  %v887_v1 = vmul.f32 %v1090_v4, %v815_v17  ;;  %1103 = vrcp.f32 %v849_v51  ;;  %v677_v44 = vmin.f32 %v1680_v7, 20.0  ;;  %v582_v4 = vpop.permute.xlu0 %581  ;;  %vm808_vm14 = vcmp.gt.f32.partialorder %v1641_v20, 20.0 }
  0xc5   : > { %v1094_v13 = vpop.eup %1093  ;;  %v888_v22 = vmul.f32 %v1092_v39, %v816_v14  ;;  %v910_v26 = vsel %vm790_vm8, %v1566_v49, %v886_v19  ;;  %v676_v49 = vmin.f32 %v1677_v5, 20.0  ;;  %v678_v55 = vmin.f32 %v1686_v12, 20.0 }
  0xc6   : > { %v1096_v63 = vpop.eup %1095  ;;  %v911_v24 = vsel %vm791_vm9, %v1569_v50, %v887_v1  ;;  %v760_v31 = vadd.f32 2.0, %v1094_v13  ;;  %v708_v51 = vmul.f32 1.442695, %v677_v44  ;;  %v602_v1 = vpop.permute.xlu1 %601  ;;  %vm809_vm15 = vcmp.gt.f32.partialorder %v1644_v8, 20.0 }
  0xc7   : > { %v1098_v29 = vpop.eup %1097  ;;  %v912_v0 = vsel %vm792_vm10, %v1572_v52, %v888_v22  ;;  %v934_v37 = vpack.c.bf16 %v911_v24, %v910_v26  ;;  %v761_v43 = vadd.f32 2.0, %v1096_v63  ;;  %v706_v53 = vmul.f32 1.442695, %v676_v49 }
  0xc8   : > { %v935_v25 = vpack.c.bf16 %v912_v0, %v912_v0  ;;  %v762_v10 = vadd.f32 2.0, %v1098_v29  ;;  %v784_v48 = vmul.f32 %v1094_v13, %v760_v31  ;;  %v1100_v50 = vpop.eup %1099  ;;  %v825_v52 = vmul.f32 %v777_v6, %v1609_v23 }
  0xc9   : > { %950 = vst [vmem:[%s1693_s15] sm:$0xff] %v934_v37  ;;  %v785_v54 = vmul.f32 %v1096_v63, %v761_v43  ;;  %v1102_v21 = vpop.eup %1101  ;;  %v895_v58 = vmul.f32 %v1100_v50, %v823_v30  ;;  %1105 = vpow2.f32 %v706_v53  ;;  %v710_v39 = vmul.f32 1.442695, %v678_v55 }
  0xca   : > { %951 = vst [vmem:[%s1693_s15 + $0x8] sm:$0xf] %v935_v25  ;;  %v786_v62 = vmul.f32 %v1098_v29, %v762_v10  ;;  %v856_v17 = vadd.f32 2.0, %v784_v48  ;;  %v1104_v2 = vpop.eup %1103  ;;  %v896_v34 = vmul.f32 %v1102_v21, %v824_v45  ;;  %v618_v63 = vadd.f32 %v582_v4, %v1665_v32 }
  0xcb   : > { %v857_v3 = vadd.f32 2.0, %v785_v54  ;;  %v897_v14 = vmul.f32 %v1104_v2, %v825_v52  ;;  %v919_v56 = vsel %vm799_vm11, %v1600_v15, %v895_v58  ;;  %v617_v15 = vadd.f32 %v582_v4, %v1660_v47 }
  0xcc   : > { %v858_v19 = vadd.f32 2.0, %v786_v62  ;;  %v920_v6 = vsel %vm800_vm12, %v1603_v18, %v896_v34  ;;  %1107 = vrcp.f32 %v856_v17  ;;  %v619_v18 = vadd.f32 %v582_v4, %v1670_v57 }
  0xcd   : > { %v921_v13 = vsel %vm801_vm13, %v1609_v23, %v897_v14  ;;  %v940_v22 = vpack.c.bf16 %v920_v6, %v919_v56  ;;  %1109 = vrcp.f32 %v857_v3  ;;  %vm810_vm0 = vcmp.gt.f32.partialorder %v1650_v9, 20.0 }
  0xce   : > { %v941_v26 = vpack.c.bf16 %v921_v13, %v921_v13  ;;  %1111 = vrcp.f32 %v858_v19  ;;  %v1726_v24 = vmul.f32 %v1550_v27, %v617_v15  ;;  %v629_v23 = vadd.f32 %v602_v1, %v1619_v35 }
  0xcf   : > { %956 = vst [vmem:[%s1693_s15 + $0x24] sm:$0xff] %v940_v22  ;;  %1113 = vpow2.f32 %v708_v51  ;;  %v1106_v30 = vpop.eup %1105  ;;  %v1731_v47 = vmul.f32 %v1552_v28, %v618_v63  ;;  %v1734_v31 = vmul.f32 %v1555_v33, %v619_v18  ;;  %v630_v32 = vadd.f32 %v602_v1, %v1622_v36  ;;  %v597_v22 = vpop.permute.xlu0 %596 }
  0xd0   : > { %957 = vst [vmem:[%s1693_s15 + $0x2c] sm:$0xf] %v941_v26  ;;  %1115 = vpow2.f32 %v710_v39  ;;  %v832_v57 = vmul.f32 %v784_v48, %v1641_v20  ;;  %v748_v49 = vadd.f32 2.0, %v1106_v30  ;;  %v673_v29 = vmin.f32 %v1726_v24, 20.0 }
  0xd1   : > { %v631_v0 = vadd.f32 %v602_v1, %v1632_v42  ;;  %v833_v35 = vmul.f32 %v785_v54, %v1644_v8  ;;  %v674_v43 = vmin.f32 %v1731_v47, 20.0  ;;  %v675_v44 = vmin.f32 %v1734_v31, 20.0 }
  0xd2   : > { %v1108_v37 = vpop.eup %1107  ;;  %v1744_v25 = vmul.f32 %v1550_v27, %v629_v23  ;;  %v834_v36 = vmul.f32 %v786_v62, %v1650_v9  ;;  %v772_v48 = vmul.f32 %v1106_v30, %v748_v49  ;;  %v700_v50 = vmul.f32 1.442695, %v673_v29 }
  0xd3   : > { %v1110_v10 = vpop.eup %1109  ;;  %v904_v53 = vmul.f32 %v1108_v37, %v832_v57  ;;  %v702_v21 = vmul.f32 1.442695, %v674_v43  ;;  %v704_v42 = vmul.f32 1.442695, %v675_v44  ;;  %v1748_v52 = vmul.f32 %v1552_v28, %v630_v32 }
  0xd4   : > { %v1112_v45 = vpop.eup %1111  ;;  %v905_v55 = vmul.f32 %v1110_v10, %v833_v35  ;;  %v844_v2 = vadd.f32 2.0, %v772_v48  ;;  %v1754_v62 = vmul.f32 %v1555_v33, %v631_v0  ;;  %1117 = vpow2.f32 %v700_v50 }
  0xd5   : > { %v1114_v54 = vpop.eup %1113  ;;  %v906_v58 = vmul.f32 %v1112_v45, %v834_v36  ;;  %v928_v17 = vsel %vm808_vm14, %v1641_v20, %v904_v53  ;;  %v685_v14 = vmin.f32 %v1744_v25, 20.0  ;;  %v686_v39 = vmin.f32 %v1748_v52, 20.0 }
  0xd6   : > { %v1116_v34 = vpop.eup %1115  ;;  %v929_v3 = vsel %vm809_vm15, %v1644_v8, %v905_v55  ;;  %v749_v4 = vadd.f32 2.0, %v1114_v54  ;;  %1119 = vrcp.f32 %v844_v2  ;;  %v687_v8 = vmin.f32 %v1754_v62, 20.0 }
  0xd7   : > { %v930_v56 = vsel %vm810_vm0, %v1650_v9, %v906_v58  ;;  %v946_v20 = vpack.c.bf16 %v929_v3, %v928_v17  ;;  %v750_v19 = vadd.f32 2.0, %v1116_v34  ;;  %1121 = vpow2.f32 %v702_v21 }
  0xd8   : > { %v947_v51 = vpack.c.bf16 %v930_v56, %v930_v56  ;;  %v773_v6 = vmul.f32 %v1114_v54, %v749_v4  ;;  %1123 = vpow2.f32 %v704_v42  ;;  %v724_v13 = vmul.f32 1.442695, %v685_v14 }
  0xd9   : > { %962 = vst [vmem:[%s1693_s15 + $0x48] sm:$0xff] %v946_v20  ;;  %v774_v1 = vmul.f32 %v1116_v34, %v750_v19  ;;  %v1769_v9 = vmul.f32 %v1626_v41, %v507_v46  ;;  %v1774_v15 = vmul.f32 %v1626_v41, %v508_v59  ;;  %v726_v63 = vmul.f32 1.442695, %v686_v39 }
  0xda   : > { %963 = vst [vmem:[%s1693_s15 + $0x50] sm:$0xf] %v947_v51  ;;  %v845_v26 = vadd.f32 2.0, %v773_v6  ;;  %v1780_v18 = vmul.f32 %v1626_v41, %v509_v60  ;;  %1125 = vpow2.f32 %v724_v13  ;;  %v728_v30 = vmul.f32 1.442695, %v687_v8  ;;  %v1118_v32 = vpop.eup %1117 }
  0xdb   : > { %v846_v23 = vadd.f32 2.0, %v774_v1  ;;  %vm796_vm1 = vcmp.gt.f32.partialorder %v1677_v5, 20.0  ;;  %v820_v46 = vmul.f32 %v772_v48, %v1677_v5  ;;  %v626_v11 = vadd.f32 %v597_v22, %v1586_v61 }
  0xdc   : > { %1127 = vrcp.f32 %v845_v26  ;;  %v1120_v59 = vpop.eup %1119  ;;  %v745_v57 = vadd.f32 2.0, %v1118_v32  ;;  %v627_v49 = vadd.f32 %v597_v22, %v1591_v16  ;;  %v628_v40 = vadd.f32 %v597_v22, %v1594_v38 }
  0xdd   : > { %1129 = vrcp.f32 %v846_v23  ;;  %v1122_v41 = vpop.eup %1121  ;;  %vm797_vm2 = vcmp.gt.f32.partialorder %v1680_v7, 20.0  ;;  %v892_v60 = vmul.f32 %v1120_v59, %v820_v46  ;;  %v1789_v29 = vmul.f32 %v1550_v27, %v626_v11 }
  0xde   : > { %1131 = vpow2.f32 %v726_v63  ;;  %v1124_v0 = vpop.eup %1123  ;;  %v746_v37 = vadd.f32 2.0, %v1122_v41  ;;  %v769_v35 = vmul.f32 %v1118_v32, %v745_v57  ;;  %v1792_v61 = vmul.f32 %v1552_v28, %v627_v49 }
  0xdf   : > { %1133 = vpow2.f32 %v728_v30  ;;  %vm798_vm3 = vcmp.gt.f32.partialorder %v1686_v12, 20.0  ;;  %v747_v16 = vadd.f32 2.0, %v1124_v0  ;;  %v1796_v38 = vmul.f32 %v1555_v33, %v628_v40 }
  0xe0   : > { %v682_v43 = vmin.f32 %v1789_v29, 20.0  ;;  %v1126_v44 = vpop.eup %1125  ;;  %v821_v10 = vmul.f32 %v773_v6, %v1680_v7  ;;  %v770_v36 = vmul.f32 %v1122_v41, %v746_v37  ;;  %v841_v53 = vadd.f32 2.0, %v769_v35  ;;  %v612_v6 = vpop.permute.xlu0 %611 }
  0xe1   : > { %v683_v48 = vmin.f32 %v1792_v61, 20.0  ;;  %v822_v45 = vmul.f32 %v774_v1, %v1686_v12  ;;  %v916_v55 = vsel %vm796_vm1, %v1677_v5, %v892_v60  ;;  %v771_v21 = vmul.f32 %v1124_v0, %v747_v16 }
  0xe2   : > { %v1128_v50 = vpop.eup %1127  ;;  %v757_v42 = vadd.f32 2.0, %v1126_v44  ;;  %vm793_vm4 = vcmp.gt.f32.partialorder %v1726_v24, 20.0  ;;  %v842_v17 = vadd.f32 2.0, %v770_v36  ;;  %1135 = vrcp.f32 %v841_v53 }
  0xe3   : > { %v1130_v54 = vpop.eup %1129  ;;  %v893_v58 = vmul.f32 %v1128_v50, %v821_v10  ;;  %v684_v2 = vmin.f32 %v1796_v38, 20.0  ;;  %v843_v4 = vadd.f32 2.0, %v771_v21  ;;  %v718_v56 = vmul.f32 1.442695, %v682_v43 }
  0xe4   : > { %v1132_v34 = vpop.eup %1131  ;;  %v894_v3 = vmul.f32 %v1130_v54, %v822_v45  ;;  %v781_v14 = vmul.f32 %v1126_v44, %v757_v42  ;;  %vm794_vm5 = vcmp.gt.f32.partialorder %v1731_v47, 20.0  ;;  %1137 = vrcp.f32 %v842_v17 }
  0xe5   : > { %v1134_v20 = vpop.eup %1133  ;;  %v917_v5 = vsel %vm797_vm2, %v1680_v7, %v893_v58  ;;  %v758_v19 = vadd.f32 2.0, %v1132_v34  ;;  %v720_v51 = vmul.f32 1.442695, %v683_v48  ;;  %1139 = vrcp.f32 %v843_v4 }
  0xe6   : > { %v918_v39 = vsel %vm798_vm3, %v1686_v12, %v894_v3  ;;  %v938_v1 = vpack.c.bf16 %v917_v5, %v916_v55  ;;  %v759_v8 = vadd.f32 2.0, %v1134_v20  ;;  %vm795_vm6 = vcmp.gt.f32.partialorder %v1734_v31, 20.0 }
  0xe7   : > { %v939_v13 = vpack.c.bf16 %v918_v39, %v918_v39  ;;  %v782_v22 = vmul.f32 %v1132_v34, %v758_v19  ;;  %v853_v26 = vadd.f32 2.0, %v781_v14  ;;  %v817_v7 = vmul.f32 %v769_v35, %v1726_v24 }
  0xe8   : > { %954 = vst [vmem:[%s1693_s15 + $0x18] sm:$0xff] %v938_v1  ;;  %v783_v63 = vmul.f32 %v1134_v20, %v759_v8  ;;  %1141 = vpow2.f32 %v718_v56  ;;  %v635_v23 = vadd.f32 %v612_v6, %v1769_v9  ;;  %v1136_v30 = vpop.eup %1135  ;;  %vm805_vm7 = vcmp.gt.f32.partialorder %v1744_v25, 20.0 }
  0xe9   : > { %955 = vst [vmem:[%s1693_s15 + $0x20] sm:$0xf] %v939_v13  ;;  %v854_v12 = vadd.f32 2.0, %v782_v22  ;;  %1143 = vrcp.f32 %v853_v26  ;;  %v722_v32 = vmul.f32 1.442695, %v684_v2  ;;  %v818_v46 = vmul.f32 %v770_v36, %v1731_v47 }
  0xea   : > { %v889_v11 = vmul.f32 %v1136_v30, %v817_v7  ;;  %v855_v59 = vadd.f32 2.0, %v783_v63  ;;  %1145 = vpow2.f32 %v720_v51  ;;  %v1138_v57 = vpop.eup %1137  ;;  %v819_v49 = vmul.f32 %v771_v21, %v1734_v31 }
  0xeb   : > { %1147 = vrcp.f32 %v854_v12  ;;  %v636_v40 = vadd.f32 %v612_v6, %v1774_v15  ;;  %v637_v9 = vadd.f32 %v612_v6, %v1780_v18  ;;  %v1140_v41 = vpop.eup %1139  ;;  %v890_v60 = vmul.f32 %v1138_v57, %v818_v46 }
  0xec   : > { %v913_v0 = vsel %vm793_vm4, %v1726_v24, %v889_v11  ;;  %1149 = vrcp.f32 %v855_v59  ;;  %v1828_v37 = vmul.f32 %v1550_v27, %v635_v23  ;;  %v891_v35 = vmul.f32 %v1140_v41, %v819_v49 }
  0xed   : > { %1151 = vpow2.f32 %v722_v32  ;;  %v1831_v16 = vmul.f32 %v1552_v28, %v636_v40  ;;  %v1834_v43 = vmul.f32 %v1555_v33, %v637_v9  ;;  %v914_v18 = vsel %vm794_vm5, %v1731_v47, %v890_v60 }
  0xee   : > { %v1142_v15 = vpop.eup %1141  ;;  %v829_v24 = vmul.f32 %v781_v14, %v1744_v25  ;;  %v830_v44 = vmul.f32 %v782_v22, %v1748_v52  ;;  %v691_v27 = vmin.f32 %v1828_v37, 20.0  ;;  %v915_v28 = vsel %vm795_vm6, %v1734_v31, %v891_v35 }
  0xef   : > { %v1144_v10 = vpop.eup %1143  ;;  %v936_v33 = vpack.c.bf16 %v914_v18, %v913_v0  ;;  %v754_v36 = vadd.f32 2.0, %v1142_v15  ;;  %v692_v53 = vmin.f32 %v1831_v16, 20.0  ;;  %v937_v50 = vpack.c.bf16 %v915_v28, %v915_v28 }
  0xf0   : > { %v1146_v48 = vpop.eup %1145  ;;  %v901_v45 = vmul.f32 %v1144_v10, %v829_v24  ;;  %v693_v47 = vmin.f32 %v1834_v43, 20.0  ;;  %v736_v55 = vmul.f32 1.442695, %v691_v27  ;;  %v831_v42 = vmul.f32 %v783_v63, %v1754_v62 }
  0xf1   : > { %v1148_v21 = vpop.eup %1147  ;;  %952 = vst [vmem:[%s1693_s15 + $0xc] sm:$0xff] %v936_v33  ;;  %v755_v54 = vadd.f32 2.0, %v1146_v48  ;;  %v778_v58 = vmul.f32 %v1142_v15, %v754_v36  ;;  %v738_v17 = vmul.f32 1.442695, %v692_v53  ;;  %vm806_vm8 = vcmp.gt.f32.partialorder %v1748_v52, 20.0 }
  0xf2   : > { %v1150_v2 = vpop.eup %1149  ;;  %953 = vst [vmem:[%s1693_s15 + $0x14] sm:$0xf] %v937_v50  ;;  %v902_v31 = vmul.f32 %v1148_v21, %v830_v44  ;;  %v925_v34 = vsel %vm805_vm7, %v1744_v25, %v901_v45  ;;  %1153 = vpow2.f32 %v736_v55  ;;  %vm807_vm9 = vcmp.gt.f32.partialorder %v1754_v62, 20.0 }
  0xf3   : > { %v1152_v3 = vpop.eup %1151  ;;  %v903_v4 = vmul.f32 %v1150_v2, %v831_v42  ;;  %v779_v14 = vmul.f32 %v1146_v48, %v755_v54  ;;  %v850_v56 = vadd.f32 2.0, %v778_v58  ;;  %1155 = vpow2.f32 %v738_v17 }
  0xf4   : > { %v926_v20 = vsel %vm806_vm8, %v1748_v52, %v902_v31  ;;  %v756_v5 = vadd.f32 2.0, %v1152_v3  ;;  %v740_v19 = vmul.f32 1.442695, %v693_v47  ;;  %v826_v52 = vmul.f32 %v778_v58, %v1789_v29 }
  0xf5   : > { %v927_v51 = vsel %vm807_vm9, %v1754_v62, %v903_v4  ;;  %v944_v6 = vpack.c.bf16 %v926_v20, %v925_v34  ;;  %v851_v39 = vadd.f32 2.0, %v779_v14  ;;  %1157 = vrcp.f32 %v850_v56 }
  0xf6   : > { %v945_v1 = vpack.c.bf16 %v927_v51, %v927_v51  ;;  %v780_v25 = vmul.f32 %v1152_v3, %v756_v5  ;;  %v827_v62 = vmul.f32 %v779_v14, %v1792_v61  ;;  %vm802_vm10 = vcmp.gt.f32.partialorder %v1789_v29, 20.0 }
  0xf7   : > { %960 = vst [vmem:[%s1693_s15 + $0x3c] sm:$0xff] %v944_v6  ;;  %1159 = vrcp.f32 %v851_v39  ;;  %vm803_vm11 = vcmp.gt.f32.partialorder %v1792_v61, 20.0  ;;  %vm804_vm12 = vcmp.gt.f32.partialorder %v1796_v38, 20.0  ;;  %vm811_vm13 = vcmp.gt.f32.partialorder %v1828_v37, 20.0 }
  0xf8   : > { %v1154_v8 = vpop.eup %1153  ;;  %961 = vst [vmem:[%s1693_s15 + $0x44] sm:$0xf] %v945_v1  ;;  %v852_v13 = vadd.f32 2.0, %v780_v25  ;;  %1161 = vpow2.f32 %v740_v19  ;;  %v828_v57 = vmul.f32 %v780_v25, %v1796_v38  ;;  %vm812_vm14 = vcmp.gt.f32.partialorder %v1831_v16, 20.0 }
  0xf9   : > { %v763_v22 = vadd.f32 2.0, %v1154_v8  ;;  %v1156_v26 = vpop.eup %1155  ;;  %vm813_vm15 = vcmp.gt.f32.partialorder %v1834_v43, 20.0 }
  0xfa   : > { %1163 = vrcp.f32 %v852_v13  ;;  %v764_v7 = vadd.f32 2.0, %v1156_v26 }
  0xfb   : > { %v787_v63 = vmul.f32 %v1154_v8, %v763_v22  ;;  %v1158_v23 = vpop.eup %1157 }
  0xfc   : > { %v898_v12 = vmul.f32 %v1158_v23, %v826_v52  ;;  %v788_v32 = vmul.f32 %v1156_v26, %v764_v7 }
  0xfd   : > { %v1160_v30 = vpop.eup %1159  ;;  %v859_v46 = vadd.f32 2.0, %v787_v63 }
  0xfe   : > { %v1162_v11 = vpop.eup %1161  ;;  %v899_v59 = vmul.f32 %v1160_v30, %v827_v62  ;;  %v922_v49 = vsel %vm802_vm10, %v1789_v29, %v898_v12  ;;  %v860_v9 = vadd.f32 2.0, %v788_v32  ;;  %v835_v29 = vmul.f32 %v787_v63, %v1828_v37 }
  0xff   : > { %v765_v40 = vadd.f32 2.0, %v1162_v11  ;;  %1165 = vrcp.f32 %v859_v46 }
 0x100   : > { %v1164_v41 = vpop.eup %1163  ;;  %v923_v60 = vsel %vm803_vm11, %v1792_v61, %v899_v59  ;;  %1167 = vrcp.f32 %v860_v9  ;;  %v836_v61 = vmul.f32 %v788_v32, %v1831_v16 }
 0x101   : > { %v900_v0 = vmul.f32 %v1164_v41, %v828_v57  ;;  %v942_v35 = vpack.c.bf16 %v923_v60, %v922_v49  ;;  %v789_v15 = vmul.f32 %v1162_v11, %v765_v40 }
 0x103   : > { %v924_v18 = vsel %vm804_vm12, %v1796_v38, %v900_v0  ;;  %958 = vst [vmem:[%s1693_s15 + $0x30] sm:$0xff] %v942_v35  ;;  %v861_v24 = vadd.f32 2.0, %v789_v15  ;;  %v837_v36 = vmul.f32 %v789_v15, %v1834_v43 }
 0x104   : > { %v943_v44 = vpack.c.bf16 %v924_v18, %v924_v18 }
 0x105   : > { %1169 = vrcp.f32 %v861_v24  ;;  %v1166_v27 = vpop.eup %1165 }
 0x106   : > { %959 = vst [vmem:[%s1693_s15 + $0x38] sm:$0xf] %v943_v44  ;;  %v1168_v10 = vpop.eup %1167  ;;  %v907_v28 = vmul.f32 %v1166_v27, %v835_v29 }
 0x107   : > { %v908_v33 = vmul.f32 %v1168_v10, %v836_v61 }
 0x108   : > { %v931_v38 = vsel %vm811_vm13, %v1828_v37, %v907_v28 }
 0x109   : > { %v932_v53 = vsel %vm812_vm14, %v1831_v16, %v908_v33 }
 0x10a   : > { %v948_v50 = vpack.c.bf16 %v932_v53, %v931_v38 }
 0x10b   : > { %v1170_v48 = vpop.eup %1169 }
 0x10c   : > { %v909_v45 = vmul.f32 %v1170_v48, %v837_v36  ;;  %964 = vst [vmem:[%s1693_s15 + $0x54] sm:$0xff] %v948_v50 }
 0x10e   : > { %v933_v47 = vsel %vm813_vm15, %v1834_v43, %v909_v45 }
 0x10f   : > { %v949_v55 = vpack.c.bf16 %v933_v47, %v933_v47 }
 0x111   : > { %965 = vst [vmem:[%s1693_s15 + $0x5c] sm:$0xf] %v949_v55 }
 0x112 PF: > { %s16_s21 = sadd.s32 1, %s1177_s21  }
 0x113   : > { %p13_p4 = scmp.ge.s32.totalorder %s16_s21, 4  }
 0x115   :  { %15 = sbr.rel (!%p13_p4) target bundleno = 1 (0x1), region = 76 }

// kernel: conditional_affine_coupling_2d.8
= control target key start
LH: loop header
LB: loop body
LE: loop exit
PB: predicated region body
PF: predicated region fallthrough
CT: control target
= control target key end

     0   :  { %s1367_s15 = smov 0   ;;  %s1754_s0 = inlined_call_operand.vmem [shape: bf16[2,64,384], index: 0, kind: input, shape index: {}]   ;;  %s1755_s1 = inlined_call_operand.vmem [shape: bf16[9,4,64], index: 1, kind: input, shape index: {}]   ;;  %s1756_s2 = inlined_call_operand.vmem [shape: f32[4,1], index: 2, kind: input, shape index: {}]   ;;  %s1757_s3 = inlined_call_operand.vmem [shape: f32[2,2,288], index: 3, kind: input, shape index: {}]   ;;  %s1758_s4 = inlined_call_operand.vmem [shape: f32[2,2,288], index: 4, kind: output, shape index: {}]  }
   0x1 LB: > { %s1188_s16 = sadd.s32 4294967295, %s1331_s15   ;;  %p1192_p0 = scmp.ge.s32.totalorder %s1331_s15, 1  ;;  %s1331_s15 = sphi %s1367_s15, %s14_s15  }
   0x2   : > { %p172_p1 = scmp.lt.s32.totalorder %s1331_s15, 3 }
   0x4   : > { %p173_p2 = pnand %p1192_p0, %p172_p1 }
   0x5   : > { %p203_p3 = scmp.lt.s32.totalorder (!%p173_p2), %s1188_s16, 1  ;;  %s1333_s21 = smov (!%p173_p2), 127  }
   0x6   : > { %176 = sbr.rel (%p173_p2) target bundleno = 543 (0x21f), region = 36  ;;  %s1334_s22 = smov (!%p173_p2), 126  }
   0x7   : > { %s1335_s23 = smov (!%p173_p2), 110   ;;  %s1336_s24 = smov (!%p173_p2), 109  }
   0x8   : > { %s1337_s25 = smov (!%p173_p2), 108   ;;  %s1338_s26 = smov (!%p173_p2), 92  }
   0x9   : > { %s1339_s5 = smov (!%p173_p2), 91   ;;  %s1340_s10 = smov (!%p173_p2), 90  }
   0xb   : > { %s1760_s16 = smov (!%p203_p3, %s1188_s16), 1  ;;  %vm314_vm0 = vcmask 1039360   ;;  %v1196_v53 = vld [vmem:[%s1755_s1 + $0x2] sm:$0x3]  ;;  %vm335_vm1 = vcmask 523264   ;;  %vm458_vm2 = vcmask 1031168  }
   0xc   : > { %s1293_s17 = smul.u32 96, %s1760_s16  ;;  %vm550_vm3 = vcmask 900096   ;;  %vm642_vm4 = vcmask 891904   ;;  %vm734_vm5 = vcmask 883712   ;;  %vm826_vm6 = vcmask 752640  }
   0xd   : > { %vm918_vm7 = vcmask 744448   ;;  %vm1010_vm8 = vcmask 736256   ;;  %vm1100_vm9 = vcmask 1041408   ;;  %vm1116_vm10 = vcmask 1043458  }
   0xe   : > { %s1381_s20 = scalar_lea.vmem %s1754_s0, %s1293_s17  ;;  %vm1102_vm11 = vcmask 1043456   ;;  %vm1117_vm12 = vmor %vm1116_vm10, %vm1100_vm9  ;;  %vm1118_vm13 = vcmask 259076  }
   0xf   : > { %v1243_v0 = vld [vmem:[%s1381_s20 + $0x50] sm:$0xf]  ;;  %v1292_v1 = vld [vmem:[%s1381_s20 + $0x58] sm:$0xf0]  ;;  %v1290_v2 = vld [vmem:[%s1381_s20 + $0x4c] sm:$0xf] }
  0x10   : > { %v1386_v3 = vor.u32 %v1292_v1, %v1243_v0  ;;  %v1237_v4 = vld [vmem:[%s1381_s20 + $0x54] sm:$0xf0]  ;;  %v1219_v5 = vld [vmem:[%s1381_s20 + $0x20] sm:$0xf]  ;;  %v1286_v6 = vld [vmem:[%s1381_s20 + $0x28] sm:$0xf0] }
  0x11   : > { %v1391_v7 = vor.u32 %v1290_v2, %v1237_v4  ;;  %v1393_v8 = vor.u32 %v1286_v6, %v1219_v5  ;;  %v1235_v9 = vld [vmem:[%s1381_s20 + $0x48] sm:$0xf]  ;;  %v1291_v10 = vld [vmem:[%s1381_s20 + $0x50] sm:$0xf0]  ;;  %v1231_v12 = vld [vmem:[%s1381_s20 + $0x38] sm:$0xf] }
  0x12   : > { %312 = vrot.lane.b32.xlu0 %v1386_v3, %s1333_s21  ;;  %v1399_v11 = vor.u32 %v1291_v10, %v1235_v9  ;;  %v1289_v13 = vld [vmem:[%s1381_s20 + $0x40] sm:$0xf0]  ;;  %v1223_v14 = vld [vmem:[%s1381_s20 + $0x30] sm:$0xf]  ;;  %v1288_v15 = vld [vmem:[%s1381_s20 + $0x38] sm:$0xf0] }
  0x13   : > { %310 = vrot.lane.b32.xlu1 %v1391_v7, %s1333_s21  ;;  %300 = vrot.lane.b32.xlu2 %v1393_v8, %s1333_s21  ;;  %v1287_v16 = vld [vmem:[%s1381_s20 + $0x34] sm:$0xf]  ;;  %v1225_v17 = vld [vmem:[%s1381_s20 + $0x3c] sm:$0xf0]  ;;  %v1412_v18 = vor.u32 %v1289_v13, %v1231_v12  ;;  %v1414_v19 = vor.u32 %v1288_v15, %v1223_v14  ;;  %vm1119_vm14 = vmor %vm1118_vm13, %vm1117_vm12 }
  0x14   : > { %397 = vmatpush.bf16.msra.mxu3 %v1399_v11  ;;  %v1416_v20 = vor.u32 %v1287_v16, %v1225_v17  ;;  %v1211_v21 = vld [vmem:[%s1381_s20 + $0x18] sm:$0xf]  ;;  %v1285_v22 = vld [vmem:[%s1381_s20 + $0x20] sm:$0xf0]  ;;  %v1284_v23 = vld [vmem:[%s1381_s20 + $0x1c] sm:$0xf] }
  0x15   : > { %v1424_v24 = vor.u32 %v1285_v22, %v1211_v21  ;;  %v1199_v25 = vld [vmem:[%s1381_s20] sm:$0xf]  ;;  %v1282_v26 = vld [vmem:[%s1381_s20 + $0x8] sm:$0xf0]  ;;  %v1213_v27 = vld [vmem:[%s1381_s20 + $0x24] sm:$0xf0] }
  0x16   : > { %v1207_v28 = vld [vmem:[%s1381_s20 + $0x8] sm:$0xf]  ;;  %v1283_v29 = vld [vmem:[%s1381_s20 + $0x10] sm:$0xf0]  ;;  %v1436_v30 = vor.u32 %v1282_v26, %v1199_v25  ;;  %v1438_v31 = vor.u32 %v1284_v23, %v1213_v27  ;;  %v1281_v33 = vld [vmem:[%s1381_s20 + $0x4] sm:$0xf] }
  0x17   : > { %v1440_v32 = vor.u32 %v1283_v29, %v1207_v28  ;;  %v1201_v34 = vld [vmem:[%s1381_s20 + $0xc] sm:$0xf0]  ;;  %v235_v15 = vld [vmem:[%s1755_s1] sm:$0x3]  ;;  %v1251_v28 = vld [vmem:[%s1755_s1 + $0x4] sm:$0x3] }
  0x18   : > { %398 = vmatpush.bf16.msra.mxu3 %v1414_v19  ;;  %v1455_v35 = vor.u32 %v1281_v33, %v1201_v34 }
  0x1a   : > { %306 = vrot.lane.b32.xlu0 %v1412_v18, %s1333_s21 }
  0x1b   : > { %308 = vrot.lane.b32.xlu1 %v1399_v11, %s1333_s21  ;;  %304 = vrot.lane.b32.xlu2 %v1416_v20, %s1333_s21 }
  0x1c   : > { %399 = vmatpush.bf16.msra.mxu3 %v1424_v24 }
  0x20   : > { %400 = vmatpush.bf16.msra.mxu3 %v1436_v30 }
  0x22   : > { %302 = vrot.lane.b32.xlu0 %v1414_v19, %s1333_s21 }
  0x23   : > { %298 = vrot.lane.b32.xlu2 %v1438_v31, %s1333_s21  ;;  %294 = vrot.lane.b32.xlu1 %v1440_v32, %s1333_s21 }
  0x24   : > { %1248 = vmatmul.msk.bf16.vlgmr.msra.gmra.mxu3 %vm335_vm1, %v235_v15 }
  0x2a   : > { %296 = vrot.lane.b32.xlu0 %v1424_v24, %s1333_s21 }
  0x2b   : > { %454 = vrot.lane.b32.xlu2 %v1391_v7, %s1334_s22  ;;  %452 = vrot.lane.b32.xlu1 %v1399_v11, %s1334_s22 }
  0x32   : > { %292 = vrot.lane.b32.xlu0 %v1455_v35, %s1333_s21 }
  0x33   : > { %446 = vrot.lane.b32.xlu2 %v1414_v19, %s1334_s22  ;;  %290 = vrot.lane.b32.xlu1 %v1436_v30, %s1333_s21 }
  0x3a   : > { %448 = vrot.lane.b32.xlu0 %v1416_v20, %s1334_s22 }
  0x3b   : > { %442 = vrot.lane.b32.xlu2 %v1438_v31, %s1334_s22  ;;  %440 = vrot.lane.b32.xlu1 %v1424_v24, %s1334_s22 }
  0x42   : > { %434 = vrot.lane.b32.xlu0 %v1436_v30, %s1334_s22 }
  0x43   : > { %456 = vrot.lane.b32.xlu2 %v1386_v3, %s1334_s22  ;;  %436 = vrot.lane.b32.xlu1 %v1455_v35, %s1334_s22 }
  0x4a   : > { %546 = vrot.lane.b32.xlu0 %v1391_v7, %s1335_s23 }
  0x4b   : > { %450 = vrot.lane.b32.xlu2 %v1412_v18, %s1334_s22  ;;  %548 = vrot.lane.b32.xlu1 %v1386_v3, %s1335_s23 }
  0x52   : > { %540 = vrot.lane.b32.xlu0 %v1416_v20, %s1335_s23 }
  0x53   : > { %544 = vrot.lane.b32.xlu2 %v1399_v11, %s1335_s23  ;;  %542 = vrot.lane.b32.xlu1 %v1412_v18, %s1335_s23 }
  0x5a   : > { %444 = vrot.lane.b32.xlu0 %v1393_v8, %s1334_s22 }
  0x5b   : > { %536 = vrot.lane.b32.xlu2 %v1393_v8, %s1335_s23  ;;  %534 = vrot.lane.b32.xlu1 %v1438_v31, %s1335_s23 }
  0x62   : > { %538 = vrot.lane.b32.xlu0 %v1414_v19, %s1335_s23 }
  0x63   : > { %528 = vrot.lane.b32.xlu2 %v1455_v35, %s1335_s23  ;;  %438 = vrot.lane.b32.xlu1 %v1440_v32, %s1334_s22 }
  0x6a   : > { %530 = vrot.lane.b32.xlu0 %v1440_v32, %s1335_s23 }
  0x6b   : > { %526 = vrot.lane.b32.xlu2 %v1436_v30, %s1335_s23  ;;  %532 = vrot.lane.b32.xlu1 %v1424_v24, %s1335_s23 }
  0x6d   : > { %v301_v36 = vpop.permute.xlu2 %300 }
  0x72   : > { %640 = vrot.lane.b32.xlu0 %v1386_v3, %s1336_s24 }
  0x73   : > { %638 = vrot.lane.b32.xlu2 %v1391_v7, %s1336_s24  ;;  %634 = vrot.lane.b32.xlu1 %v1412_v18, %s1336_s24 }
  0x75   : > { %v305_v37 = vpop.permute.xlu2 %304 }
  0x7a   : > { %636 = vrot.lane.b32.xlu0 %v1399_v11, %s1336_s24 }
  0x7b   : > { %632 = vrot.lane.b32.xlu2 %v1416_v20, %s1336_s24  ;;  %628 = vrot.lane.b32.xlu1 %v1393_v8, %s1336_s24 }
  0x7d   : > { %v299_v38 = vpop.permute.xlu2 %298 }
  0x7e   : > { %v318_v48 = vsel %vm314_vm0, %v299_v38, %v301_v36 }
  0x82   : > { %630 = vrot.lane.b32.xlu0 %v1414_v19, %s1336_s24 }
  0x83   : > { %626 = vrot.lane.b32.xlu2 %v1438_v31, %s1336_s24  ;;  %622 = vrot.lane.b32.xlu1 %v1440_v32, %s1336_s24 }
  0x84   : > { %v313_v39 = vpop.permute.xlu0 %312 }
  0x85   : > { %v311_v40 = vpop.permute.xlu1 %310  ;;  %v455_v41 = vpop.permute.xlu2 %454  ;;  %369 = vmatpush.bf16.msra.mxu2 %v313_v39 }
  0x86   : > { %v322_v42 = vsel %vm314_vm0, %v311_v40, %v313_v39 }
  0x87   : > { %356 = vmatpush.bf16.msra.mxu1 %v322_v42 }
  0x8a   : > { %728 = vrot.lane.b32.xlu0 %v1399_v11, %s1337_s25 }
  0x8b   : > { %624 = vrot.lane.b32.xlu2 %v1424_v24, %s1336_s24  ;;  %730 = vrot.lane.b32.xlu1 %v1391_v7, %s1337_s25 }
  0x8c   : > { %v307_v43 = vpop.permute.xlu0 %306 }
  0x8d   : > { %v309_v44 = vpop.permute.xlu1 %308  ;;  %v447_v45 = vpop.permute.xlu2 %446  ;;  %370 = vmatpush.bf16.msra.mxu2 %v307_v43  ;;  %v320_v46 = vsel %vm314_vm0, %v305_v37, %v307_v43 }
  0x8e   : > { %v321_v47 = vsel %vm314_vm0, %v309_v44, %v311_v40  ;;  %357 = vmatpush.bf16.msra.mxu1 %v320_v46 }
  0x8f   : > { %343 = vmatpush.bf16.msra.mxu0 %v321_v47 }
  0x91   : > { %371 = vmatpush.bf16.msra.mxu2 %v301_v36 }
  0x92   : > { %358 = vmatpush.bf16.msra.mxu1 %v318_v48  ;;  %820 = vrot.lane.b32.xlu0 %v1399_v11, %s1338_s26 }
  0x93   : > { %620 = vrot.lane.b32.xlu2 %v1455_v35, %s1336_s24  ;;  %822 = vrot.lane.b32.xlu1 %v1391_v7, %s1338_s26 }
  0x94   : > { %v303_v49 = vpop.permute.xlu0 %302 }
  0x95   : > { %v1517_v50 = vpop.permute.xlu2 %442  ;;  %v295_v51 = vpop.permute.xlu1 %294  ;;  %v319_v52 = vsel %vm314_vm0, %v303_v49, %v305_v37 }
  0x96   : > { %344 = vmatpush.bf16.msra.mxu0 %v319_v52  ;;  %372 = vmatpush.bf16.msra.mxu2 %v295_v51 }
  0x99   : > { %1247 = vmatmul.msk.bf16.vlgmr.msra.gmra.mxu2 %vm335_vm1, %v1196_v53 }
  0x9a   : > { %722 = vrot.lane.b32.xlu0 %v1414_v19, %s1337_s25 }
  0x9b   : > { %618 = vrot.lane.b32.xlu2 %v1436_v30, %s1336_s24  ;;  %724 = vrot.lane.b32.xlu1 %v1416_v20, %s1337_s25 }
  0x9c   : > { %v297_v54 = vpop.permute.xlu0 %296 }
  0x9d   : > { %v457_v55 = vpop.permute.xlu2 %456  ;;  %v453_v56 = vpop.permute.xlu1 %452  ;;  %v317_v57 = vsel %vm314_vm0, %v297_v54, %v299_v38  ;;  %v1255_v54 = vld [vmem:[%s1755_s1 + $0x6] sm:$0x3] }
  0x9e   : > { %345 = vmatpush.bf16.msra.mxu0 %v317_v57  ;;  %v465_v58 = vsel %vm458_vm2, %v453_v56, %v455_v41  ;;  %v466_v59 = vsel %vm458_vm2, %v455_v41, %v457_v55 }
  0x9f   : > { %486 = vmatpush.bf16.msrb.mxu2 %v465_v58  ;;  %499 = vmatpush.bf16.msrb.mxu3 %v466_v59 }
  0xa2   : > { %814 = vrot.lane.b32.xlu0 %v1414_v19, %s1338_s26 }
  0xa3   : > { %716 = vrot.lane.b32.xlu2 %v1424_v24, %s1337_s25  ;;  %816 = vrot.lane.b32.xlu1 %v1416_v20, %s1338_s26 }
  0xa4   : > { %v293_v60 = vpop.permute.xlu0 %292 }
  0xa5   : > { %v451_v61 = vpop.permute.xlu2 %450  ;;  %v291_v62 = vpop.permute.xlu1 %290  ;;  %v316_v63 = vsel %vm314_vm0, %v293_v60, %v295_v51 }
  0xa6   : > { %v315_v0 = vsel %vm314_vm0, %v291_v62, %v293_v60  ;;  %359 = vmatpush.bf16.msra.mxu1 %v316_v63 }
  0xa7   : > { %346 = vmatpush.bf16.msra.mxu0 %v315_v0 }
  0xa9   : > { %1246 = vmatmul.msk.bf16.vlgmr.msra.gmra.mxu1 %vm335_vm1, %v1196_v53 }
  0xaa   : > { %423 = vmatpush.bf16.msrb.mxu1 %v1386_v3  ;;  %718 = vrot.lane.b32.xlu0 %v1438_v31, %s1337_s25 }
  0xab   : > { %410 = vmatpush.bf16.msrb.mxu0 %v1391_v7  ;;  %808 = vrot.lane.b32.xlu2 %v1424_v24, %s1338_s26 }
  0xac   : > { %1245 = vmatmul.msk.bf16.vlgmr.msra.gmra.mxu0 %vm335_vm1, %v1196_v53  ;;  %732 = vrot.lane.b32.xlu1 %v1386_v3, %s1337_s25  ;;  %v449_v1 = vpop.permute.xlu0 %448 }
  0xad   : > { %v545_v2 = vpop.permute.xlu2 %544  ;;  %v441_v4 = vpop.permute.xlu1 %440  ;;  %v463_v5 = vsel %vm458_vm2, %v447_v45, %v449_v1  ;;  %v464_v6 = vsel %vm458_vm2, %v449_v1, %v451_v61 }
  0xae   : > { %424 = vmatpush.bf16.msrb.mxu1 %v1412_v18  ;;  %487 = vmatpush.bf16.msrb.mxu2 %v463_v5  ;;  %v461_v9 = vsel %vm458_vm2, %v441_v4, %v1517_v50 }
  0xaf   : > { %411 = vmatpush.bf16.msrb.mxu0 %v1416_v20  ;;  %500 = vmatpush.bf16.msrb.mxu3 %v464_v6 }
  0xb2   : > { %425 = vmatpush.bf16.msrb.mxu1 %v1393_v8  ;;  %810 = vrot.lane.b32.xlu0 %v1438_v31, %s1338_s26 }
  0xb3   : > { %412 = vmatpush.bf16.msrb.mxu0 %v1438_v31  ;;  %488 = vmatpush.bf16.msrb.mxu2 %v461_v9 }
  0xb4   : > { %712 = vrot.lane.b32.xlu2 %v1455_v35, %s1337_s25  ;;  %710 = vrot.lane.b32.xlu1 %v1436_v30, %s1337_s25  ;;  %v435_v10 = vpop.permute.xlu0 %434 }
  0xb5   : > { %v1567_v12 = vpop.permute.xlu2 %536  ;;  %v437_v13 = vpop.permute.xlu1 %436 }
  0xb6   : > { %426 = vmatpush.bf16.msrb.mxu1 %v1440_v32  ;;  %v459_v14 = vsel %vm458_vm2, %v435_v10, %v437_v13 }
  0xb7   : > { %413 = vmatpush.bf16.msrb.mxu0 %v1455_v35  ;;  %489 = vmatpush.bf16.msrb.mxu2 %v459_v14 }
  0xb9   : > { %1250 = vmatmul.msk.bf16.vlgmr.msrb.gmra.mxu1 %vm335_vm1, %v235_v15 }
  0xba   : > { %726 = vrot.lane.b32.xlu0 %v1412_v18, %s1337_s25  ;;  %1252 = vmatmul.msk.bf16.vlgmr.msrb.gmra.mxu2 %vm335_vm1, %v1251_v28 }
  0xbb   : > { %512 = vmatpush.bf16.msra.mxu0 %v457_v55 }
  0xbc   : > { %1249 = vmatmul.msk.bf16.vlgmr.msrb.gmra.mxu0 %vm335_vm1, %v235_v15  ;;  %804 = vrot.lane.b32.xlu2 %v1455_v35, %s1338_s26  ;;  %v547_v16 = vpop.permute.xlu0 %546 }
  0xbd   : > { %802 = vrot.lane.b32.xlu1 %v1436_v30, %s1338_s26  ;;  %v529_v17 = vpop.permute.xlu2 %528  ;;  %v549_v21 = vpop.permute.xlu1 %548  ;;  %v557_v22 = vsel %vm550_vm3, %v545_v2, %v547_v16 }
  0xbe   : > { %v558_v23 = vsel %vm550_vm3, %v547_v16, %v549_v21  ;;  %578 = vmatpush.bf16.msra.mxu1 %v557_v22 }
  0xbf   : > { %513 = vmatpush.bf16.msra.mxu0 %v451_v61  ;;  %591 = vmatpush.bf16.msra.mxu2 %v558_v23 }
  0xc2   : > { %720 = vrot.lane.b32.xlu0 %v1393_v8, %s1337_s25 }
  0xc4   : > { %914 = vrot.lane.b32.xlu2 %v1391_v7, %s1339_s5  ;;  %v541_v25 = vpop.permute.xlu0 %540 }
  0xc5   : > { %824 = vrot.lane.b32.xlu1 %v1386_v3, %s1338_s26  ;;  %v527_v26 = vpop.permute.xlu2 %526  ;;  %v543_v27 = vpop.permute.xlu1 %542 }
  0xc6   : > { %v556_v29 = vsel %vm550_vm3, %v541_v25, %v543_v27  ;;  %v551_v49 = vsel %vm550_vm3, %v527_v26, %v529_v17  ;;  %v1263_v26 = vld [vmem:[%s1755_s1 + $0xa] sm:$0x3] }
  0xc7   : > { %592 = vmatpush.bf16.msra.mxu2 %v556_v29 }
  0xca   : > { %916 = vrot.lane.b32.xlu0 %v1386_v3, %s1339_s5 }
  0xcc   : > { %818 = vrot.lane.b32.xlu2 %v1412_v18, %s1338_s26  ;;  %v445_v33 = vpop.permute.xlu0 %444 }
  0xcd   : > { %714 = vrot.lane.b32.xlu1 %v1440_v32, %s1337_s25  ;;  %v639_v34 = vpop.permute.xlu2 %638  ;;  %v535_v36 = vpop.permute.xlu1 %534  ;;  %514 = vmatpush.bf16.msra.mxu0 %v445_v33  ;;  %v462_v37 = vsel %vm458_vm2, %v1517_v50, %v445_v33  ;;  %s1294_s25 = smul.u32 6, %s1760_s16 }
  0xce   : > { %501 = vmatpush.bf16.msrb.mxu3 %v462_v37  ;;  %v554_v38 = vsel %vm550_vm3, %v535_v36, %v1567_v12 }
  0xcf   : > { %593 = vmatpush.bf16.msra.mxu2 %v554_v38  ;;  %s212_s28 = scalar_lea.vmem %s1757_s3, %s1294_s25  ;;  %s217_s30 = scalar_lea.vmem %s1758_s4, %s1294_s25 }
  0xd2   : > { %908 = vrot.lane.b32.xlu0 %v1416_v20, %s1339_s5 }
  0xd4   : > { %912 = vrot.lane.b32.xlu2 %v1399_v11, %s1339_s5  ;;  %v539_v39 = vpop.permute.xlu0 %538 }
  0xd5   : > { %910 = vrot.lane.b32.xlu1 %v1412_v18, %s1339_s5  ;;  %v633_v40 = vpop.permute.xlu2 %632  ;;  %v439_v41 = vpop.permute.xlu1 %438  ;;  %v555_v42 = vsel %vm550_vm3, %v539_v39, %v541_v25 }
  0xd6   : > { %v460_v43 = vsel %vm458_vm2, %v437_v13, %v439_v41  ;;  %579 = vmatpush.bf16.msra.mxu1 %v555_v42  ;;  %515 = vmatpush.bf16.msra.mxu0 %v439_v41 }
  0xd7   : > { %502 = vmatpush.bf16.msrb.mxu3 %v460_v43 }
  0xd9   : > { %1254 = vmatmul.msk.bf16.vlgmr.msra.gmra.mxu0 %vm335_vm1, %v1251_v28 }
  0xda   : > { %812 = vrot.lane.b32.xlu0 %v1393_v8, %s1338_s26  ;;  %1253 = vmatmul.msk.bf16.vlgmr.msrb.gmra.mxu3 %vm335_vm1, %v1251_v28 }
  0xdb   : > { %604 = vmatpush.bf16.msra.mxu3 %v549_v21 }
  0xdc   : > { %904 = vrot.lane.b32.xlu2 %v1393_v8, %s1339_s5  ;;  %v531_v44 = vpop.permute.xlu0 %530 }
  0xdd   : > { %902 = vrot.lane.b32.xlu1 %v1438_v31, %s1339_s5  ;;  %v627_v45 = vpop.permute.xlu2 %626  ;;  %v533_v46 = vpop.permute.xlu1 %532  ;;  %v552_v47 = vsel %vm550_vm3, %v529_v17, %v531_v44 }
  0xde   : > { %v553_v48 = vsel %vm550_vm3, %v533_v46, %v535_v36  ;;  %594 = vmatpush.bf16.msra.mxu2 %v552_v47  ;;  %v1267_v36 = vld [vmem:[%s1755_s1 + $0xc] sm:$0x3] }
  0xdf   : > { %605 = vmatpush.bf16.msra.mxu3 %v543_v27  ;;  %580 = vmatpush.bf16.msra.mxu1 %v553_v48 }
  0xe1   : > { %1257 = vmatmul.msk.bf16.vlgmr.msra.gmra.mxu2 %vm335_vm1, %v1255_v54 }
  0xe2   : > { %906 = vrot.lane.b32.xlu0 %v1414_v19, %s1339_s5 }
  0xe3   : > { %606 = vmatpush.bf16.msra.mxu3 %v1567_v12  ;;  %581 = vmatpush.bf16.msra.mxu1 %v551_v49 }
  0xe4   : > { %v641_v50 = vpop.permute.xlu0 %640  ;;  %896 = vrot.lane.b32.xlu2 %v1455_v35, %s1339_s5 }
  0xe5   : > { %806 = vrot.lane.b32.xlu1 %v1440_v32, %s1338_s26  ;;  %v625_v51 = vpop.permute.xlu2 %624  ;;  %v635_v52 = vpop.permute.xlu1 %634  ;;  %v650_v53 = vsel %vm642_vm4, %v639_v34, %v641_v50  ;;  %696 = vmatpush.bf16.msrb.mxu2 %v641_v50 }
  0xe6   : > { %1256 = vmatmul.msk.bf16.vlgmr.msra.gmra.mxu1 %vm335_vm1, %v1255_v54  ;;  %v648_v55 = vsel %vm642_vm4, %v633_v40, %v635_v52  ;;  %v645_v2 = vsel %vm642_vm4, %v625_v51, %v627_v45 }
  0xe7   : > { %607 = vmatpush.bf16.msra.mxu3 %v531_v44  ;;  %683 = vmatpush.bf16.msrb.mxu1 %v650_v53 }
  0xe9   : > { %697 = vmatpush.bf16.msrb.mxu2 %v635_v52 }
  0xea   : > { %898 = vrot.lane.b32.xlu0 %v1440_v32, %s1339_s5  ;;  %1258 = vmatmul.msk.bf16.vlgmr.msra.gmra.mxu3 %vm335_vm1, %v1255_v54 }
  0xeb   : > { %684 = vmatpush.bf16.msrb.mxu1 %v648_v55 }
  0xec   : > { %v637_v56 = vpop.permute.xlu0 %636  ;;  %894 = vrot.lane.b32.xlu2 %v1436_v30, %s1339_s5 }
  0xed   : > { %900 = vrot.lane.b32.xlu1 %v1424_v24, %s1339_s5  ;;  %v621_v57 = vpop.permute.xlu2 %620  ;;  %v629_v58 = vpop.permute.xlu1 %628  ;;  %v649_v59 = vsel %vm642_vm4, %v637_v56, %v639_v34 }
  0xee   : > { %670 = vmatpush.bf16.msrb.mxu0 %v649_v59  ;;  %698 = vmatpush.bf16.msrb.mxu2 %v629_v58  ;;  %v646_v60 = vsel %vm642_vm4, %v627_v45, %v629_v58 }
  0xef   : > { %685 = vmatpush.bf16.msrb.mxu1 %v646_v60 }
  0xf2   : > { %1008 = vrot.lane.b32.xlu0 %v1386_v3, %s1340_s10 }
  0xf4   : > { %v631_v61 = vpop.permute.xlu0 %630  ;;  %1006 = vrot.lane.b32.xlu2 %v1391_v7, %s1340_s10 }
  0xf5   : > { %1002 = vrot.lane.b32.xlu1 %v1412_v18, %s1340_s10  ;;  %v619_v62 = vpop.permute.xlu2 %618  ;;  %v623_v63 = vpop.permute.xlu1 %622  ;;  %v647_v0 = vsel %vm642_vm4, %v631_v61, %v633_v40 }
  0xf6   : > { %671 = vmatpush.bf16.msrb.mxu0 %v647_v0  ;;  %699 = vmatpush.bf16.msrb.mxu2 %v623_v63  ;;  %v644_v1 = vsel %vm642_vm4, %v621_v57, %v623_v63  ;;  %v643_v3 = vsel %vm642_vm4, %v619_v62, %v621_v57 }
  0xf7   : > { %686 = vmatpush.bf16.msrb.mxu1 %v644_v1 }
  0xfa   : > { %1004 = vrot.lane.b32.xlu0 %v1399_v11, %s1340_s10  ;;  %672 = vmatpush.bf16.msrb.mxu0 %v645_v2  ;;  %v1259_v11 = vld [vmem:[%s1755_s1 + $0x8] sm:$0x3] }
  0xfb   : > { %1262 = vmatmul.msk.bf16.vlgmr.msrb.gmra.mxu2 %vm335_vm1, %v1259_v11  ;;  %1261 = vmatmul.msk.bf16.vlgmr.msrb.gmra.mxu1 %vm335_vm1, %v1259_v11 }
  0xfc   : > { %v729_v7 = vpop.permute.xlu0 %728  ;;  %1000 = vrot.lane.b32.xlu2 %v1416_v20, %s1340_s10 }
  0xfd   : > { %996 = vrot.lane.b32.xlu1 %v1393_v8, %s1340_s10  ;;  %v717_v18 = vpop.permute.xlu2 %716  ;;  %v731_v4 = vpop.permute.xlu1 %730 }
  0xfe   : > { %v741_v5 = vsel %vm734_vm5, %v729_v7, %v731_v4  ;;  %673 = vmatpush.bf16.msrb.mxu0 %v643_v3  ;;  %v402_v3 = vpop.f32.mrf.mxu3 }
  0xff   : > { %762 = vmatpush.bf16.msrb.mxu3 %v741_v5 }
 0x101   : > { %1260 = vmatmul.msk.bf16.vlgmr.msrb.gmra.mxu0 %vm335_vm1, %v1259_v11 }
 0x102   : > { %998 = vrot.lane.b32.xlu0 %v1414_v19, %s1340_s10 }
 0x104   : > { %v821_v8 = vpop.permute.xlu0 %820  ;;  %994 = vrot.lane.b32.xlu2 %v1438_v31, %s1340_s10 }
 0x105   : > { %990 = vrot.lane.b32.xlu1 %v1440_v32, %s1340_s10  ;;  %v809_v20 = vpop.permute.xlu2 %808  ;;  %v823_v6 = vpop.permute.xlu1 %822 }
 0x106   : > { %v833_v9 = vsel %vm826_vm6, %v821_v8, %v823_v6  ;;  %v1271_v8 = vld [vmem:[%s1755_s1 + $0xe] sm:$0x3] }
 0x107   : > { %854 = vmatpush.bf16.msra.mxu2 %v833_v9 }
 0x10a   : > { %992 = vrot.lane.b32.xlu0 %v1424_v24, %s1340_s10 }
 0x10c   : > { %v723_v19 = vpop.permute.xlu0 %722  ;;  %986 = vrot.lane.b32.xlu2 %v1436_v30, %s1340_s10 }
 0x10d   : > { %988 = vrot.lane.b32.xlu1 %v1455_v35, %s1340_s10  ;;  %v725_v10 = vpop.permute.xlu1 %724 }
 0x10e   : > { %v713_v32 = vpop.permute.xlu2 %712  ;;  %v739_v12 = vsel %vm734_vm5, %v723_v19, %v725_v10  ;;  %v404_v19 = vpop.f32.mrf.mxu3 }
 0x10f   : > { %763 = vmatpush.bf16.msrb.mxu3 %v739_v12 }
 0x114   : > { %v815_v31 = vpop.permute.xlu0 %814 }
 0x115   : > { %v817_v14 = vpop.permute.xlu1 %816 }
 0x116   : > { %v1684_v13 = vpop.permute.xlu2 %804  ;;  %v831_v15 = vsel %vm826_vm6, %v815_v31, %v817_v14 }
 0x117   : > { %855 = vmatpush.bf16.msra.mxu2 %v831_v15  ;;  %v1076_v15 = vld [vmem:[%s1756_s2] sm:$0xf] }
 0x11c   : > { %v719_v24 = vpop.permute.xlu0 %718  ;;  %v374_v58 = vpop.f32.mrf.mxu2 }
 0x11d   : > { %v737_v35 = vsel %vm734_vm5, %v717_v18, %v719_v24 }
 0x11e   : > { %v733_v16 = vpop.permute.xlu1 %732  ;;  %v915_v17 = vpop.permute.xlu2 %914  ;;  %764 = vmatpush.bf16.msrb.mxu3 %v737_v35 }
 0x11f   : > { %v742_v21 = vsel %vm734_vm5, %v731_v4, %v733_v16  ;;  %788 = vmatpush.bf16.msra.mxu1 %v733_v16  ;;  %v1341_v16 = vmov 0  }
 0x120   : > { %775 = vmatpush.bf16.msra.mxu0 %v742_v21  ;;  %1312 = vset.pattern.permute.xlu0 %v1341_v16 }
 0x121   : > { %1079 = vperm.xlu0 %1312, %v1076_v15  }
 0x124   : > { %v811_v30 = vpop.permute.xlu0 %810  ;;  %v376_v1 = vpop.f32.mrf.mxu2 }
 0x125   : > { %v829_v23 = vsel %vm826_vm6, %v809_v20, %v811_v30 }
 0x126   : > { %v711_v22 = vpop.permute.xlu1 %710  ;;  %856 = vmatpush.bf16.msra.mxu2 %v829_v23  ;;  %v819_v27 = vpop.permute.xlu2 %818 }
 0x127   : > { %v735_v25 = vsel %vm734_vm5, %v711_v22, %v713_v32  ;;  %v832_v43 = vsel %vm826_vm6, %v817_v14, %v819_v27  ;;  %v361_v0 = vpop.f32.mrf.mxu1 }
 0x128   : > { %765 = vmatpush.bf16.msrb.mxu3 %v735_v25 }
 0x129   : > { %v348_v2 = vpop.f32.mrf.mxu0 }
 0x12a   : > { %v403_v7 = vadd.f32 %v402_v3, %v348_v2 }
 0x12b   : > { %1264 = vmatmul.msk.bf16.vlgmr.msrb.gmra.mxu3 %vm335_vm1, %v1263_v26 }
 0x12c   : > { %v727_v28 = vpop.permute.xlu0 %726 }
 0x12d   : > { %789 = vmatpush.bf16.msra.mxu1 %v727_v28  ;;  %v740_v33 = vsel %vm734_vm5, %v725_v10, %v727_v28 }
 0x12e   : > { %776 = vmatpush.bf16.msra.mxu0 %v740_v33  ;;  %v913_v37 = vpop.permute.xlu2 %912 }
 0x12f   : > { %v803_v29 = vpop.permute.xlu1 %802  ;;  %v925_v47 = vsel %vm918_vm7, %v913_v37, %v915_v17  ;;  %v363_v20 = vpop.f32.mrf.mxu1 }
 0x130   : > { %v827_v34 = vsel %vm826_vm6, %v803_v29, %v1684_v13 }
 0x131   : > { %857 = vmatpush.bf16.msra.mxu2 %v827_v34  ;;  %v350_v9 = vpop.f32.mrf.mxu0 }
 0x134   : > { %1268 = vmatmul.msk.bf16.vlgmr.msra.gmra.mxu2 %vm335_vm1, %v1267_v36  ;;  %v721_v38 = vpop.permute.xlu0 %720 }
 0x135   : > { %790 = vmatpush.bf16.msra.mxu1 %v721_v38  ;;  %v738_v40 = vsel %vm734_vm5, %v719_v24, %v721_v38 }
 0x136   : > { %777 = vmatpush.bf16.msra.mxu0 %v738_v40  ;;  %v905_v42 = vpop.permute.xlu2 %904 }
 0x137   : > { %v825_v39 = vpop.permute.xlu1 %824  ;;  %v428_v24 = vpop.f32.mrf.mxu1 }
 0x138   : > { %v834_v41 = vsel %vm826_vm6, %v823_v6, %v825_v39  ;;  %v429_v35 = vadd.f32 %v428_v24, %v374_v58 }
 0x139   : > { %867 = vmatpush.bf16.msra.mxu3 %v834_v41 }
 0x13c   : > { %v917_v44 = vpop.permute.xlu0 %916 }
 0x13d   : > { %868 = vmatpush.bf16.msra.mxu3 %v832_v43  ;;  %v926_v46 = vsel %vm918_vm7, %v915_v17, %v917_v44  ;;  %v491_v10 = vpop.f32.mrf.mxu2  ;;  %v415_v17 = vpop.f32.mrf.mxu0  ;;  %v1275_v43 = vld [vmem:[%s1755_s1 + $0x10] sm:$0x3] }
 0x13e   : > { %959 = vmatpush.bf16.msrb.mxu2 %v926_v46  ;;  %v897_v49 = vpop.permute.xlu2 %896  ;;  %v521_v12 = vadd.f32 %v491_v10, %v403_v7  ;;  %v416_v22 = vadd.f32 %v415_v17, %v361_v0 }
 0x13f   : > { %v715_v45 = vpop.permute.xlu1 %714  ;;  %v430_v34 = vpop.f32.mrf.mxu1 }
 0x140   : > { %791 = vmatpush.bf16.msra.mxu1 %v715_v45  ;;  %v736_v48 = vsel %vm734_vm5, %v713_v32, %v715_v45 }
 0x141   : > { %778 = vmatpush.bf16.msra.mxu0 %v736_v48 }
 0x143   : > { %1266 = vmatmul.msk.bf16.vlgmr.msra.gmra.mxu1 %vm335_vm1, %v1263_v26 }
 0x144   : > { %946 = vmatpush.bf16.msrb.mxu1 %v925_v47  ;;  %1265 = vmatmul.msk.bf16.vlgmr.msra.gmra.mxu0 %vm335_vm1, %v1263_v26  ;;  %v909_v50 = vpop.permute.xlu0 %908 }
 0x145   : > { %880 = vmatpush.bf16.msrb.mxu0 %v825_v39  ;;  %v493_v23 = vpop.f32.mrf.mxu2 }
 0x146   : > { %v895_v54 = vpop.permute.xlu2 %894 }
 0x147   : > { %v911_v51 = vpop.permute.xlu1 %910  ;;  %v919_v32 = vsel %vm918_vm7, %v895_v54, %v897_v49 }
 0x148   : > { %v924_v52 = vsel %vm918_vm7, %v909_v50, %v911_v51 }
 0x149   : > { %881 = vmatpush.bf16.msrb.mxu0 %v819_v27  ;;  %960 = vmatpush.bf16.msrb.mxu2 %v924_v52 }
 0x14c   : > { %v813_v53 = vpop.permute.xlu0 %812 }
 0x14d   : > { %882 = vmatpush.bf16.msrb.mxu0 %v813_v53  ;;  %v830_v56 = vsel %vm826_vm6, %v811_v30, %v813_v53 }
 0x14e   : > { %869 = vmatpush.bf16.msra.mxu3 %v830_v56  ;;  %v1007_v63 = vpop.permute.xlu2 %1006 }
 0x14f   : > { %v903_v55 = vpop.permute.xlu1 %902 }
 0x150   : > { %v922_v57 = vsel %vm918_vm7, %v903_v55, %v905_v42 }
 0x151   : > { %961 = vmatpush.bf16.msrb.mxu2 %v922_v57 }
 0x154   : > { %v907_v59 = vpop.permute.xlu0 %906 }
 0x155   : > { %v923_v61 = vsel %vm918_vm7, %v907_v59, %v909_v50 }
 0x156   : > { %947 = vmatpush.bf16.msrb.mxu1 %v923_v61  ;;  %v1001_v6 = vpop.permute.xlu2 %1000 }
 0x157   : > { %v807_v60 = vpop.permute.xlu1 %806 }
 0x158   : > { %883 = vmatpush.bf16.msrb.mxu0 %v807_v60  ;;  %v828_v62 = vsel %vm826_vm6, %v1684_v13, %v807_v60 }
 0x159   : > { %870 = vmatpush.bf16.msra.mxu3 %v828_v62 }
 0x15b   : > { %1270 = vmatmul.msk.bf16.vlgmr.msrb.gmra.mxu0 %vm335_vm1, %v1267_v36 }
 0x15c   : > { %1269 = vmatmul.msk.bf16.vlgmr.msra.gmra.mxu3 %vm335_vm1, %v1267_v36  ;;  %v899_v18 = vpop.permute.xlu0 %898  ;;  %v417_v36 = vpop.f32.mrf.mxu0 }
 0x15d   : > { %972 = vmatpush.bf16.msrb.mxu3 %v917_v44  ;;  %v920_v5 = vsel %vm918_vm7, %v897_v49, %v899_v18  ;;  %v504_v21 = vpop.f32.mrf.mxu3 }
 0x15e   : > { %962 = vmatpush.bf16.msrb.mxu2 %v920_v5  ;;  %v995_v25 = vpop.permute.xlu2 %994  ;;  %v522_v27 = vadd.f32 %v504_v21, %v416_v22 }
 0x15f   : > { %v901_v4 = vpop.permute.xlu1 %900 }
 0x160   : > { %v921_v11 = vsel %vm918_vm7, %v901_v4, %v903_v55 }
 0x161   : > { %973 = vmatpush.bf16.msrb.mxu3 %v911_v51  ;;  %948 = vmatpush.bf16.msrb.mxu1 %v921_v11 }
 0x162   : > { %1273 = vmatmul.msk.bf16.vlgmr.msrb.gmra.mxu2 %vm335_vm1, %v1271_v8 }
 0x163   : > { %v583_v44 = vpop.f32.mrf.mxu1 }
 0x164   : > { %v1009_v31 = vpop.permute.xlu0 %1008  ;;  %v596_v38 = vpop.f32.mrf.mxu2  ;;  %v613_v45 = vadd.f32 %v583_v44, %v521_v12 }
 0x165   : > { %974 = vmatpush.bf16.msrb.mxu3 %v905_v42  ;;  %949 = vmatpush.bf16.msrb.mxu1 %v919_v32  ;;  %v1018_v14 = vsel %vm1010_vm8, %v1007_v63, %v1009_v31  ;;  %v506_v37 = vpop.f32.mrf.mxu3  ;;  %v614_v39 = vadd.f32 %v596_v38, %v522_v27  ;;  %v517_v46 = vpop.f32.mrf.mxu0 }
 0x166   : > { %1064 = vmatpush.bf16.msra.mxu2 %v1009_v31  ;;  %v523_v48 = vadd.f32 %v517_v46, %v429_v35  ;;  %v987_v54 = vpop.permute.xlu2 %986 }
 0x167   : > { %v1003_v13 = vpop.permute.xlu1 %1002 }
 0x168   : > { %1272 = vmatmul.msk.bf16.vlgmr.msrb.gmra.mxu1 %vm335_vm1, %v1271_v8  ;;  %v1016_v30 = vsel %vm1010_vm8, %v1001_v6, %v1003_v13 }
 0x169   : > { %975 = vmatpush.bf16.msrb.mxu3 %v899_v18  ;;  %1051 = vmatpush.bf16.msra.mxu1 %v1018_v14 }
 0x16a   : > { %1065 = vmatpush.bf16.msra.mxu2 %v1003_v13 }
 0x16b   : > { %v585_v56 = vpop.f32.mrf.mxu1 }
 0x16c   : > { %1274 = vmatmul.msk.bf16.vlgmr.msrb.gmra.mxu3 %vm335_vm1, %v1271_v8  ;;  %v1005_v26 = vpop.permute.xlu0 %1004  ;;  %v598_v49 = vpop.f32.mrf.mxu2  ;;  %v1085_v56 = vld [vmem:[%s212_s28] sm:$0x3f] }
 0x16d   : > { %1052 = vmatpush.bf16.msra.mxu1 %v1016_v30  ;;  %v1017_v29 = vsel %vm1010_vm8, %v1005_v26, %v1007_v63  ;;  %v609_v47 = vpop.f32.mrf.mxu3  ;;  %v519_v58 = vpop.f32.mrf.mxu0 }
 0x16e   : > { %1038 = vmatpush.bf16.msra.mxu0 %v1017_v29  ;;  %v615_v51 = vadd.f32 %v609_v47, %v523_v48 }
 0x16f   : > { %v997_v28 = vpop.permute.xlu1 %996 }
 0x170   : > { %1066 = vmatpush.bf16.msra.mxu2 %v997_v28  ;;  %v1014_v33 = vsel %vm1010_vm8, %v995_v25, %v997_v28 }
 0x171   : > { %1053 = vmatpush.bf16.msra.mxu1 %v1014_v33 }
 0x174   : > { %v999_v40 = vpop.permute.xlu0 %998 }
 0x175   : > { %v1015_v42 = vsel %vm1010_vm8, %v999_v40, %v1001_v6  ;;  %v611_v59 = vpop.f32.mrf.mxu3 }
 0x176   : > { %1039 = vmatpush.bf16.msra.mxu0 %v1015_v42 }
 0x177   : > { %v991_v41 = vpop.permute.xlu1 %990 }
 0x178   : > { %1067 = vmatpush.bf16.msra.mxu2 %v991_v41  ;;  %v688_v62 = vpop.f32.mrf.mxu1 }
 0x179   : > { %v706_v63 = vadd.f32 %v688_v62, %v614_v39 }
 0x17b   : > { %1278 = vmatmul.msk.bf16.vlgmr.msra.gmra.mxu2 %vm335_vm1, %v1275_v43 }
 0x17c   : > { %v993_v50 = vpop.permute.xlu0 %992 }
 0x17d   : > { %v1013_v53 = vsel %vm1010_vm8, %v993_v50, %v995_v25 }
 0x17e   : > { %1040 = vmatpush.bf16.msra.mxu0 %v1013_v53  ;;  %v701_v60 = vpop.f32.mrf.mxu2  ;;  %v675_v0 = vpop.f32.mrf.mxu0 }
 0x17f   : > { %v989_v52 = vpop.permute.xlu1 %988  ;;  %v707_v61 = vadd.f32 %v701_v60, %v615_v51  ;;  %v705_v1 = vadd.f32 %v675_v0, %v613_v45 }
 0x180   : > { %v1012_v55 = vsel %vm1010_vm8, %v989_v52, %v991_v41  ;;  %v1011_v57 = vsel %vm1010_vm8, %v987_v54, %v989_v52  ;;  %v690_v3 = vpop.f32.mrf.mxu1 }
 0x181   : > { %1054 = vmatpush.bf16.msra.mxu1 %v1012_v55 }
 0x182   : > { %1041 = vmatpush.bf16.msra.mxu0 %v1011_v57 }
 0x184   : > { %1277 = vmatmul.msk.bf16.vlgmr.msra.gmra.mxu1 %vm335_vm1, %v1275_v43 }
 0x185   : > { %1276 = vmatmul.msk.bf16.vlgmr.msra.gmra.mxu0 %vm335_vm1, %v1275_v43 }
 0x186   : > { %v703_v2 = vpop.f32.mrf.mxu2  ;;  %v677_v7 = vpop.f32.mrf.mxu0 }
 0x193   : > { %v1080_v27 = vpop.permute.xlu0 %1079 }
 0x1ae   : > { %v767_v18 = vpop.f32.mrf.mxu3 }
 0x1af   : > { %v797_v4 = vadd.f32 %v767_v18, %v705_v1 }
 0x1b6   : > { %v769_v11 = vpop.f32.mrf.mxu3 }
 0x1b7   : > { %v859_v5 = vpop.f32.mrf.mxu2 }
 0x1b8   : > { %v889_v8 = vadd.f32 %v859_v5, %v797_v4 }
 0x1bf   : > { %v861_v20 = vpop.f32.mrf.mxu2 }
 0x1c0   : > { %v793_v6 = vpop.f32.mrf.mxu1 }
 0x1c1   : > { %v780_v9 = vpop.f32.mrf.mxu0  ;;  %v799_v21 = vadd.f32 %v793_v6, %v707_v61 }
 0x1c2   : > { %v798_v22 = vadd.f32 %v780_v9, %v706_v63 }
 0x1c8   : > { %v795_v19 = vpop.f32.mrf.mxu1 }
 0x1c9   : > { %v782_v32 = vpop.f32.mrf.mxu0 }
 0x1d8   : > { %v885_v10 = vpop.f32.mrf.mxu0 }
 0x1d9   : > { %v891_v30 = vadd.f32 %v885_v10, %v799_v21 }
 0x1df   : > { %v872_v12 = vpop.f32.mrf.mxu3 }
 0x1e0   : > { %v887_v31 = vpop.f32.mrf.mxu0  ;;  %v890_v25 = vadd.f32 %v872_v12, %v798_v22 }
 0x1e5   : > { %v951_v13 = vpop.f32.mrf.mxu1  ;;  %v964_v14 = vpop.f32.mrf.mxu2 }
 0x1e6   : > { %v982_v29 = vadd.f32 %v964_v14, %v890_v25  ;;  %v981_v37 = vadd.f32 %v951_v13, %v889_v8 }
 0x1e7   : > { %v874_v15 = vpop.f32.mrf.mxu3 }
 0x1ed   : > { %v953_v24 = vpop.f32.mrf.mxu1  ;;  %v966_v16 = vpop.f32.mrf.mxu2 }
 0x1ef   : > { %v977_v35 = vpop.f32.mrf.mxu3 }
 0x1f0   : > { %v983_v23 = vadd.f32 %v977_v35, %v891_v30 }
 0x1f7   : > { %v979_v17 = vpop.f32.mrf.mxu3 }
 0x1fe   : > { %v1069_v26 = vpop.f32.mrf.mxu2 }
 0x1ff   : > { %v1075_v28 = vadd.f32 %v1069_v26, %v983_v23 }
 0x201   : > { %v1084_v33 = vadd.f32 %v1080_v27, %v1075_v28  ;;  %v1056_v34 = vpop.f32.mrf.mxu1 }
 0x202   : > { %v1074_v36 = vadd.f32 %v1056_v34, %v982_v29  ;;  %v1043_v39 = vpop.f32.mrf.mxu0 }
 0x203   : > { %1313 = vtanh.f32 %v1084_v33  ;;  %1111 = vst.sshfl [vmem:[#allocation1 + $0x10] sm:$0xff pattern:$0x73625140] %v1084_v33  ;;  %v1073_v40 = vadd.f32 %v1043_v39, %v981_v37 }
 0x204   : > { %v1083_v38 = vadd.f32 %v1080_v27, %v1074_v36 }
 0x205   : > { %v1082_v42 = vadd.f32 %v1080_v27, %v1073_v40 }
 0x206   : > { %1315 = vtanh.f32 %v1083_v38  ;;  %1110 = vst.sshfl [vmem:[#allocation1 + $0x8] sm:$0xff pattern:$0x73625140] %v1083_v38  ;;  %v1071_v41 = vpop.f32.mrf.mxu2 }
 0x207   : > { %1317 = vtanh.f32 %v1082_v42  ;;  %1109 = vst.sshfl [vmem:[#allocation1] sm:$0xff pattern:$0x73625140] %v1082_v42 }
 0x209   : > { %v1314_v43 = vpop.eup %1313  ;;  %v1058_v44 = vpop.f32.mrf.mxu1 }
 0x20a   : > { %v1093_v45 = vmul.f32 1.442695, %v1314_v43  ;;  %v1045_v47 = vpop.f32.mrf.mxu0 }
 0x20c   : > { %v1316_v46 = vpop.eup %1315  ;;  %1319 = vpow2.f32 %v1093_v45 }
 0x20d   : > { %v1091_v48 = vmul.f32 1.442695, %v1316_v46  ;;  %v1318_v49 = vpop.eup %1317 }
 0x20e   : > { %v1089_v50 = vmul.f32 1.442695, %v1318_v49  ;;  %v1113_v60 = vld [vmem:[#allocation1 + $0x1] ss:$4 sm:$0xff] }
 0x20f   : > { %1321 = vpow2.f32 %v1091_v48 }
 0x210   : > { %1323 = vpow2.f32 %v1089_v50 }
 0x212   : > { %v1320_v51 = vpop.eup %1319 }
 0x213   : > { %v1099_v55 = vrot.slane %v1320_v51, 4 }
 0x215   : > { %v1322_v52 = vpop.eup %1321 }
 0x216   : > { %v1098_v53 = vrot.slane %v1322_v52, 6  ;;  %v1324_v54 = vpop.eup %1323 }
 0x218   : > { %v1101_v57 = vsel %vm1100_vm9, %v1324_v54, %v1098_v53 }
 0x219   : > { %v1103_v58 = vsel %vm1102_vm11, %v1101_v57, %v1099_v55 }
 0x21a   : > { %v1105_v59 = vmul.f32 %v1103_v58, %v1085_v56 }
 0x21c   : > { %v1115_v61 = vadd.f32 %v1113_v60, %v1105_v59 }
 0x21e   : > { %1120 = vst.msk [vmem:[%s217_s30] sm:$0x3f] %vm1119_vm14, %v1115_v61 }
 0x21f PF: > { %s14_s15 = sadd.s32 1, %s1331_s15  }
 0x220   : > { %p11_p4 = scmp.ge.s32.totalorder %s14_s15, 4  }
 0x222   :  { %13 = sbr.rel (!%p11_p4) target bundleno = 1 (0x1), region = 78 }

// kernel: conditional_affine_coupling_2d.6
= control target key start
LH: loop header
LB: loop body
LE: loop exit
PB: predicated region body
PF: predicated region fallthrough
CT: control target
= control target key end

     0   :  { %s2486_s18 = smov 0   ;;  %s3366_s0 = inlined_call_operand.vmem [shape: bf16[2,6,512], index: 0, kind: input, shape index: {}]   ;;  %s3367_s1 = inlined_call_operand.vmem [shape: bf16[9,64,6], index: 1, kind: input, shape index: {}]   ;;  %s3368_s2 = inlined_call_operand.vmem [shape: f32[1,384], index: 2, kind: input, shape index: {}]   ;;  %s3369_s3 = inlined_call_operand.vmem [shape: bf16[2,64,384], index: 3, kind: output, shape index: {0}]   ;;  %s3370_s4 = inlined_call_operand.vmem [shape: f32[2,64,1], index: 4, kind: output, shape index: {1}]   ;;  %s3371_s5 = inlined_call_operand.vmem [shape: f32[2,64,1], index: 5, kind: output, shape index: {2}]  }
   0x1 LB: > { %s2051_s19 = sadd.s32 4294967295, %s2446_s18   ;;  %p2055_p0 = scmp.ge.s32.totalorder %s2446_s18, 1  ;;  %s2446_s18 = sphi %s2486_s18, %s16_s18  }
   0x2   : > { %p192_p1 = scmp.lt.s32.totalorder %s2446_s18, 3 }
   0x4   : > { %p193_p2 = pnand %p2055_p0, %p192_p1 }
   0x6   : > { %196 = sbr.rel (%p193_p2) target bundleno = 839 (0x347), region = 32 }
   0xb   : > { %p230_p3 = scmp.lt.s32.totalorder %s2051_s19, 1  ;;  %s2448_s24 = smov 127   ;;  %vm587_vm0 = vcmask 1031168   ;;  %vm308_vm1 = vcmask 1039360   ;;  %vm325_vm2 = vcmask 1042432   ;;  %v2388_v24 = vld [vmem:[%s3367_s1 + $0x20] sm:$0xff] }
   0xc   : > { %s2449_s25 = smov 126   ;;  %s2450_s26 = smov 110   ;;  %v2389_v25 = vld [vmem:[%s3367_s1 + $0x28] sm:$0xff]  ;;  %vm312_vm3 = vcmask 48128   ;;  %vm760_vm4 = vcmask 900096   ;;  %v2390_v37 = vld [vmem:[%s3367_s1 + $0x30] sm:$0xff] }
   0xd   : > { %s3375_s19 = smov (!%p230_p3, %s2051_s19), 1  ;;  %s2451_s27 = smov 109   ;;  %v2391_v41 = vld [vmem:[%s3367_s1 + $0x38] sm:$0xff]  ;;  %v2384_v46 = vld [vmem:[%s3367_s1] sm:$0xff]  ;;  %v2385_v49 = vld [vmem:[%s3367_s1 + $0x8] sm:$0xff]  ;;  %vm933_vm5 = vcmask 891904  }
   0xe   : > { %s2381_s20 = sshll.u32 %s3375_s19, 4  ;;  %s2452_s28 = smov 108   ;;  %v2392_v47 = vld [vmem:[%s3367_s1 + $0x40] sm:$0xff]  ;;  %v2393_v50 = vld [vmem:[%s3367_s1 + $0x48] sm:$0xff]  ;;  %v2386_v58 = vld [vmem:[%s3367_s1 + $0x10] sm:$0xff]  ;;  %vm1106_vm6 = vcmask 883712  }
   0xf   : > { %s234_s23 = scalar_lea.vmem %s3366_s0, %s2381_s20  ;;  %s2453_s29 = smov 92   ;;  %v2394_v59 = vld [vmem:[%s3367_s1 + $0x50] sm:$0xff]  ;;  %v2387_v63 = vld [vmem:[%s3367_s1 + $0x18] sm:$0xff]  ;;  %vm1279_vm7 = vcmask 752640   ;;  %vm1452_vm8 = vcmask 744448   ;;  %vm1625_vm9 = vcmask 736256  }
  0x10   : > { %v252_v0 = vld [vmem:[%s234_s23 + $0x8] sm:$0x77]  ;;  %v251_v1 = vld [vmem:[%s234_s23] sm:$0x77]  ;;  %s2454_s30 = smov 91   ;;  %s2455_s20 = smov 90  }
  0x11   : > { %v294_v2 = vunpack.c.l.b16 %v252_v0  ;;  %v292_v3 = vunpack.c.l.b16 %v251_v1  ;;  %v295_v6 = vunpack.c.h.b16 %v252_v0  ;;  %v293_v7 = vunpack.c.h.b16 %v251_v1  ;;  %v2395_v0 = vld [vmem:[%s3367_s1 + $0x58] sm:$0xff]  ;;  %v2634_v1 = vld [vmem:[%s3367_s1 + $0x60] sm:$0xff]  ;;  %s2423_s12 = smul.u32 96, %s3375_s19  ;;  %s2382_s16 = sshll.u32 %s3375_s19, 6 }
  0x12   : > { %s244_s21 = scalar_lea.vmem %s3370_s4, %s2382_s16  ;;  %vm1857_vm10 = vcmask 7168  }
  0x13   : > { %v2500_v4 = vpack.c.b16 %v294_v2, %v294_v2  ;;  %v2502_v5 = vpack.c.b16 %v292_v3, %v292_v3  ;;  %v2507_v8 = vpack.c.b16 %v295_v6, %v295_v6  ;;  %v2509_v9 = vpack.c.b16 %v293_v7, %v293_v7  ;;  %v2647_v3 = vld [vmem:[%s3367_s1 + $0x68] sm:$0xff]  ;;  %s3248_s15 = scalar_lea.vmem %s3369_s3, %s2423_s12 }
  0x15   : > { %304 = vrot.lane.b32.xlu1 %v2500_v4, %s2448_s24  ;;  %300 = vrot.lane.b32.xlu0 %v2502_v5, %s2448_s24  ;;  %v455_v26 = vsel %vm325_vm2, %v2502_v5, 0  ;;  %v461_v27 = vsel %vm325_vm2, %v2500_v4, 0  ;;  %v458_v39 = vsel %vm325_vm2, %v2509_v9, 0 }
  0x16   : > { %579 = vrot.lane.b32.xlu2 %v2502_v5, %s2449_s25 }
  0x1d   : > { %306 = vrot.lane.b32.xlu1 %v2507_v8, %s2448_s24  ;;  %302 = vrot.lane.b32.xlu0 %v2509_v9, %s2448_s24  ;;  %s3337_s24 = scalar_lea.vmem %s3371_s5, %s2382_s16 }
  0x1e   : > { %581 = vrot.lane.b32.xlu2 %v2509_v9, %s2449_s25 }
  0x25   : > { %583 = vrot.lane.b32.xlu0 %v2500_v4, %s2449_s25  ;;  %754 = vrot.lane.b32.xlu1 %v2509_v9, %s2450_s26 }
  0x26   : > { %756 = vrot.lane.b32.xlu2 %v2500_v4, %s2450_s26 }
  0x2d   : > { %752 = vrot.lane.b32.xlu1 %v2502_v5, %s2450_s26  ;;  %585 = vrot.lane.b32.xlu0 %v2507_v8, %s2449_s25 }
  0x2e   : > { %758 = vrot.lane.b32.xlu2 %v2507_v8, %s2450_s26 }
  0x35   : > { %929 = vrot.lane.b32.xlu0 %v2500_v4, %s2451_s27  ;;  %931 = vrot.lane.b32.xlu1 %v2507_v8, %s2451_s27 }
  0x36   : > { %925 = vrot.lane.b32.xlu2 %v2502_v5, %s2451_s27 }
  0x3d   : > { %927 = vrot.lane.b32.xlu0 %v2509_v9, %s2451_s27  ;;  %1098 = vrot.lane.b32.xlu1 %v2502_v5, %s2452_s28 }
  0x3e   : > { %1100 = vrot.lane.b32.xlu2 %v2509_v9, %s2452_s28 }
  0x45   : > { %1273 = vrot.lane.b32.xlu1 %v2509_v9, %s2453_s29  ;;  %1271 = vrot.lane.b32.xlu0 %v2502_v5, %s2453_s29 }
  0x46   : > { %1102 = vrot.lane.b32.xlu2 %v2500_v4, %s2452_s28 }
  0x4d   : > { %1275 = vrot.lane.b32.xlu1 %v2500_v4, %s2453_s29  ;;  %1104 = vrot.lane.b32.xlu0 %v2507_v8, %s2452_s28 }
  0x4e   : > { %1446 = vrot.lane.b32.xlu2 %v2509_v9, %s2454_s30 }
  0x55   : > { %1277 = vrot.lane.b32.xlu1 %v2507_v8, %s2453_s29  ;;  %1448 = vrot.lane.b32.xlu0 %v2500_v4, %s2454_s30 }
  0x56   : > { %1444 = vrot.lane.b32.xlu2 %v2502_v5, %s2454_s30 }
  0x5d   : > { %1450 = vrot.lane.b32.xlu0 %v2507_v8, %s2454_s30  ;;  %1621 = vrot.lane.b32.xlu1 %v2500_v4, %s2455_s20 }
  0x5e   : > { %1623 = vrot.lane.b32.xlu2 %v2507_v8, %s2455_s20 }
  0x65   : > { %1617 = vrot.lane.b32.xlu0 %v2502_v5, %s2455_s20  ;;  %1619 = vrot.lane.b32.xlu1 %v2509_v9, %s2455_s20 }
  0x70   : > { %v580_v10 = vpop.permute.xlu2 %579 }
  0x78   : > { %v582_v13 = vpop.permute.xlu2 %581 }
  0x79   : > { %v588_v14 = vsel %vm587_vm0, %v580_v10, %v582_v13 }
  0x7a   : > { %v604_v23 = vsel %vm325_vm2, %v588_v14, 0 }
  0x80   : > { %v757_v28 = vpop.permute.xlu2 %756 }
  0x87   : > { %v305_v11 = vpop.permute.xlu1 %304  ;;  %v301_v12 = vpop.permute.xlu0 %300 }
  0x88   : > { %v759_v44 = vpop.permute.xlu2 %758 }
  0x89   : > { %v763_v45 = vsel %vm760_vm4, %v757_v28, %v759_v44 }
  0x8a   : > { %v783_v48 = vsel %vm325_vm2, %v763_v45, 0  ;;  %v2400_v45 = vld [vmem:[%s3367_s1 + $0x80] sm:$0xff] }
  0x8f   : > { %v307_v15 = vpop.permute.xlu1 %306  ;;  %v303_v16 = vpop.permute.xlu0 %302 }
  0x90   : > { %v309_v17 = vsel %vm308_vm1, %v301_v12, %v303_v16  ;;  %v310_v18 = vsel %vm308_vm1, %v303_v16, %v305_v11  ;;  %v311_v19 = vsel %vm308_vm1, %v305_v11, %v307_v15  ;;  %v926_v60 = vpop.permute.xlu2 %925 }
  0x91   : > { %v327_v20 = vsel %vm325_vm2, %v309_v17, 0  ;;  %v330_v21 = vsel %vm325_vm2, %v310_v18, 0  ;;  %v333_v22 = vsel %vm325_vm2, %v311_v19, 0  ;;  %v2674_v18 = vld [vmem:[%s3367_s1 + $0x70] sm:$0xff] }
  0x92   : > { %342 = vmatpush.bf16.msra.mxu0 %v327_v20  ;;  %2420 = vmatpush.bf16.msra.mxu3 %v327_v20 }
  0x93   : > { %2421 = vmatpush.bf16.msra.mxu1 %v330_v21  ;;  %2422 = vmatpush.bf16.msra.mxu2 %v333_v22 }
  0x95   : > { %2087 = vmatmul.msk.bf16.vlgmr.msra.gmra.mxu0 %vm312_vm3, %v2388_v24  ;;  %2088 = vmatmul.msk.bf16.vlgmr.msra.gmra.mxu3 %vm312_vm3, %v2389_v25 }
  0x96   : > { %371 = vmatpush.bf16.msrb.mxu0 %v330_v21  ;;  %2092 = vmatmul.msk.bf16.vlgmr.msra.gmra.mxu1 %vm312_vm3, %v2389_v25 }
  0x97   : > { %619 = vmatpush.bf16.msrb.mxu2 %v604_v23  ;;  %470 = vmatpush.bf16.msrb.mxu3 %v455_v26  ;;  %v584_v29 = vpop.permute.xlu0 %583  ;;  %v755_v30 = vpop.permute.xlu1 %754 }
  0x98   : > { %2096 = vmatmul.msk.bf16.vlgmr.msra.gmra.mxu2 %vm312_vm3, %v2389_v25  ;;  %v589_v31 = vsel %vm587_vm0, %v582_v13, %v584_v29  ;;  %528 = vmatpush.bf16.msrb.mxu1 %v461_v27  ;;  %v762_v32 = vsel %vm760_vm4, %v755_v30, %v757_v28  ;;  %v1101_v8 = vpop.permute.xlu2 %1100 }
  0x99   : > { %v607_v33 = vsel %vm325_vm2, %v589_v31, 0  ;;  %v780_v34 = vsel %vm325_vm2, %v762_v32, 0 }
  0x9a   : > { %400 = vmatpush.bf16.msra.mxu0 %v333_v22 }
  0x9b   : > { %648 = vmatpush.bf16.msra.mxu3 %v607_v33  ;;  %821 = vmatpush.bf16.msra.mxu2 %v780_v34 }
  0x9f   : > { %v753_v35 = vpop.permute.xlu1 %752  ;;  %v586_v40 = vpop.permute.xlu0 %585 }
  0xa0   : > { %v761_v36 = vsel %vm760_vm4, %v753_v35, %v755_v30  ;;  %v590_v42 = vsel %vm587_vm0, %v584_v29, %v586_v40  ;;  %v1103_v16 = vpop.permute.xlu2 %1102  ;;  %v2703_v35 = vld [vmem:[%s3367_s1 + $0x78] sm:$0xff] }
  0xa1   : > { %v777_v38 = vsel %vm325_vm2, %v761_v36, 0  ;;  %v610_v43 = vsel %vm325_vm2, %v590_v42, 0  ;;  %v1108_v19 = vsel %vm1106_vm6, %v1101_v8, %v1103_v16 }
  0xa2   : > { %792 = vmatpush.bf16.msra.mxu1 %v777_v38  ;;  %v1126_v22 = vsel %vm325_vm2, %v1108_v19, 0 }
  0xa5   : > { %2089 = vmatmul.msk.bf16.gmra.mxu3 %vm312_vm3, %v2390_v37  ;;  %2091 = vmatmul.msk.bf16.vlgmr.msrb.gmra.mxu0 %vm312_vm3, %v2388_v24 }
  0xa6   : > { %2093 = vmatmul.msk.bf16.gmra.mxu1 %vm312_vm3, %v2390_v37  ;;  %499 = vmatpush.bf16.msrb.mxu0 %v458_v39 }
  0xa7   : > { %v930_v51 = vpop.permute.xlu0 %929  ;;  %v932_v52 = vpop.permute.xlu1 %931 }
  0xa8   : > { %2097 = vmatmul.msk.bf16.gmra.mxu2 %vm312_vm3, %v2390_v37  ;;  %v936_v53 = vsel %vm933_vm5, %v930_v51, %v932_v52 }
  0xa9   : > { %v956_v54 = vsel %vm325_vm2, %v936_v53, 0 }
  0xaf   : > { %v928_v55 = vpop.permute.xlu0 %927  ;;  %v1099_v5 = vpop.permute.xlu1 %1098 }
  0xb0   : > { %v935_v56 = vsel %vm933_vm5, %v928_v55, %v930_v51  ;;  %v934_v61 = vsel %vm933_vm5, %v926_v60, %v928_v55  ;;  %v1107_v10 = vsel %vm1106_vm6, %v1099_v5, %v1101_v8 }
  0xb1   : > { %v953_v57 = vsel %vm325_vm2, %v935_v56, 0  ;;  %v950_v62 = vsel %vm325_vm2, %v934_v61, 0  ;;  %v1123_v12 = vsel %vm325_vm2, %v1107_v10, 0 }
  0xb5   : > { %2090 = vmatmul.msk.bf16.gmra.mxu3 %vm312_vm3, %v2391_v41  ;;  %2095 = vmatmul.msk.bf16.vlgmr.msra.gmra.mxu0 %vm312_vm3, %v2388_v24 }
  0xb6   : > { %2094 = vmatmul.msk.bf16.gmra.mxu1 %vm312_vm3, %v2391_v41  ;;  %677 = vmatpush.bf16.msra.mxu0 %v610_v43 }
  0xb7   : > { %v1274_v14 = vpop.permute.xlu1 %1273  ;;  %v1272_v20 = vpop.permute.xlu0 %1271 }
  0xb8   : > { %2098 = vmatmul.msk.bf16.gmra.mxu2 %vm312_vm3, %v2391_v41  ;;  %v1280_v23 = vsel %vm1279_vm7, %v1272_v20, %v1274_v14 }
  0xb9   : > { %v1296_v24 = vsel %vm325_vm2, %v1280_v23, 0 }
  0xbf   : > { %v1105_v28 = vpop.permute.xlu0 %1104  ;;  %v1276_v41 = vpop.permute.xlu1 %1275 }
  0xc0   : > { %v1109_v30 = vsel %vm1106_vm6, %v1103_v16, %v1105_v28  ;;  %v1281_v44 = vsel %vm1279_vm7, %v1274_v14, %v1276_v41 }
  0xc1   : > { %v1129_v31 = vsel %vm325_vm2, %v1109_v30, 0 }
  0xc5   : > { %2115 = vmatmul.msk.bf16.vlgmr.msrb.gmra.mxu3 %vm312_vm3, %v2384_v46  ;;  %2119 = vmatmul.msk.bf16.vlgmr.msrb.gmra.mxu0 %vm312_vm3, %v2384_v46 }
  0xc6   : > { %2123 = vmatmul.msk.bf16.vlgmr.msrb.gmra.mxu1 %vm312_vm3, %v2384_v46  ;;  %850 = vmatpush.bf16.msrb.mxu3 %v783_v48 }
  0xc7   : > { %994 = vmatpush.bf16.msrb.mxu1 %v953_v57  ;;  %965 = vmatpush.bf16.msrb.mxu0 %v950_v62  ;;  %v2401_v62 = vld [vmem:[%s3367_s1 + $0x88] sm:$0xff]  ;;  %v1278_v19 = vpop.permute.xlu1 %1277 }
  0xc8   : > { %2151 = vmatmul.msk.bf16.vlgmr.msrb.gmra.mxu2 %vm312_vm3, %v2392_v47 }
  0xc9   : > { %1023 = vmatpush.bf16.msrb.mxu2 %v956_v54 }
  0xd5   : > { %2116 = vmatmul.msk.bf16.gmra.mxu3 %vm312_vm3, %v2385_v49  ;;  %2120 = vmatmul.msk.bf16.gmra.mxu0 %vm312_vm3, %v2385_v49 }
  0xd6   : > { %2124 = vmatmul.msk.bf16.gmra.mxu1 %vm312_vm3, %v2385_v49 }
  0xd8   : > { %2152 = vmatmul.msk.bf16.gmra.mxu2 %vm312_vm3, %v2393_v50 }
  0xe5   : > { %2117 = vmatmul.msk.bf16.gmra.mxu3 %vm312_vm3, %v2386_v58  ;;  %2121 = vmatmul.msk.bf16.gmra.mxu0 %vm312_vm3, %v2386_v58 }
  0xe6   : > { %2125 = vmatmul.msk.bf16.gmra.mxu1 %vm312_vm3, %v2386_v58 }
  0xe8   : > { %2153 = vmatmul.msk.bf16.gmra.mxu2 %vm312_vm3, %v2394_v59 }
  0xf5   : > { %2118 = vmatmul.msk.bf16.gmra.mxu3 %vm312_vm3, %v2387_v63  ;;  %2122 = vmatmul.msk.bf16.gmra.mxu0 %vm312_vm3, %v2387_v63 }
  0xf6   : > { %2126 = vmatmul.msk.bf16.gmra.mxu1 %vm312_vm3, %v2387_v63 }
  0xf8   : > { %2154 = vmatmul.msk.bf16.gmra.mxu2 %vm312_vm3, %v2395_v0 }
 0x105   : > { %2155 = vmatmul.msk.bf16.vlgmr.msra.gmra.mxu3 %vm312_vm3, %v2392_v47  ;;  %2159 = vmatmul.msk.bf16.vlgmr.msra.gmra.mxu0 %vm312_vm3, %v2392_v47 }
 0x106   : > { %2187 = vmatmul.msk.bf16.vlgmr.msra.gmra.mxu1 %vm312_vm3, %v2634_v1  ;;  %1138 = vmatpush.bf16.msra.mxu3 %v1123_v12  ;;  %v1447_v12 = vpop.permute.xlu2 %1446 }
 0x107   : > { %1167 = vmatpush.bf16.msra.mxu0 %v1126_v22  ;;  %1196 = vmatpush.bf16.msra.mxu1 %v1129_v31  ;;  %v1282_v22 = vsel %vm1279_vm7, %v1276_v41, %v1278_v19 }
 0x108   : > { %2191 = vmatmul.msk.bf16.vlgmr.msra.gmra.mxu2 %vm312_vm3, %v2634_v1  ;;  %v1302_v23 = vsel %vm325_vm2, %v1282_v22, 0 }
 0x109   : > { %1311 = vmatpush.bf16.msra.mxu2 %v1296_v24 }
 0x10e   : > { %v1445_v28 = vpop.permute.xlu2 %1444 }
 0x10f   : > { %v1453_v31 = vsel %vm1452_vm8, %v1445_v28, %v1447_v12 }
 0x112   : > { %v2642_v2 = vpop.f32.mrf.mxu0 }
 0x113   : > { %v2649_v4 = vpop.f32.mrf.mxu1 }
 0x115   : > { %2156 = vmatmul.msk.bf16.gmra.mxu3 %vm312_vm3, %v2393_v50  ;;  %2160 = vmatmul.msk.bf16.gmra.mxu0 %vm312_vm3, %v2393_v50  ;;  %v1299_v50 = vsel %vm325_vm2, %v1281_v44, 0  ;;  %v1469_v44 = vsel %vm325_vm2, %v1453_v31, 0  ;;  %v2405_v31 = vld [vmem:[%s3367_s1 + $0xa8] sm:$0xff] }
 0x116   : > { %2188 = vmatmul.msk.bf16.gmra.mxu1 %vm312_vm3, %v2647_v3 }
 0x118   : > { %2192 = vmatmul.msk.bf16.gmra.mxu2 %vm312_vm3, %v2647_v3  ;;  %v2657_v6 = vpop.f32.mrf.mxu3 }
 0x11a   : > { %v2661_v9 = vpop.f32.mrf.mxu0 }
 0x11b   : > { %v2659_v7 = vpop.f32.mrf.mxu2  ;;  %v2664_v11 = vpop.f32.mrf.mxu1 }
 0x120   : > { %v2667_v13 = vpop.f32.mrf.mxu3 }
 0x122   : > { %v373_v17 = vpop.f32.mrf.mxu0 }
 0x123   : > { %v2669_v15 = vpop.f32.mrf.mxu2  ;;  %v2677_v21 = vpop.f32.mrf.mxu1 }
 0x125   : > { %2157 = vmatmul.msk.bf16.gmra.mxu3 %vm312_vm3, %v2394_v59  ;;  %2161 = vmatmul.msk.bf16.gmra.mxu0 %vm312_vm3, %v2394_v59 }
 0x126   : > { %2189 = vmatmul.msk.bf16.gmra.mxu1 %vm312_vm3, %v2674_v18 }
 0x128   : > { %2193 = vmatmul.msk.bf16.gmra.mxu2 %vm312_vm3, %v2674_v18  ;;  %v2688_v25 = vpop.f32.mrf.mxu3 }
 0x12a   : > { %v375_v27 = vpop.f32.mrf.mxu0 }
 0x12b   : > { %v2690_v26 = vpop.f32.mrf.mxu2  ;;  %v2692_v29 = vpop.f32.mrf.mxu1 }
 0x130   : > { %v2696_v32 = vpop.f32.mrf.mxu3 }
 0x132   : > { %v402_v34 = vpop.f32.mrf.mxu0 }
 0x133   : > { %v2698_v33 = vpop.f32.mrf.mxu2  ;;  %v2705_v36 = vpop.f32.mrf.mxu1 }
 0x135   : > { %2158 = vmatmul.msk.bf16.gmra.mxu3 %vm312_vm3, %v2395_v0  ;;  %2162 = vmatmul.msk.bf16.gmra.mxu0 %vm312_vm3, %v2395_v0 }
 0x136   : > { %2190 = vmatmul.msk.bf16.gmra.mxu1 %vm312_vm3, %v2703_v35 }
 0x138   : > { %2194 = vmatmul.msk.bf16.gmra.mxu2 %vm312_vm3, %v2703_v35  ;;  %v2713_v37 = vpop.f32.mrf.mxu3 }
 0x13a   : > { %v404_v39 = vpop.f32.mrf.mxu0 }
 0x13b   : > { %v2715_v38 = vpop.f32.mrf.mxu2  ;;  %v2717_v40 = vpop.f32.mrf.mxu1 }
 0x140   : > { %v2719_v42 = vpop.f32.mrf.mxu3 }
 0x142   : > { %v501_v46 = vpop.f32.mrf.mxu0 }
 0x143   : > { %v2721_v43 = vpop.f32.mrf.mxu2  ;;  %v2727_v47 = vadd.f32 %v501_v46, %v373_v17  ;;  %v530_v48 = vpop.f32.mrf.mxu1 }
 0x144   : > { %v2729_v49 = vadd.f32 %v530_v48, %v402_v34  ;;  %v1449_v17 = vpop.permute.xlu0 %1448 }
 0x145   : > { %2195 = vmatmul.msk.bf16.vlgmr.msrb.gmra.mxu3 %vm312_vm3, %v2634_v1  ;;  %2223 = vmatmul.msk.bf16.vlgmr.msrb.gmra.mxu0 %vm312_vm3, %v2400_v45  ;;  %v1454_v20 = vsel %vm1452_vm8, %v1447_v12, %v1449_v17 }
 0x146   : > { %2227 = vmatmul.msk.bf16.vlgmr.msrb.gmra.mxu1 %vm312_vm3, %v2400_v45  ;;  %1340 = vmatpush.bf16.msrb.mxu3 %v1299_v50 }
 0x147   : > { %1369 = vmatpush.bf16.msrb.mxu0 %v1302_v23  ;;  %1484 = vmatpush.bf16.msrb.mxu1 %v1469_v44 }
 0x148   : > { %2231 = vmatmul.msk.bf16.vlgmr.msrb.gmra.mxu2 %vm312_vm3, %v2400_v45  ;;  %v472_v51 = vpop.f32.mrf.mxu3 }
 0x149   : > { %v473_v53 = vadd.f32 %v472_v51, %v2642_v2 }
 0x14a   : > { %v503_v54 = vpop.f32.mrf.mxu0 }
 0x14b   : > { %v621_v52 = vpop.f32.mrf.mxu2  ;;  %v2738_v55 = vadd.f32 %v503_v54, %v375_v27  ;;  %v532_v56 = vpop.f32.mrf.mxu1 }
 0x14c   : > { %v2740_v57 = vadd.f32 %v621_v52, %v473_v53  ;;  %v2742_v58 = vadd.f32 %v532_v56, %v404_v39  ;;  %v2403_v56 = vld [vmem:[%s3367_s1 + $0x98] sm:$0xff] }
 0x150   : > { %v474_v59 = vpop.f32.mrf.mxu3 }
 0x151   : > { %v475_v60 = vadd.f32 %v474_v59, %v2661_v9 }
 0x152   : > { %v506_v63 = vpop.f32.mrf.mxu0 }
 0x153   : > { %v623_v61 = vpop.f32.mrf.mxu2  ;;  %v2751_v1 = vadd.f32 %v506_v63, %v2649_v4  ;;  %v535_v2 = vpop.f32.mrf.mxu1 }
 0x154   : > { %v2748_v0 = vadd.f32 %v623_v61, %v475_v60  ;;  %v2754_v5 = vadd.f32 %v535_v2, %v2659_v7 }
 0x155   : > { %2196 = vmatmul.msk.bf16.gmra.mxu3 %vm312_vm3, %v2647_v3  ;;  %2224 = vmatmul.msk.bf16.gmra.mxu0 %vm312_vm3, %v2401_v62 }
 0x156   : > { %2228 = vmatmul.msk.bf16.gmra.mxu1 %vm312_vm3, %v2401_v62 }
 0x158   : > { %2232 = vmatmul.msk.bf16.gmra.mxu2 %vm312_vm3, %v2401_v62  ;;  %v477_v8 = vpop.f32.mrf.mxu3 }
 0x159   : > { %v478_v9 = vadd.f32 %v477_v8, %v2657_v6  ;;  %v1472_v6 = vsel %vm325_vm2, %v1454_v20, 0 }
 0x15a   : > { %v508_v4 = vpop.f32.mrf.mxu0  ;;  %1513 = vmatpush.bf16.msrb.mxu2 %v1472_v6 }
 0x15b   : > { %v626_v10 = vpop.f32.mrf.mxu2  ;;  %v2765_v7 = vadd.f32 %v508_v4, %v2664_v11  ;;  %v537_v16 = vpop.f32.mrf.mxu1 }
 0x15c   : > { %v2762_v14 = vadd.f32 %v626_v10, %v478_v9  ;;  %v2768_v3 = vadd.f32 %v537_v16, %v2669_v15  ;;  %v2402_v15 = vld [vmem:[%s3367_s1 + $0x90] sm:$0xff] }
 0x160   : > { %v479_v24 = vpop.f32.mrf.mxu3 }
 0x161   : > { %v480_v11 = vadd.f32 %v479_v24, %v2667_v13 }
 0x162   : > { %v511_v30 = vpop.f32.mrf.mxu0 }
 0x163   : > { %v628_v27 = vpop.f32.mrf.mxu2  ;;  %v2782_v39 = vadd.f32 %v511_v30, %v2677_v21  ;;  %v540_v41 = vpop.f32.mrf.mxu1 }
 0x164   : > { %v2779_v34 = vadd.f32 %v628_v27, %v480_v11  ;;  %v2786_v45 = vadd.f32 %v540_v41, %v2690_v26  ;;  %v2868_v41 = vld [vmem:[%s3367_s1 + $0xc8] sm:$0xff] }
 0x165   : > { %2197 = vmatmul.msk.bf16.gmra.mxu3 %vm312_vm3, %v2674_v18  ;;  %2225 = vmatmul.msk.bf16.gmra.mxu0 %vm312_vm3, %v2402_v15 }
 0x166   : > { %2229 = vmatmul.msk.bf16.gmra.mxu1 %vm312_vm3, %v2402_v15 }
 0x168   : > { %2233 = vmatmul.msk.bf16.gmra.mxu2 %vm312_vm3, %v2402_v15  ;;  %v482_v13 = vpop.f32.mrf.mxu3 }
 0x169   : > { %v483_v21 = vadd.f32 %v482_v13, %v2688_v25 }
 0x16a   : > { %v513_v48 = vpop.f32.mrf.mxu0 }
 0x16b   : > { %v631_v46 = vpop.f32.mrf.mxu2  ;;  %v2797_v26 = vadd.f32 %v513_v48, %v2692_v29  ;;  %v542_v51 = vpop.f32.mrf.mxu1 }
 0x16c   : > { %v2794_v50 = vadd.f32 %v631_v46, %v483_v21  ;;  %v2800_v52 = vadd.f32 %v542_v51, %v2698_v33 }
 0x170   : > { %v484_v18 = vpop.f32.mrf.mxu3 }
 0x171   : > { %v485_v53 = vadd.f32 %v484_v18, %v2696_v32 }
 0x172   : > { %v516_v25 = vpop.f32.mrf.mxu0 }
 0x173   : > { %v633_v54 = vpop.f32.mrf.mxu2  ;;  %v2809_v60 = vadd.f32 %v516_v25, %v2705_v36  ;;  %v545_v29 = vpop.f32.mrf.mxu1 }
 0x174   : > { %v2806_v59 = vadd.f32 %v633_v54, %v485_v53  ;;  %v2812_v61 = vadd.f32 %v545_v29, %v2715_v38 }
 0x175   : > { %2198 = vmatmul.msk.bf16.gmra.mxu3 %vm312_vm3, %v2703_v35  ;;  %2226 = vmatmul.msk.bf16.gmra.mxu0 %vm312_vm3, %v2403_v56  ;;  %v1451_v35 = vpop.permute.xlu0 %1450 }
 0x176   : > { %2230 = vmatmul.msk.bf16.gmra.mxu1 %vm312_vm3, %v2403_v56  ;;  %v1455_v4 = vsel %vm1452_vm8, %v1449_v17, %v1451_v35 }
 0x177   : > { %v1475_v17 = vsel %vm325_vm2, %v1455_v4, 0 }
 0x178   : > { %2234 = vmatmul.msk.bf16.gmra.mxu2 %vm312_vm3, %v2403_v56  ;;  %v487_v32 = vpop.f32.mrf.mxu3 }
 0x179   : > { %v488_v62 = vadd.f32 %v487_v32, %v2713_v37  ;;  %v2404_v37 = vld [vmem:[%s3367_s1 + $0xa0] sm:$0xff] }
 0x17a   : > { %v518_v63 = vpop.f32.mrf.mxu0 }
 0x17b   : > { %v636_v33 = vpop.f32.mrf.mxu2  ;;  %v2821_v36 = vadd.f32 %v518_v63, %v2717_v40  ;;  %v547_v2 = vpop.f32.mrf.mxu1  ;;  %v2836_v40 = vld [vmem:[%s3367_s1 + $0xc0] sm:$0xff] }
 0x17c   : > { %v2823_v38 = vadd.f32 %v636_v33, %v488_v62  ;;  %v2826_v8 = vadd.f32 %v547_v2, %v2721_v43  ;;  %v2406_v33 = vld [vmem:[%s3367_s1 + $0xb0] sm:$0xff] }
 0x180   : > { %v489_v9 = vpop.f32.mrf.mxu3 }
 0x181   : > { %v490_v12 = vadd.f32 %v489_v9, %v2719_v42 }
 0x182   : > { %v679_v16 = vpop.f32.mrf.mxu0 }
 0x183   : > { %v638_v10 = vpop.f32.mrf.mxu2  ;;  %v2839_v43 = vadd.f32 %v679_v16, %v2729_v49  ;;  %v794_v19 = vpop.f32.mrf.mxu1 }
 0x184   : > { %v2841_v20 = vadd.f32 %v638_v10, %v490_v12  ;;  %v2844_v42 = vadd.f32 %v794_v19, %v2740_v57 }
 0x185   : > { %2259 = vmatmul.msk.bf16.vlgmr.msra.gmra.mxu3 %vm312_vm3, %v2404_v37  ;;  %2263 = vmatmul.msk.bf16.vlgmr.msra.gmra.mxu0 %vm312_vm3, %v2404_v37 }
 0x186   : > { %2267 = vmatmul.msk.bf16.vlgmr.msra.gmra.mxu1 %vm312_vm3, %v2404_v37  ;;  %1542 = vmatpush.bf16.msra.mxu3 %v1475_v17  ;;  %v1618_v37 = vpop.permute.xlu0 %1617 }
 0x188   : > { %2295 = vmatmul.msk.bf16.vlgmr.msra.gmra.mxu2 %vm312_vm3, %v2836_v40  ;;  %v650_v49 = vpop.f32.mrf.mxu3 }
 0x189   : > { %v700_v22 = vadd.f32 %v650_v49, %v2727_v47 }
 0x18a   : > { %v681_v23 = vpop.f32.mrf.mxu0 }
 0x18b   : > { %v823_v6 = vpop.f32.mrf.mxu2  ;;  %v2856_v57 = vadd.f32 %v681_v23, %v2742_v58  ;;  %v796_v11 = vpop.f32.mrf.mxu1 }
 0x18c   : > { %v2853_v24 = vadd.f32 %v823_v6, %v700_v22  ;;  %v2859_v27 = vadd.f32 %v796_v11, %v2748_v0 }
 0x190   : > { %v652_v15 = vpop.f32.mrf.mxu3 }
 0x191   : > { %v703_v28 = vadd.f32 %v652_v15, %v2738_v55  ;;  %v1622_v55 = vpop.permute.xlu1 %1621  ;;  %v2407_v15 = vld [vmem:[%s3367_s1 + $0xb8] sm:$0xff] }
 0x192   : > { %v684_v47 = vpop.f32.mrf.mxu0 }
 0x193   : > { %v825_v30 = vpop.f32.mrf.mxu2  ;;  %v2873_v44 = vadd.f32 %v684_v47, %v2754_v5  ;;  %v799_v0 = vpop.f32.mrf.mxu1 }
 0x194   : > { %v2870_v58 = vadd.f32 %v825_v30, %v703_v28  ;;  %v2876_v13 = vadd.f32 %v799_v0, %v2762_v14 }
 0x195   : > { %2260 = vmatmul.msk.bf16.gmra.mxu3 %vm312_vm3, %v2405_v31  ;;  %2264 = vmatmul.msk.bf16.gmra.mxu0 %vm312_vm3, %v2405_v31 }
 0x196   : > { %2268 = vmatmul.msk.bf16.gmra.mxu1 %vm312_vm3, %v2405_v31 }
 0x198   : > { %2296 = vmatmul.msk.bf16.gmra.mxu2 %vm312_vm3, %v2868_v41  ;;  %v655_v21 = vpop.f32.mrf.mxu3 }
 0x199   : > { %v706_v46 = vadd.f32 %v655_v21, %v2751_v1  ;;  %v1620_v54 = vpop.permute.xlu1 %1619 }
 0x19a   : > { %v686_v5 = vpop.f32.mrf.mxu0  ;;  %v1627_v56 = vsel %vm1625_vm9, %v1620_v54, %v1622_v55  ;;  %v1626_v19 = vsel %vm1625_vm9, %v1618_v37, %v1620_v54 }
 0x19b   : > { %v828_v48 = vpop.f32.mrf.mxu2  ;;  %v2887_v14 = vadd.f32 %v686_v5, %v2768_v3  ;;  %v801_v18 = vpop.f32.mrf.mxu1  ;;  %v1645_v29 = vsel %vm325_vm2, %v1627_v56, 0  ;;  %v1642_v22 = vsel %vm325_vm2, %v1626_v19, 0 }
 0x19c   : > { %v2884_v51 = vadd.f32 %v828_v48, %v706_v46  ;;  %v2890_v53 = vadd.f32 %v801_v18, %v2779_v34  ;;  %v1624_v3 = vpop.permute.xlu2 %1623  ;;  %1686 = vmatpush.bf16.msra.mxu1 %v1645_v29  ;;  %v2901_v34 = vld [vmem:[%s3367_s1 + $0xd0] sm:$0xff]  ;;  %1657 = vmatpush.bf16.msra.mxu0 %v1642_v22 }
 0x19d   : > { %v1628_v63 = vsel %vm1625_vm9, %v1622_v55, %v1624_v3 }
 0x19e   : > { %v1648_v9 = vsel %vm325_vm2, %v1628_v63, 0 }
 0x19f   : > { %1715 = vmatpush.bf16.msra.mxu2 %v1648_v9 }
 0x1a0   : > { %v657_v25 = vpop.f32.mrf.mxu3 }
 0x1a1   : > { %v709_v1 = vadd.f32 %v657_v25, %v2765_v7 }
 0x1a2   : > { %v689_v62 = vpop.f32.mrf.mxu0 }
 0x1a3   : > { %v830_v32 = vpop.f32.mrf.mxu2  ;;  %v2907_v35 = vadd.f32 %v689_v62, %v2786_v45  ;;  %v804_v7 = vpop.f32.mrf.mxu1 }
 0x1a4   : > { %v2904_v2 = vadd.f32 %v830_v32, %v709_v1  ;;  %v2911_v10 = vadd.f32 %v804_v7, %v2794_v50 }
 0x1a5   : > { %2261 = vmatmul.msk.bf16.gmra.mxu3 %vm312_vm3, %v2406_v33  ;;  %2265 = vmatmul.msk.bf16.gmra.mxu0 %vm312_vm3, %v2406_v33 }
 0x1a6   : > { %2269 = vmatmul.msk.bf16.gmra.mxu1 %vm312_vm3, %v2406_v33 }
 0x1a8   : > { %2297 = vmatmul.msk.bf16.gmra.mxu2 %vm312_vm3, %v2901_v34  ;;  %v660_v12 = vpop.f32.mrf.mxu3 }
 0x1a9   : > { %v712_v45 = vadd.f32 %v660_v12, %v2782_v39  ;;  %v2995_v12 = vld [vmem:[%s3367_s1 + $0xe8] sm:$0xff] }
 0x1aa   : > { %v691_v16 = vpop.f32.mrf.mxu0 }
 0x1ab   : > { %v833_v4 = vpop.f32.mrf.mxu2  ;;  %v2923_v17 = vadd.f32 %v691_v16, %v2800_v52  ;;  %v806_v49 = vpop.f32.mrf.mxu1  ;;  %v2936_v52 = vld [vmem:[%s3367_s1 + $0xd8] sm:$0xff] }
 0x1ac   : > { %v2920_v50 = vadd.f32 %v833_v4, %v712_v45  ;;  %v2927_v6 = vadd.f32 %v806_v49, %v2806_v59 }
 0x1b0   : > { %v662_v23 = vpop.f32.mrf.mxu3 }
 0x1b1   : > { %v715_v39 = vadd.f32 %v662_v23, %v2797_v26 }
 0x1b2   : > { %v694_v28 = vpop.f32.mrf.mxu0 }
 0x1b3   : > { %v835_v11 = vpop.f32.mrf.mxu2  ;;  %v2941_v59 = vadd.f32 %v694_v28, %v2812_v61  ;;  %v809_v31 = vpop.f32.mrf.mxu1 }
 0x1b4   : > { %v2938_v30 = vadd.f32 %v835_v11, %v715_v39  ;;  %v2944_v47 = vadd.f32 %v809_v31, %v2823_v38 }
 0x1b5   : > { %2262 = vmatmul.msk.bf16.gmra.mxu3 %vm312_vm3, %v2407_v15  ;;  %2266 = vmatmul.msk.bf16.gmra.mxu0 %vm312_vm3, %v2407_v15 }
 0x1b6   : > { %2270 = vmatmul.msk.bf16.gmra.mxu1 %vm312_vm3, %v2407_v15 }
 0x1b8   : > { %2298 = vmatmul.msk.bf16.gmra.mxu2 %vm312_vm3, %v2936_v52  ;;  %v665_v26 = vpop.f32.mrf.mxu3 }
 0x1b9   : > { %v718_v0 = vadd.f32 %v665_v26, %v2809_v60  ;;  %v2964_v60 = vld [vmem:[%s3367_s1 + $0xe0] sm:$0xff] }
 0x1ba   : > { %v696_v21 = vpop.f32.mrf.mxu0 }
 0x1bb   : > { %v838_v55 = vpop.f32.mrf.mxu2  ;;  %v2955_v46 = vadd.f32 %v696_v21, %v2826_v8  ;;  %v811_v38 = vpop.f32.mrf.mxu1 }
 0x1bc   : > { %v2952_v61 = vadd.f32 %v838_v55, %v718_v0  ;;  %v2958_v48 = vadd.f32 %v811_v38, %v2841_v20 }
 0x1c0   : > { %v667_v5 = vpop.f32.mrf.mxu3 }
 0x1c1   : > { %v721_v54 = vadd.f32 %v667_v5, %v2821_v36 }
 0x1c2   : > { %v967_v56 = vpop.f32.mrf.mxu0 }
 0x1c3   : > { %v840_v18 = vpop.f32.mrf.mxu2  ;;  %v2967_v25 = vadd.f32 %v967_v56, %v2844_v42  ;;  %v996_v29 = vpop.f32.mrf.mxu1 }
 0x1c4   : > { %v2969_v8 = vadd.f32 %v840_v18, %v721_v54  ;;  %v2972_v1 = vadd.f32 %v996_v29, %v2853_v24 }
 0x1c5   : > { %2299 = vmatmul.msk.bf16.vlgmr.msrb.gmra.mxu3 %vm312_vm3, %v2836_v40  ;;  %2303 = vmatmul.msk.bf16.vlgmr.msrb.gmra.mxu0 %vm312_vm3, %v2836_v40 }
 0x1c6   : > { %2331 = vmatmul.msk.bf16.vlgmr.msrb.gmra.mxu1 %vm312_vm3, %v2964_v60 }
 0x1c8   : > { %2335 = vmatmul.msk.bf16.vlgmr.msrb.gmra.mxu2 %vm312_vm3, %v2964_v60  ;;  %v852_v36 = vpop.f32.mrf.mxu3 }
 0x1c9   : > { %v874_v42 = vadd.f32 %v852_v36, %v2839_v43 }
 0x1ca   : > { %v969_v32 = vpop.f32.mrf.mxu0 }
 0x1cb   : > { %v1025_v20 = vpop.f32.mrf.mxu2  ;;  %v2984_v24 = vadd.f32 %v969_v32, %v2859_v27  ;;  %v998_v33 = vpop.f32.mrf.mxu1 }
 0x1cc   : > { %v2986_v3 = vadd.f32 %v1025_v20, %v874_v42  ;;  %v2989_v62 = vadd.f32 %v998_v33, %v2870_v58 }
 0x1d0   : > { %v854_v40 = vpop.f32.mrf.mxu3 }
 0x1d1   : > { %v877_v63 = vadd.f32 %v854_v40, %v2856_v57  ;;  %v2416_v40 = vld [vmem:[%s3367_s1 + $0x100] sm:$0xff] }
 0x1d2   : > { %v972_v9 = vpop.f32.mrf.mxu0 }
 0x1d3   : > { %v1027_v7 = vpop.f32.mrf.mxu2  ;;  %v3000_v27 = vadd.f32 %v972_v9, %v2876_v13  ;;  %v1001_v45 = vpop.f32.mrf.mxu1 }
 0x1d4   : > { %v2997_v43 = vadd.f32 %v1027_v7, %v877_v63  ;;  %v3003_v4 = vadd.f32 %v1001_v45, %v2884_v51 }
 0x1d5   : > { %2300 = vmatmul.msk.bf16.gmra.mxu3 %vm312_vm3, %v2868_v41  ;;  %2304 = vmatmul.msk.bf16.gmra.mxu0 %vm312_vm3, %v2868_v41 }
 0x1d6   : > { %2332 = vmatmul.msk.bf16.gmra.mxu1 %vm312_vm3, %v2995_v12 }
 0x1d8   : > { %2336 = vmatmul.msk.bf16.gmra.mxu2 %vm312_vm3, %v2995_v12  ;;  %v857_v57 = vpop.f32.mrf.mxu3 }
 0x1d9   : > { %v880_v58 = vadd.f32 %v857_v57, %v2873_v44  ;;  %v3026_v44 = vld [vmem:[%s3367_s1 + $0xf0] sm:$0xff] }
 0x1da   : > { %v974_v37 = vpop.f32.mrf.mxu0 }
 0x1db   : > { %v1030_v13 = vpop.f32.mrf.mxu2  ;;  %v3017_v51 = vadd.f32 %v974_v37, %v2890_v53  ;;  %v1003_v19 = vpop.f32.mrf.mxu1 }
 0x1dc   : > { %v3014_v16 = vadd.f32 %v1030_v13, %v880_v58  ;;  %v3020_v49 = vadd.f32 %v1003_v19, %v2904_v2 }
 0x1e0   : > { %v859_v41 = vpop.f32.mrf.mxu3 }
 0x1e1   : > { %v883_v22 = vadd.f32 %v859_v41, %v2887_v14  ;;  %v2417_v41 = vld [vmem:[%s3367_s1 + $0x108] sm:$0xff] }
 0x1e2   : > { %v977_v39 = vpop.f32.mrf.mxu0 }
 0x1e3   : > { %v1032_v23 = vpop.f32.mrf.mxu2  ;;  %v3031_v15 = vadd.f32 %v977_v39, %v2911_v10  ;;  %v1006_v53 = vpop.f32.mrf.mxu1 }
 0x1e4   : > { %v3028_v11 = vadd.f32 %v1032_v23, %v883_v22  ;;  %v3034_v28 = vadd.f32 %v1006_v53, %v2920_v50 }
 0x1e5   : > { %2301 = vmatmul.msk.bf16.gmra.mxu3 %vm312_vm3, %v2901_v34  ;;  %2305 = vmatmul.msk.bf16.gmra.mxu0 %vm312_vm3, %v2901_v34 }
 0x1e6   : > { %2333 = vmatmul.msk.bf16.gmra.mxu1 %vm312_vm3, %v3026_v44 }
 0x1e8   : > { %2337 = vmatmul.msk.bf16.gmra.mxu2 %vm312_vm3, %v3026_v44  ;;  %v862_v14 = vpop.f32.mrf.mxu3 }
 0x1e9   : > { %v886_v2 = vadd.f32 %v862_v14, %v2907_v35  ;;  %v3057_v35 = vld [vmem:[%s3367_s1 + $0xf8] sm:$0xff] }
 0x1ea   : > { %v979_v31 = vpop.f32.mrf.mxu0 }
 0x1eb   : > { %v1035_v10 = vpop.f32.mrf.mxu2  ;;  %v3048_v50 = vadd.f32 %v979_v31, %v2927_v6  ;;  %v1008_v0 = vpop.f32.mrf.mxu1 }
 0x1ec   : > { %v3045_v26 = vadd.f32 %v1035_v10, %v886_v2  ;;  %v3051_v55 = vadd.f32 %v1008_v0, %v2938_v30 }
 0x1f0   : > { %v864_v34 = vpop.f32.mrf.mxu3 }
 0x1f1   : > { %v889_v21 = vadd.f32 %v864_v34, %v2923_v17  ;;  %v2418_v34 = vld [vmem:[%s3367_s1 + $0x110] sm:$0xff] }
 0x1f2   : > { %v982_v5 = vpop.f32.mrf.mxu0 }
 0x1f3   : > { %v1037_v38 = vpop.f32.mrf.mxu2  ;;  %v3062_v54 = vadd.f32 %v982_v5, %v2944_v47  ;;  %v1011_v6 = vpop.f32.mrf.mxu1 }
 0x1f4   : > { %v3059_v18 = vadd.f32 %v1037_v38, %v889_v21  ;;  %v3065_v56 = vadd.f32 %v1011_v6, %v2952_v61 }
 0x1f5   : > { %2302 = vmatmul.msk.bf16.gmra.mxu3 %vm312_vm3, %v2936_v52  ;;  %2306 = vmatmul.msk.bf16.gmra.mxu0 %vm312_vm3, %v2936_v52 }
 0x1f6   : > { %2334 = vmatmul.msk.bf16.gmra.mxu1 %vm312_vm3, %v3057_v35 }
 0x1f8   : > { %2338 = vmatmul.msk.bf16.gmra.mxu2 %vm312_vm3, %v3057_v35  ;;  %v867_v17 = vpop.f32.mrf.mxu3 }
 0x1f9   : > { %v892_v30 = vadd.f32 %v867_v17, %v2941_v59 }
 0x1fa   : > { %v984_v29 = vpop.f32.mrf.mxu0 }
 0x1fb   : > { %v1040_v47 = vpop.f32.mrf.mxu2  ;;  %v3079_v61 = vadd.f32 %v984_v29, %v2958_v48  ;;  %v1013_v20 = vpop.f32.mrf.mxu1 }
 0x1fc   : > { %v3076_v36 = vadd.f32 %v1040_v47, %v892_v30  ;;  %v3082_v42 = vadd.f32 %v1013_v20, %v2969_v8 }
 0x200   : > { %v869_v52 = vpop.f32.mrf.mxu3 }
 0x201   : > { %v895_v32 = vadd.f32 %v869_v52, %v2955_v46  ;;  %v2419_v52 = vld [vmem:[%s3367_s1 + $0x118] sm:$0xff] }
 0x202   : > { %v1169_v59 = vpop.f32.mrf.mxu0 }
 0x203   : > { %v1042_v33 = vpop.f32.mrf.mxu2  ;;  %v3091_v7 = vadd.f32 %v1169_v59, %v2972_v1  ;;  %v1198_v48 = vpop.f32.mrf.mxu1 }
 0x204   : > { %v3088_v63 = vadd.f32 %v1042_v33, %v895_v32  ;;  %v3094_v9 = vadd.f32 %v1198_v48, %v2986_v3 }
 0x205   : > { %2339 = vmatmul.msk.bf16.vlgmr.msra.gmra.mxu3 %vm312_vm3, %v2964_v60  ;;  %2367 = vmatmul.msk.bf16.vlgmr.msra.gmra.mxu0 %vm312_vm3, %v2416_v40 }
 0x206   : > { %2371 = vmatmul.msk.bf16.vlgmr.msra.gmra.mxu1 %vm312_vm3, %v2416_v40 }
 0x208   : > { %2375 = vmatmul.msk.bf16.vlgmr.msra.gmra.mxu2 %vm312_vm3, %v2416_v40  ;;  %v1140_v46 = vpop.f32.mrf.mxu3 }
 0x209   : > { %v1218_v8 = vadd.f32 %v1140_v46, %v2967_v25 }
 0x20a   : > { %v1171_v57 = vpop.f32.mrf.mxu0 }
 0x20b   : > { %v1313_v45 = vpop.f32.mrf.mxu2  ;;  %v3105_v58 = vadd.f32 %v1171_v57, %v2989_v62  ;;  %v1200_v3 = vpop.f32.mrf.mxu1 }
 0x20c   : > { %v3102_v1 = vadd.f32 %v1313_v45, %v1218_v8  ;;  %v3108_v13 = vadd.f32 %v1200_v3, %v2997_v43 }
 0x210   : > { %v1142_v60 = vpop.f32.mrf.mxu3 }
 0x211   : > { %v1221_v37 = vadd.f32 %v1142_v60, %v2984_v24 }
 0x212   : > { %v1174_v25 = vpop.f32.mrf.mxu0 }
 0x213   : > { %v1315_v19 = vpop.f32.mrf.mxu2  ;;  %v3117_v23 = vadd.f32 %v1174_v25, %v3003_v4  ;;  %v1203_v62 = vpop.f32.mrf.mxu1 }
 0x214   : > { %v3114_v22 = vadd.f32 %v1315_v19, %v1221_v37  ;;  %v3120_v39 = vadd.f32 %v1203_v62, %v3014_v16 }
 0x215   : > { %2340 = vmatmul.msk.bf16.gmra.mxu3 %vm312_vm3, %v2995_v12  ;;  %2368 = vmatmul.msk.bf16.gmra.mxu0 %vm312_vm3, %v2417_v41 }
 0x216   : > { %2372 = vmatmul.msk.bf16.gmra.mxu1 %vm312_vm3, %v2417_v41 }
 0x218   : > { %2376 = vmatmul.msk.bf16.gmra.mxu2 %vm312_vm3, %v2417_v41  ;;  %v1145_v24 = vpop.f32.mrf.mxu3 }
 0x219   : > { %v1224_v43 = vadd.f32 %v1145_v24, %v3000_v27 }
 0x21a   : > { %v1176_v14 = vpop.f32.mrf.mxu0 }
 0x21b   : > { %v1318_v53 = vpop.f32.mrf.mxu2  ;;  %v3131_v2 = vadd.f32 %v1176_v14, %v3020_v49  ;;  %v1205_v16 = vpop.f32.mrf.mxu1 }
 0x21c   : > { %v3128_v4 = vadd.f32 %v1318_v53, %v1224_v43  ;;  %v3134_v10 = vadd.f32 %v1205_v16, %v3028_v11 }
 0x220   : > { %v1147_v12 = vpop.f32.mrf.mxu3 }
 0x221   : > { %v1227_v31 = vadd.f32 %v1147_v12, %v3017_v51 }
 0x222   : > { %v1179_v27 = vpop.f32.mrf.mxu0 }
 0x223   : > { %v1320_v0 = vpop.f32.mrf.mxu2  ;;  %v3143_v38 = vadd.f32 %v1179_v27, %v3034_v28  ;;  %v1208_v49 = vpop.f32.mrf.mxu1 }
 0x224   : > { %v3140_v21 = vadd.f32 %v1320_v0, %v1227_v31  ;;  %v1232_v5 = vadd.f32 %v1208_v49, %v3045_v26 }
 0x225   : > { %2341 = vmatmul.msk.bf16.gmra.mxu3 %vm312_vm3, %v3026_v44  ;;  %2369 = vmatmul.msk.bf16.gmra.mxu0 %vm312_vm3, %v2418_v34 }
 0x226   : > { %2373 = vmatmul.msk.bf16.gmra.mxu1 %vm312_vm3, %v2418_v34 }
 0x228   : > { %2377 = vmatmul.msk.bf16.gmra.mxu2 %vm312_vm3, %v2418_v34  ;;  %v1150_v51 = vpop.f32.mrf.mxu3 }
 0x229   : > { %v1230_v11 = vadd.f32 %v1150_v51, %v3031_v15 }
 0x22a   : > { %v1181_v17 = vpop.f32.mrf.mxu0 }
 0x22b   : > { %v1323_v6 = vpop.f32.mrf.mxu2  ;;  %v3155_v28 = vadd.f32 %v1181_v17, %v3051_v55  ;;  %v1210_v26 = vpop.f32.mrf.mxu1 }
 0x22c   : > { %v3152_v30 = vadd.f32 %v1323_v6, %v1230_v11  ;;  %v1235_v47 = vadd.f32 %v1210_v26, %v3059_v18 }
 0x230   : > { %v1152_v44 = vpop.f32.mrf.mxu3 }
 0x231   : > { %v1233_v29 = vadd.f32 %v1152_v44, %v3048_v50 }
 0x232   : > { %v1184_v32 = vpop.f32.mrf.mxu0 }
 0x233   : > { %v1325_v20 = vpop.f32.mrf.mxu2  ;;  %v3165_v33 = vadd.f32 %v1184_v32, %v3065_v56  ;;  %v1213_v40 = vpop.f32.mrf.mxu1 }
 0x234   : > { %v3162_v15 = vadd.f32 %v1325_v20, %v1233_v29  ;;  %v1238_v55 = vadd.f32 %v1213_v40, %v3076_v36 }
 0x235   : > { %2342 = vmatmul.msk.bf16.gmra.mxu3 %vm312_vm3, %v3057_v35  ;;  %2370 = vmatmul.msk.bf16.gmra.mxu0 %vm312_vm3, %v2419_v52 }
 0x236   : > { %2374 = vmatmul.msk.bf16.gmra.mxu1 %vm312_vm3, %v2419_v52 }
 0x238   : > { %2378 = vmatmul.msk.bf16.gmra.mxu2 %vm312_vm3, %v2419_v52  ;;  %v1155_v50 = vpop.f32.mrf.mxu3 }
 0x239   : > { %v1236_v18 = vadd.f32 %v1155_v50, %v3062_v54 }
 0x23a   : > { %v1186_v48 = vpop.f32.mrf.mxu0 }
 0x23b   : > { %v1328_v59 = vpop.f32.mrf.mxu2  ;;  %v3177_v56 = vadd.f32 %v1186_v48, %v3082_v42  ;;  %v1215_v36 = vpop.f32.mrf.mxu1 }
 0x23c   : > { %v3174_v46 = vadd.f32 %v1328_v59, %v1236_v18  ;;  %v1241_v8 = vadd.f32 %v1215_v36, %v3088_v63  ;;  %v1793_v18 = vld [vmem:[%s3368_s2] sm:$0x7] }
 0x23d   : > { %v3241_v36 = vperm.slane %v1793_v18, 0 }
 0x240   : > { %v1157_v35 = vpop.f32.mrf.mxu3 }
 0x241   : > { %v1239_v45 = vadd.f32 %v1157_v35, %v3079_v61 }
 0x242   : > { %v1371_v3 = vpop.f32.mrf.mxu0 }
 0x243   : > { %v1330_v57 = vpop.f32.mrf.mxu2  ;;  %v1393_v37 = vadd.f32 %v1371_v3, %v3094_v9  ;;  %v1486_v54 = vpop.f32.mrf.mxu1 }
 0x244   : > { %v3181_v60 = vadd.f32 %v1330_v57, %v1239_v45  ;;  %v3243_v45 = vperm.slane %v1793_v18, 1 }
 0x248   : > { %v1342_v19 = vpop.f32.mrf.mxu3 }
 0x249   : > { %v1392_v50 = vadd.f32 %v1342_v19, %v3091_v7 }
 0x24a   : > { %v1373_v25 = vpop.f32.mrf.mxu0 }
 0x24b   : > { %v1515_v41 = vpop.f32.mrf.mxu2  ;;  %v3185_v62 = vadd.f32 %v1373_v25, %v3108_v13  ;;  %v1488_v42 = vpop.f32.mrf.mxu1 }
 0x24c   : > { %v1565_v35 = vadd.f32 %v1515_v41, %v1392_v50  ;;  %v3255_v50 = vperm.slane %v1793_v18, 2 }
 0x250   : > { %v1344_v24 = vpop.f32.mrf.mxu3 }
 0x252   : > { %v1376_v63 = vpop.f32.mrf.mxu0 }
 0x253   : > { %v1517_v43 = vpop.f32.mrf.mxu2  ;;  %v3188_v53 = vadd.f32 %v1376_v63, %v3120_v39  ;;  %v3190_v61 = vpop.f32.mrf.mxu1 }
 0x258   : > { %v1347_v14 = vpop.f32.mrf.mxu3 }
 0x25a   : > { %v1378_v9 = vpop.f32.mrf.mxu0 }
 0x25b   : > { %v3192_v16 = vpop.f32.mrf.mxu2  ;;  %v3195_v12 = vadd.f32 %v1378_v9, %v3134_v10  ;;  %v3197_v31 = vpop.f32.mrf.mxu1 }
 0x260   : > { %v3199_v13 = vpop.f32.mrf.mxu3 }
 0x262   : > { %v1381_v34 = vpop.f32.mrf.mxu0 }
 0x263   : > { %v3201_v0 = vpop.f32.mrf.mxu2  ;;  %v3203_v27 = vadd.f32 %v1381_v34, %v1232_v5  ;;  %v3205_v39 = vpop.f32.mrf.mxu1 }
 0x268   : > { %v3207_v49 = vpop.f32.mrf.mxu3 }
 0x26a   : > { %v1383_v11 = vpop.f32.mrf.mxu0 }
 0x26b   : > { %v3209_v51 = vpop.f32.mrf.mxu2  ;;  %v3211_v6 = vadd.f32 %v1383_v11, %v1235_v47  ;;  %v3213_v10 = vpop.f32.mrf.mxu1  ;;  %v1567_v11 = vadd.f32 %v1488_v42, %v3114_v22  ;;  %v1398_v22 = vadd.f32 %v1347_v14, %v3117_v23 }
 0x26d   : > { %v1571_v14 = vadd.f32 %v3192_v16, %v1398_v22 }
 0x270   : > { %v3215_v17 = vpop.f32.mrf.mxu3 }
 0x272   : > { %v1386_v44 = vpop.f32.mrf.mxu0 }
 0x273   : > { %v3217_v26 = vpop.f32.mrf.mxu2  ;;  %v3219_v29 = vadd.f32 %v1386_v44, %v1238_v55  ;;  %v3221_v5 = vpop.f32.mrf.mxu1  ;;  %v1564_v55 = vadd.f32 %v1486_v54, %v3102_v1  ;;  %v1395_v1 = vadd.f32 %v1344_v24, %v3105_v58 }
 0x278   : > { %v3223_v20 = vpop.f32.mrf.mxu3 }
 0x27a   : > { %v1388_v32 = vpop.f32.mrf.mxu0 }
 0x27b   : > { %v3225_v52 = vpop.f32.mrf.mxu2  ;;  %v3227_v40 = vadd.f32 %v1388_v32, %v1241_v8  ;;  %v3229_v47 = vpop.f32.mrf.mxu1 }
 0x27d   : > { %3372 = vst [vmem:[#allocation2_spill] sm:$0xff] %v3227_v40 }
 0x280   : > { %v3235_v59 = vpop.f32.mrf.mxu3 }
 0x282   : > { %v1659_v8 = vpop.f32.mrf.mxu0 }
 0x283   : > { %v3239_v48 = vpop.f32.mrf.mxu2  ;;  %v1737_v57 = vadd.f32 %v1659_v8, %v1564_v55  ;;  %v1688_v3 = vpop.f32.mrf.mxu1  ;;  %v1568_v55 = vadd.f32 %v1517_v43, %v1395_v1 }
 0x284   : > { %v1738_v7 = vadd.f32 %v1688_v3, %v1565_v35 }
 0x285   : > { %v1801_v19 = vmul.f32 %v3241_v36, %v1737_v57 }
 0x286   : > { %v1761_v54 = vpack.c.bf16 %v1738_v7, %v1737_v57  ;;  %v1802_v25 = vmul.f32 %v3243_v45, %v1738_v7 }
 0x287   : > { %v1866_v41 = vmul.f32 %v1801_v19, %v1737_v57 }
 0x288   : > { %1777 = vst [vmem:[%s3248_s15] sm:$0xff] %v1761_v54  ;;  %v1867_v63 = vmul.f32 %v1802_v25, %v1738_v7  ;;  %v1544_v9 = vpop.f32.mrf.mxu3  ;;  %v1825_v34 = vadd.f32 %v1802_v25, %v1801_v19 }
 0x289   : > { %v1566_v44 = vadd.f32 %v1544_v9, %v1393_v37 }
 0x28a   : > { %v1661_v35 = vpop.f32.mrf.mxu0  ;;  %v1890_v8 = vadd.f32 %v1867_v63, %v1866_v41  ;;  %v1570_v63 = vadd.f32 %v3190_v61, %v3128_v4 }
 0x28b   : > { %v1717_v32 = vpop.f32.mrf.mxu2  ;;  %v1740_v24 = vadd.f32 %v1661_v35, %v1567_v11  ;;  %v1690_v3 = vpop.f32.mrf.mxu1 }
 0x28c   : > { %v1739_v58 = vadd.f32 %v1717_v32, %v1566_v44  ;;  %v1741_v40 = vadd.f32 %v1690_v3, %v1568_v55 }
 0x28d   : > { %v1804_v7 = vmul.f32 %v3241_v36, %v1740_v24 }
 0x28e   : > { %v1762_v57 = vpack.c.bf16 %v1739_v58, %v1739_v58  ;;  %v1803_v19 = vmul.f32 %v3255_v50, %v1739_v58  ;;  %v1763_v37 = vpack.c.bf16 %v1741_v40, %v1740_v24  ;;  %v1805_v42 = vmul.f32 %v3243_v45, %v1741_v40 }
 0x28f   : > { %v1869_v18 = vmul.f32 %v1804_v7, %v1740_v24 }
 0x290   : > { %1778 = vst [vmem:[%s3248_s15 + $0x8] sm:$0xf] %v1762_v57  ;;  %v1826_v43 = vadd.f32 %v1825_v34, %v1803_v19  ;;  %v1868_v1 = vmul.f32 %v1803_v19, %v1739_v58  ;;  %v1870_v54 = vmul.f32 %v1805_v42, %v1741_v40  ;;  %v1546_v25 = vpop.f32.mrf.mxu3  ;;  %v1829_v41 = vadd.f32 %v1805_v42, %v1804_v7 }
 0x291   : > { %1779 = vst [vmem:[%s3248_s15 + $0xc] sm:$0xff] %v1763_v37  ;;  %v1569_v9 = vadd.f32 %v1546_v25, %v3185_v62  ;;  %v1401_v62 = vadd.f32 %v3199_v13, %v3131_v2  ;;  %v1573_v37 = vadd.f32 %v3197_v31, %v3140_v21 }
 0x292   : > { %1827 = vadd.xlane.f32.xlu2 %v1826_v43  ;;  %v1891_v23 = vadd.f32 %v1890_v8, %v1868_v1  ;;  %v1664_v44 = vpop.f32.mrf.mxu0  ;;  %v1894_v32 = vadd.f32 %v1870_v54, %v1869_v18 }
 0x293   : > { %v1719_v11 = vpop.f32.mrf.mxu2  ;;  %v1743_v55 = vadd.f32 %v1664_v44, %v1570_v63  ;;  %v1693_v35 = vpop.f32.mrf.mxu1  ;;  %v1574_v2 = vadd.f32 %v3201_v0, %v1401_v62 }
 0x294   : > { %v1742_v34 = vadd.f32 %v1719_v11, %v1569_v9  ;;  %1892 = vadd.xlane.f32.xlu0 %v1891_v23  ;;  %v1744_v40 = vadd.f32 %v1693_v35, %v1571_v14  ;;  %v1576_v35 = vadd.f32 %v3205_v39, %v3152_v30 }
 0x295   : > { %v1807_v4 = vmul.f32 %v3241_v36, %v1743_v55 }
 0x296   : > { %v1764_v58 = vpack.c.bf16 %v1742_v34, %v1742_v34  ;;  %v1806_v24 = vmul.f32 %v3255_v50, %v1742_v34  ;;  %v1765_v61 = vpack.c.bf16 %v1744_v40, %v1743_v55  ;;  %v1808_v8 = vmul.f32 %v3243_v45, %v1744_v40 }
 0x297   : > { %v1872_v16 = vmul.f32 %v1807_v4, %v1743_v55 }
 0x298   : > { %1780 = vst [vmem:[%s3248_s15 + $0x14] sm:$0xf] %v1764_v58  ;;  %v1871_v3 = vmul.f32 %v1806_v24, %v1742_v34  ;;  %v1830_v57 = vadd.f32 %v1829_v41, %v1806_v24  ;;  %v1873_v7 = vmul.f32 %v1808_v8, %v1744_v40  ;;  %v1549_v19 = vpop.f32.mrf.mxu3  ;;  %v1833_v22 = vadd.f32 %v1808_v8, %v1807_v4 }
 0x299   : > { %1781 = vst [vmem:[%s3248_s15 + $0x18] sm:$0xff] %v1765_v61  ;;  %v1572_v42 = vadd.f32 %v1549_v19, %v3188_v53  ;;  %v1404_v53 = vadd.f32 %v3207_v49, %v3143_v38 }
 0x29a   : > { %v1895_v43 = vadd.f32 %v1894_v32, %v1871_v3  ;;  %v1666_v13 = vpop.f32.mrf.mxu0  ;;  %v1898_v1 = vadd.f32 %v1873_v7, %v1872_v16 }
 0x29b   : > { %v1722_v18 = vpop.f32.mrf.mxu2  ;;  %v1746_v25 = vadd.f32 %v1666_v13, %v1573_v37  ;;  %v1695_v41 = vpop.f32.mrf.mxu1  ;;  %v1577_v38 = vadd.f32 %v3209_v51, %v1404_v53 }
 0x29c   : > { %v1745_v54 = vadd.f32 %v1722_v18, %v1572_v42  ;;  %1896 = vadd.xlane.f32.xlu1 %v1895_v43  ;;  %1831 = vadd.xlane.f32.xlu0 %v1830_v57  ;;  %v1747_v63 = vadd.f32 %v1695_v41, %v1574_v2  ;;  %v1579_v43 = vadd.f32 %v3213_v10, %v3162_v15 }
 0x29d   : > { %v1810_v11 = vmul.f32 %v3241_v36, %v1746_v25 }
 0x29e   : > { %v1766_v9 = vpack.c.bf16 %v1745_v54, %v1745_v54  ;;  %v1809_v21 = vmul.f32 %v3255_v50, %v1745_v54  ;;  %v1767_v31 = vpack.c.bf16 %v1747_v63, %v1746_v25  ;;  %v1811_v0 = vmul.f32 %v3243_v45, %v1747_v63 }
 0x29f   : > { %v1875_v23 = vmul.f32 %v1810_v11, %v1746_v25 }
 0x2a0   : > { %1782 = vst [vmem:[%s3248_s15 + $0x20] sm:$0xf] %v1766_v9  ;;  %v1834_v14 = vadd.f32 %v1833_v22, %v1809_v21  ;;  %v1874_v44 = vmul.f32 %v1809_v21, %v1745_v54  ;;  %v1876_v32 = vmul.f32 %v1811_v0, %v1747_v63  ;;  %v1551_v34 = vpop.f32.mrf.mxu3  ;;  %v1837_v55 = vadd.f32 %v1811_v0, %v1810_v11 }
 0x2a1   : > { %1783 = vst [vmem:[%s3248_s15 + $0x24] sm:$0xff] %v1767_v31  ;;  %v1575_v40 = vadd.f32 %v1551_v34, %v3195_v12  ;;  %v1407_v12 = vadd.f32 %v3215_v17, %v3155_v28 }
 0x2a2   : > { %v1899_v24 = vadd.f32 %v1898_v1, %v1874_v44  ;;  %v1669_v49 = vpop.f32.mrf.mxu0  ;;  %v1902_v4 = vadd.f32 %v1876_v32, %v1875_v23  ;;  %v1582_v32 = vadd.f32 %v3221_v5, %v3174_v46 }
 0x2a3   : > { %v1724_v58 = vpop.f32.mrf.mxu2  ;;  %v1749_v61 = vadd.f32 %v1669_v49, %v1576_v35  ;;  %v1698_v8 = vpop.f32.mrf.mxu1  ;;  %v1580_v28 = vadd.f32 %v3217_v26, %v1407_v12  ;;  %v1585_v12 = vadd.f32 %v3229_v47, %v3181_v60 }
 0x2a4   : > { %v1748_v62 = vadd.f32 %v1724_v58, %v1575_v40  ;;  %1835 = vadd.xlane.f32.xlu1 %v1834_v14  ;;  %1900 = vadd.xlane.f32.xlu2 %v1899_v24  ;;  %v1750_v16 = vadd.f32 %v1698_v8, %v1577_v38 }
 0x2a5   : > { %v1813_v30 = vmul.f32 %v3241_v36, %v1749_v61 }
 0x2a6   : > { %v1768_v3 = vpack.c.bf16 %v1748_v62, %v1748_v62  ;;  %v1812_v57 = vmul.f32 %v3255_v50, %v1748_v62  ;;  %v1769_v39 = vpack.c.bf16 %v1750_v16, %v1749_v61  ;;  %v1814_v51 = vmul.f32 %v3243_v45, %v1750_v16 }
 0x2a7   : > { %v1878_v7 = vmul.f32 %v1813_v30, %v1749_v61 }
 0x2a8   : > { %1784 = vst [vmem:[%s3248_s15 + $0x2c] sm:$0xf] %v1768_v3  ;;  %v1877_v19 = vmul.f32 %v1812_v57, %v1748_v62  ;;  %v1838_v22 = vadd.f32 %v1837_v55, %v1812_v57  ;;  %v1879_v37 = vmul.f32 %v1814_v51, %v1750_v16  ;;  %v1554_v42 = vpop.f32.mrf.mxu3  ;;  %v1841_v18 = vadd.f32 %v1814_v51, %v1813_v30 }
 0x2a9   : > { %1785 = vst [vmem:[%s3248_s15 + $0x30] sm:$0xff] %v1769_v39  ;;  %v1578_v2 = vadd.f32 %v1554_v42, %v3203_v27  ;;  %v1410_v27 = vadd.f32 %v3223_v20, %v3165_v33 }
 0x2aa   : > { %v1903_v1 = vadd.f32 %v1902_v4, %v1877_v19  ;;  %v1671_v17 = vpop.f32.mrf.mxu0  ;;  %v1906_v54 = vadd.f32 %v1879_v37, %v1878_v7 }
 0x2ab   : > { %v1727_v13 = vpop.f32.mrf.mxu2  ;;  %v1752_v41 = vadd.f32 %v1671_v17, %v1579_v43  ;;  %v1700_v63 = vpop.f32.mrf.mxu1  ;;  %v1583_v33 = vadd.f32 %v3225_v52, %v1410_v27 }
 0x2ac   : > { %v1751_v25 = vadd.f32 %v1727_v13, %v1578_v2  ;;  %1904 = vadd.xlane.f32.xlu0 %v1903_v1  ;;  %1839 = vadd.xlane.f32.xlu2 %v1838_v22  ;;  %v1753_v9 = vadd.f32 %v1700_v63, %v1580_v28 }
 0x2ad   : > { %v1816_v15 = vmul.f32 %v3241_v36, %v1752_v41 }
 0x2ae   : > { %v1770_v11 = vpack.c.bf16 %v1751_v25, %v1751_v25  ;;  %v1815_v21 = vmul.f32 %v3255_v50, %v1751_v25  ;;  %v1771_v10 = vpack.c.bf16 %v1753_v9, %v1752_v41  ;;  %v1817_v26 = vmul.f32 %v3243_v45, %v1753_v9 }
 0x2af   : > { %v1881_v53 = vmul.f32 %v1816_v15, %v1752_v41 }
 0x2b0   : > { %1786 = vst [vmem:[%s3248_s15 + $0x38] sm:$0xf] %v1770_v11  ;;  %v1880_v31 = vmul.f32 %v1815_v21, %v1751_v25  ;;  %v1842_v0 = vadd.f32 %v1841_v18, %v1815_v21  ;;  %v1882_v23 = vmul.f32 %v1817_v26, %v1753_v9  ;;  %v1556_v14 = vpop.f32.mrf.mxu3  ;;  %v1845_v44 = vadd.f32 %v1817_v26, %v1816_v15  ;;  %v3373_v25 = vld [vmem:[#allocation2_spill] sm:$0xff] }
 0x2b1   : > { %1787 = vst [vmem:[%s3248_s15 + $0x3c] sm:$0xff] %v1771_v10  ;;  %v1581_v34 = vadd.f32 %v1556_v14, %v3211_v6  ;;  %v1413_v6 = vadd.f32 %v3235_v59, %v3177_v56 }
 0x2b2   : > { %v1907_v35 = vadd.f32 %v1906_v54, %v1880_v31  ;;  %v1674_v20 = vpop.f32.mrf.mxu0  ;;  %v1910_v40 = vadd.f32 %v1882_v23, %v1881_v53 }
 0x2b3   : > { %v1729_v55 = vpop.f32.mrf.mxu2  ;;  %v1755_v24 = vadd.f32 %v1674_v20, %v1582_v32  ;;  %v1703_v38 = vpop.f32.mrf.mxu1  ;;  %v1586_v59 = vadd.f32 %v3239_v48, %v1413_v6 }
 0x2b4   : > { %v1754_v58 = vadd.f32 %v1729_v55, %v1581_v34  ;;  %1908 = vadd.xlane.f32.xlu1 %v1907_v35  ;;  %1843 = vadd.xlane.f32.xlu2 %v1842_v0  ;;  %v1756_v49 = vadd.f32 %v1703_v38, %v1583_v33 }
 0x2b5   : > { %v1819_v62 = vmul.f32 %v3241_v36, %v1755_v24 }
 0x2b6   : > { %v1772_v4 = vpack.c.bf16 %v1754_v58, %v1754_v58  ;;  %v1818_v46 = vmul.f32 %v3255_v50, %v1754_v58  ;;  %v1773_v5 = vpack.c.bf16 %v1756_v49, %v1755_v24  ;;  %v1820_v52 = vmul.f32 %v3243_v45, %v1756_v49 }
 0x2b7   : > { %v1884_v61 = vmul.f32 %v1819_v62, %v1755_v24 }
 0x2b8   : > { %1788 = vst [vmem:[%s3248_s15 + $0x44] sm:$0xf] %v1772_v4  ;;  %v1846_v8 = vadd.f32 %v1845_v44, %v1818_v46  ;;  %v1883_v16 = vmul.f32 %v1818_v46, %v1754_v58  ;;  %v1885_v3 = vmul.f32 %v1820_v52, %v1756_v49  ;;  %v1559_v57 = vpop.f32.mrf.mxu3  ;;  %v1849_v30 = vadd.f32 %v1820_v52, %v1819_v62 }
 0x2b9   : > { %1789 = vst [vmem:[%s3248_s15 + $0x48] sm:$0xff] %v1773_v5  ;;  %v1584_v39 = vadd.f32 %v1559_v57, %v3219_v29 }
 0x2ba   : > { %1847 = vadd.xlane.f32.xlu0 %v1846_v8  ;;  %v1911_v56 = vadd.f32 %v1910_v40, %v1883_v16  ;;  %v1676_v7 = vpop.f32.mrf.mxu0  ;;  %v1914_v19 = vadd.f32 %v1885_v3, %v1884_v61 }
 0x2bb   : > { %v1732_v51 = vpop.f32.mrf.mxu2  ;;  %v1758_v37 = vadd.f32 %v1676_v7, %v1585_v12  ;;  %v1705_v42 = vpop.f32.mrf.mxu1 }
 0x2bc   : > { %v1757_v22 = vadd.f32 %v1732_v51, %v1584_v39  ;;  %v1759_v18 = vadd.f32 %v1705_v42, %v1586_v59 }
 0x2bd   : > { %v1822_v2 = vmul.f32 %v3241_v36, %v1758_v37 }
 0x2be   : > { %v1774_v43 = vpack.c.bf16 %v1757_v22, %v1757_v22  ;;  %v1821_v60 = vmul.f32 %v3255_v50, %v1757_v22  ;;  %v1775_v47 = vpack.c.bf16 %v1759_v18, %v1758_v37  ;;  %v1823_v29 = vmul.f32 %v3243_v45, %v1759_v18 }
 0x2bf   : > { %v1887_v13 = vmul.f32 %v1822_v2, %v1758_v37 }
 0x2c0   : > { %1790 = vst [vmem:[%s3248_s15 + $0x50] sm:$0xf] %v1774_v43  ;;  %v1850_v1 = vadd.f32 %v1849_v30, %v1821_v60  ;;  %v1886_v48 = vmul.f32 %v1821_v60, %v1757_v22  ;;  %v1888_v28 = vmul.f32 %v1823_v29, %v1759_v18  ;;  %v1561_v17 = vpop.f32.mrf.mxu3  ;;  %v1853_v54 = vadd.f32 %v1823_v29, %v1822_v2 }
 0x2c1   : > { %1791 = vst [vmem:[%s3248_s15 + $0x54] sm:$0xff] %v1775_v47  ;;  %v1587_v41 = vadd.f32 %v1561_v17, %v3373_v25 }
 0x2c2   : > { %1851 = vadd.xlane.f32.xlu1 %v1850_v1  ;;  %v1915_v63 = vadd.f32 %v1914_v19, %v1886_v48  ;;  %v1918_v9 = vadd.f32 %v1888_v28, %v1887_v13 }
 0x2c3   : > { %v1734_v36 = vpop.f32.mrf.mxu2 }
 0x2c4   : > { %v1760_v11 = vadd.f32 %v1734_v36, %v1587_v41  ;;  %1916 = vadd.xlane.f32.xlu0 %v1915_v63 }
 0x2c6   : > { %v1776_v21 = vpack.c.bf16 %v1760_v11, %v1760_v11  ;;  %v1824_v45 = vmul.f32 %v3255_v50, %v1760_v11 }
 0x2c8   : > { %1792 = vst [vmem:[%s3248_s15 + $0x5c] sm:$0xf] %v1776_v21  ;;  %v1854_v15 = vadd.f32 %v1853_v54, %v1824_v45  ;;  %v1889_v27 = vmul.f32 %v1824_v45, %v1760_v11 }
 0x2ca   : > { %1855 = vadd.xlane.f32.xlu2 %v1854_v15  ;;  %v1919_v10 = vadd.f32 %v1918_v9, %v1889_v27 }
 0x2cc   : > { %1920 = vadd.xlane.f32.xlu1 %v1919_v10 }
 0x2d2   : > { %1912 = vadd.xlane.f32.xlu2 %v1911_v56 }
 0x305   : > { %v1828_v26 = vpop.xlane.xlu2 %1827 }
 0x306   : > { %1858 = vst.msk [vmem:[%s244_s21] sm:$0xff] %vm1857_vm10, %v1828_v26 }
 0x307   : > { %v1893_v50 = vpop.xlane.xlu0 %1892 }
 0x308   : > { %1922 = vst.msk [vmem:[%s3337_s24] sm:$0xff] %vm1857_vm10, %v1893_v50 }
 0x30f   : > { %v1897_v53 = vpop.xlane.xlu1 %1896  ;;  %v1832_v31 = vpop.xlane.xlu0 %1831 }
 0x310   : > { %1923 = vst.msk [vmem:[%s3337_s24 + $0x8] sm:$0xff] %vm1857_vm10, %v1897_v53 }
 0x311   : > { %1859 = vst.msk [vmem:[%s244_s21 + $0x8] sm:$0xff] %vm1857_vm10, %v1832_v31 }
 0x317   : > { %v1836_v0 = vpop.xlane.xlu1 %1835  ;;  %v1901_v23 = vpop.xlane.xlu2 %1900 }
 0x318   : > { %1860 = vst.msk [vmem:[%s244_s21 + $0x10] sm:$0xff] %vm1857_vm10, %v1836_v0 }
 0x319   : > { %1924 = vst.msk [vmem:[%s3337_s24 + $0x10] sm:$0xff] %vm1857_vm10, %v1901_v23 }
 0x31f   : > { %v1905_v14 = vpop.xlane.xlu0 %1904  ;;  %v1840_v44 = vpop.xlane.xlu2 %1839 }
 0x320   : > { %1925 = vst.msk [vmem:[%s3337_s24 + $0x18] sm:$0xff] %vm1857_vm10, %v1905_v14 }
 0x321   : > { %1861 = vst.msk [vmem:[%s244_s21 + $0x18] sm:$0xff] %vm1857_vm10, %v1840_v44 }
 0x327   : > { %v1909_v32 = vpop.xlane.xlu1 %1908  ;;  %v1844_v34 = vpop.xlane.xlu2 %1843 }
 0x328   : > { %1926 = vst.msk [vmem:[%s3337_s24 + $0x20] sm:$0xff] %vm1857_vm10, %v1909_v32 }
 0x329   : > { %1862 = vst.msk [vmem:[%s244_s21 + $0x20] sm:$0xff] %vm1857_vm10, %v1844_v34 }
 0x32d   : > { %v1848_v55 = vpop.xlane.xlu0 %1847 }
 0x32e   : > { %1863 = vst.msk [vmem:[%s244_s21 + $0x28] sm:$0xff] %vm1857_vm10, %v1848_v55 }
 0x335   : > { %v1852_v35 = vpop.xlane.xlu1 %1851 }
 0x336   : > { %1864 = vst.msk [vmem:[%s244_s21 + $0x30] sm:$0xff] %vm1857_vm10, %v1852_v35 }
 0x337   : > { %v1917_v33 = vpop.xlane.xlu0 %1916 }
 0x338   : > { %1928 = vst.msk [vmem:[%s3337_s24 + $0x30] sm:$0xff] %vm1857_vm10, %v1917_v33 }
 0x33d   : > { %v1856_v20 = vpop.xlane.xlu2 %1855 }
 0x33e   : > { %1865 = vst.msk [vmem:[%s244_s21 + $0x38] sm:$0xff] %vm1857_vm10, %v1856_v20 }
 0x33f   : > { %v1921_v40 = vpop.xlane.xlu1 %1920 }
 0x340   : > { %1929 = vst.msk [vmem:[%s3337_s24 + $0x38] sm:$0xff] %vm1857_vm10, %v1921_v40 }
 0x345   : > { %v1913_v58 = vpop.xlane.xlu2 %1912 }
 0x346   : > { %1927 = vst.msk [vmem:[%s3337_s24 + $0x28] sm:$0xff] %vm1857_vm10, %v1913_v58 }
 0x347 PF: > { %s16_s18 = sadd.s32 1, %s2446_s18  }
 0x348   : > { %p13_p4 = scmp.ge.s32.totalorder %s16_s18, 4  }
 0x34a   :  { %15 = sbr.rel (!%p13_p4) target bundleno = 1 (0x1), region = 94 }

</bundles_post_ra>
